<compile_context>
chip_gen: v6e
topology: v6e:2x2x1
jax: 0.10.0
libtpu: 0.0.40
codegen_flags: <defaults>
</compile_context>

<pallas_src>
import jax
import jax.numpy as jnp
from jax.experimental import pallas as pl
from jax.experimental.pallas import tpu as pltpu

# ---------------- config (synthetic "args") ----------------
VOCAB       = 50
HIDDEN      = 32           # args.hidden_size
NUM_HEADS   = 4
HEAD_DIM    = HIDDEN // NUM_HEADS
FF          = 64
NUM_LAYERS  = 2            # args.num_layers
MAX_SEQ     = 16
NUM_CLASSES = 3            # args.classify
PAD_IDX     = 0            # args.pad_idx
LN_EPS      = 1e-12

_ATTN_SCALE = 1.0 / float(HEAD_DIM) ** 0.5

WEIGHT_ORDER = ("word_emb", "emb_ln_g", "emb_ln_b",
                "wq", "bq", "wk", "bk", "wv", "bv",
                "wo", "bo", "ln1_g", "ln1_b",
                "w1", "b1", "w2", "b2", "ln2_g", "ln2_b")


# ---------------- in-kernel helpers ----------------
def _ln(x, g, b):
    mu = jnp.mean(x, axis=-1, keepdims=True)
    xc = x - mu
    var = jnp.mean(xc * xc, axis=-1, keepdims=True)
    return xc * jax.lax.rsqrt(var + LN_EPS) * g + b


# ---------------- Kernel 1: fused encoder (embedding -> all BERT layers) ----------------
def _encoder_kernel(ids_ref, amask_ref, pos_ref,
                    wemb_ref, eg_ref, eb_ref,
                    wq_ref, bq_ref, wk_ref, bk_ref, wv_ref, bv_ref,
                    wo_ref, bo_ref, ln1g_ref, ln1b_ref,
                    w1_ref, b1_ref, w2_ref, b2_ref, ln2g_ref, ln2b_ref,
                    hid_ref):
    ids = ids_ref[0]                      # (B*S, 1) int32
    keep = amask_ref[0]                   # (B*S, B*S) float, 1 = attend
    bs = ids.shape[0]

    # token embedding as a one-hot matmul (exact gather, MXU-friendly, no DMA gather)
    onehot = (jax.lax.broadcasted_iota(jnp.int32, (bs, VOCAB), 1) == ids).astype(jnp.float32)
    x = jnp.dot(onehot, wemb_ref[...], preferred_element_type=jnp.float32) + pos_ref[...]
    x = _ln(x, eg_ref[...], eb_ref[...])                                   # embedding LayerNorm

    for l in range(NUM_LAYERS):
        # ---- multi-head self-attention (heads via pre-split per-head weights) ----
        attn = None
        for h in range(NUM_HEADS):
            q = jnp.dot(x, wq_ref[l, h], preferred_element_type=jnp.float32) + bq_ref[l, h]
            k = jnp.dot(x, wk_ref[l, h], preferred_element_type=jnp.float32) + bk_ref[l, h]
            v = jnp.dot(x, wv_ref[l, h], preferred_element_type=jnp.float32) + bv_ref[l, h]
            # scores over the flattened (B*S) axis; cross-sequence pairs are masked out,
            # so this equals per-batch attention exactly (masked exp underflows to 0).
            s = jax.lax.dot_general(q, k, (((1,), (1,)), ((), ())),
                                    preferred_element_type=jnp.float32) * _ATTN_SCALE
            s = jnp.where(keep > 0.0, s, jnp.float32(-1e9))
            s = s - jnp.max(s, axis=-1, keepdims=True)
            p = jnp.exp(s)
            p = p * pl.reciprocal(jnp.sum(p, axis=-1, keepdims=True), approx=True)
            ctx = jnp.dot(p, v, preferred_element_type=jnp.float32)        # (B*S, dh)
            part = jnp.dot(ctx, wo_ref[l, h], preferred_element_type=jnp.float32)
            attn = part if attn is None else attn + part
        attn = attn + bo_ref[l]
        x = _ln(attn + x, ln1g_ref[l], ln1b_ref[l])

        # ---- feed-forward ----
        hmid = jnp.dot(x, w1_ref[l], preferred_element_type=jnp.float32) + b1_ref[l]
        hmid = jax.nn.gelu(hmid)
        ffn = jnp.dot(hmid, w2_ref[l], preferred_element_type=jnp.float32) + b2_ref[l]
        x = _ln(ffn + x, ln2g_ref[l], ln2b_ref[l])

    hid_ref[0] = x


def encode_pair(params, ids_col, attn_mask, pos2d):
    bs = ids_col.shape[1]
    weights = [params[k] for k in WEIGHT_ORDER]

    def full_spec(a):
        return pl.BlockSpec(a.shape, lambda p, n=a.ndim: (0,) * n)

    return pl.pallas_call(
        _encoder_kernel,
        grid=(2,),                                   # one grid step per input sequence
        in_specs=[pl.BlockSpec((1, bs, 1), lambda p: (p, 0, 0)),
                  pl.BlockSpec((1, bs, bs), lambda p: (p, 0, 0)),
                  full_spec(pos2d)] + [full_spec(a) for a in weights],
        out_specs=pl.BlockSpec((1, bs, HIDDEN), lambda p: (p, 0, 0)),
        out_shape=jax.ShapeDtypeStruct((2, bs, HIDDEN), jnp.float32),
        compiler_params=pltpu.CompilerParams(dimension_semantics=("parallel",)),
    )(ids_col, attn_mask, pos2d, *weights)


# ---------------- Kernel 2: mean-pool + combine + pooler + classifier ----------------
def _head_kernel(hid_ref, pmask_ref, wp_ref, bp_ref, wc_ref, bc_ref, o_ref):
    # torch aliasing bug reproduced: out1 is out2 is self.all_layers, so BOTH poolings
    # read the final hidden states of input_ids2 (hid_ref[1]) with their own masks.
    h2 = hid_ref[1]                                  # (B*S, H)
    m1 = pmask_ref[0]                                # (B, B*S) row-selection mask for seq 1
    m2 = pmask_ref[1]                                # (B, B*S) row-selection mask for seq 2
    e1 = jnp.dot(m1, h2, preferred_element_type=jnp.float32) * pl.reciprocal(
        jnp.sum(m1, axis=-1, keepdims=True), approx=True)
    e2 = jnp.dot(m2, h2, preferred_element_type=jnp.float32) * pl.reciprocal(
        jnp.sum(m2, axis=-1, keepdims=True), approx=True)
    # [e1, e2, e1*e2, |e1-e2|] @ Wp folded into 4 partial matmuls (no lane concat needed)
    pooled = (jnp.dot(e1, wp_ref[0], preferred_element_type=jnp.float32)
              + jnp.dot(e2, wp_ref[1], preferred_element_type=jnp.float32)
              + jnp.dot(e1 * e2, wp_ref[2], preferred_element_type=jnp.float32)
              + jnp.dot(jnp.abs(e1 - e2), wp_ref[3], preferred_element_type=jnp.float32)
              + bp_ref[...])
    pooled = jnp.tanh(pooled)                        # BertPooling
    o_ref[...] = (jnp.dot(pooled, wc_ref[...], preferred_element_type=jnp.float32)
                  + bc_ref[...])                     # Classify


def classify_pair(params, hid, pmask):
    b = pmask.shape[1]
    args = (hid, pmask, params["wp"], params["bp"], params["wc"], params["bc"])

    def full_spec(a):
        return pl.BlockSpec(a.shape, lambda i, n=a.ndim: (0,) * n)

    return pl.pallas_call(
        _head_kernel,
        grid=(1,),
        in_specs=[full_spec(a) for a in args],
        out_specs=pl.BlockSpec((b, NUM_CLASSES), lambda i: (0, 0)),
        out_shape=jax.ShapeDtypeStruct((b, NUM_CLASSES), jnp.float32),
        compiler_params=pltpu.CompilerParams(dimension_semantics=("arbitrary",)),
    )(*args)


# ---------------- forward (plain-JAX glue is only tiny mask/layout prep) ----------------
def forward(params, input_ids1, input_ids2):
    B, S = input_ids1.shape
    BS = B * S
    ids = jnp.stack([input_ids1, input_ids2], axis=0).astype(jnp.int32)    # (2, B, S)
    ids_col = ids.reshape(2, BS, 1)
    valid = (ids != PAD_IDX).astype(jnp.float32)                           # get_src_mask
    valid_flat = valid.reshape(2, BS)

    # key-padding mask AND block-diagonal same-sequence mask -> one 2D attention per kernel step
    row_b = jnp.arange(BS, dtype=jnp.int32)[:, None] // S                  # (BS, 1)
    col_b = jnp.arange(BS, dtype=jnp.int32)[None, :] // S                  # (1, BS)
    same = (row_b == col_b).astype(jnp.float32)                            # (BS, BS)
    attn_mask = same[None, :, :] * valid_flat[:, None, :]                  # (2, BS, BS)

    pos2d = jnp.tile(params["pos_emb"][:S], (B, 1))                        # (BS, H)

    hid = encode_pair(params, ids_col, attn_mask, pos2d)                   # (2, BS, H)

    # mean-pooling selection masks: pmask[j, b, b*S+s] = 1 iff token (b, s) of sequence j is not PAD
    selector = (col_b == jnp.arange(B, dtype=jnp.int32)[:, None]).astype(jnp.float32)   # (B, BS)
    pmask = selector[None] * valid_flat[:, None, :]                        # (2, B, BS)

    return classify_pair(params, hid, pmask)                               # (B, NUM_CLASSES)


# ---------------- deterministic synthetic parameters ----------------
def init_params(key):
    keys = iter(jax.random.split(key, 64))

    def w(shape):
        return 0.02 * jax.random.normal(next(keys), shape, jnp.float32)

    p = {
        "word_emb": w((VOCAB, HIDDEN)),
        "pos_emb": w((MAX_SEQ, HIDDEN)),
        "emb_ln_g": jnp.ones((1, HIDDEN), jnp.float32),
        "emb_ln_b": jnp.zeros((1, HIDDEN), jnp.float32),
    }
    wq, bq, wk, bk, wv, bv, wo, bo = ([] for _ in range(8))
    g1, lb1, w1s, b1s, w2s, b2s, g2, lb2 = ([] for _ in range(8))
    for _ in range(NUM_LAYERS):                      # clones() -> independent weights
        wq_full, wk_full = w((HIDDEN, HIDDEN)), w((HIDDEN, HIDDEN))
        wv_full, wo_full = w((HIDDEN, HIDDEN)), w((HIDDEN, HIDDEN))
        # per-head layouts: head h uses columns [h*dh:(h+1)*dh] of Wq/Wk/Wv and rows of Wo,
        # identical math to the standard reshape/transpose head split.
        wq.append(wq_full.reshape(HIDDEN, NUM_HEADS, HEAD_DIM).transpose(1, 0, 2))
        wk.append(wk_full.reshape(HIDDEN, NUM_HEADS, HEAD_DIM).transpose(1, 0, 2))
        wv.append(wv_full.reshape(HIDDEN, NUM_HEADS, HEAD_DIM).transpose(1, 0, 2))
        wo.append(wo_full.reshape(NUM_HEADS, HEAD_DIM, HIDDEN))
        bq.append(jnp.zeros((NUM_HEADS, 1, HEAD_DIM), jnp.float32))
        bk.append(jnp.zeros((NUM_HEADS, 1, HEAD_DIM), jnp.float32))
        bv.append(jnp.zeros((NUM_HEADS, 1, HEAD_DIM), jnp.float32))
        bo.append(jnp.zeros((1, HIDDEN), jnp.float32))
        g1.append(jnp.ones((1, HIDDEN), jnp.float32))
        lb1.append(jnp.zeros((1, HIDDEN), jnp.float32))
        w1s.append(w((HIDDEN, FF)))
        b1s.append(jnp.zeros((1, FF), jnp.float32))
        w2s.append(w((FF, HIDDEN)))
        b2s.append(jnp.zeros((1, HIDDEN), jnp.float32))
        g2.append(jnp.ones((1, HIDDEN), jnp.float32))
        lb2.append(jnp.zeros((1, HIDDEN), jnp.float32))

    stack = lambda xs: jnp.stack(xs, axis=0)
    p.update({"wq": stack(wq), "bq": stack(bq), "wk": stack(wk), "bk": stack(bk),
              "wv": stack(wv), "bv": stack(bv), "wo": stack(wo), "bo": stack(bo),
              "ln1_g": stack(g1), "ln1_b": stack(lb1),
              "w1": stack(w1s), "b1": stack(b1s), "w2": stack(w2s), "b2": stack(b2s),
              "ln2_g": stack(g2), "ln2_b": stack(lb2)})
    # BertPooling(4H -> H) and Classify(H -> classes); pooler weight pre-split over the 4 combine terms.
    p["wp"] = w((4 * HIDDEN, HIDDEN)).reshape(4, HIDDEN, HIDDEN)
    p["bp"] = jnp.zeros((1, HIDDEN), jnp.float32)
    p["wc"] = w((HIDDEN, NUM_CLASSES))
    p["bc"] = jnp.zeros((1, NUM_CLASSES), jnp.float32)
    return p


if __name__ == "__main__":
    key = jax.random.PRNGKey(0)
    kp, k1, k2 = jax.random.split(key, 3)
    params = init_params(kp)

    B, S = 2, 8
    assert S <= MAX_SEQ
    ids1 = jax.random.randint(k1, (B, S), 1, VOCAB, dtype=jnp.int32)
    ids2 = jax.random.randint(k2, (B, S), 1, VOCAB, dtype=jnp.int32)
    ids1 = ids1.at[0, 6:].set(PAD_IDX)          # some padding to exercise masks
    ids2 = ids2.at[1, 5:].set(PAD_IDX)

    logits = jax.jit(forward)(params, ids1, ids2)
    jax.block_until_ready(logits)
    assert logits.shape == (B, NUM_CLASSES) and logits.dtype == jnp.float32
    assert bool(jnp.all(jnp.isfinite(logits)))
    print("KERNEL_OK")
</pallas_src>

<mosaic_0001>
module attributes {stable_mosaic.version = 11 : i64} {
  func.func @_head_kernel(%arg0: i32, %arg1: memref<2x16x32xf32, #tpu.memory_space<vmem>>, %arg2: memref<2x2x16xf32, #tpu.memory_space<vmem>>, %arg3: memref<4x32x32xf32, #tpu.memory_space<vmem>>, %arg4: memref<1x32xf32, #tpu.memory_space<vmem>>, %arg5: memref<32x3xf32, #tpu.memory_space<vmem>>, %arg6: memref<1x3xf32, #tpu.memory_space<vmem>>, %arg7: memref<2x3xf32, #tpu.memory_space<vmem>>) attributes {dimension_semantics = [#tpu.dimension_semantics<arbitrary>], iteration_bounds = array<i64: 1>, scalar_prefetch = 0 : i64, scratch_operands = 0 : i64, tpu.core_type = #tpu.core_type<tc>, window_params = [{pipeline_mode = #tpu.pipeline_mode<synchronous>, transform_indices = @transform_0, window_bounds = array<i64: 2, 16, 32>}, {pipeline_mode = #tpu.pipeline_mode<synchronous>, transform_indices = @transform_1, window_bounds = array<i64: 2, 2, 16>}, {pipeline_mode = #tpu.pipeline_mode<synchronous>, transform_indices = @transform_2, window_bounds = array<i64: 4, 32, 32>}, {pipeline_mode = #tpu.pipeline_mode<synchronous>, transform_indices = @transform_3, window_bounds = array<i64: 1, 32>}, {pipeline_mode = #tpu.pipeline_mode<synchronous>, transform_indices = @transform_4, window_bounds = array<i64: 32, 3>}, {pipeline_mode = #tpu.pipeline_mode<synchronous>, transform_indices = @transform_5, window_bounds = array<i64: 1, 3>}, {pipeline_mode = #tpu.pipeline_mode<synchronous>, transform_indices = @transform_6, window_bounds = array<i64: 2, 3>}]} {
    %c1 = arith.constant 1 : index
    %c0 = arith.constant 0 : index
    %c0_0 = arith.constant 0 : index
    %0 = vector.load %arg1[%c1, %c0, %c0_0] : memref<2x16x32xf32, #tpu.memory_space<vmem>>, vector<1x16x32xf32>
    %1 = vector.shape_cast %0 : vector<1x16x32xf32> to vector<16x32xf32>
    %c0_1 = arith.constant 0 : index
    %c0_2 = arith.constant 0 : index
    %c0_3 = arith.constant 0 : index
    %2 = vector.load %arg2[%c0_1, %c0_2, %c0_3] : memref<2x2x16xf32, #tpu.memory_space<vmem>>, vector<1x2x16xf32>
    %3 = vector.shape_cast %2 : vector<1x2x16xf32> to vector<2x16xf32>
    %c1_4 = arith.constant 1 : index
    %c0_5 = arith.constant 0 : index
    %c0_6 = arith.constant 0 : index
    %4 = vector.load %arg2[%c1_4, %c0_5, %c0_6] : memref<2x2x16xf32, #tpu.memory_space<vmem>>, vector<1x2x16xf32>
    %5 = vector.shape_cast %4 : vector<1x2x16xf32> to vector<2x16xf32>
    %cst = arith.constant dense<0.000000e+00> : vector<2x32xf32>
    %6 = tpu.matmul %3, %1, %cst {dimension_numbers = #tpu.dot_dimension_numbers<[1], [0], [0], [1], [0, 0, 1, 1], [], []>} : vector<2x16xf32>, vector<16x32xf32>, vector<2x32xf32> -> vector<2x32xf32>
    %cst_7 = arith.constant dense<0.000000e+00> : vector<2xf32>
    %7 = vector.multi_reduction <add>, %3, %cst_7 [1] : vector<2x16xf32> to vector<2xf32>
    %8 = vector.shape_cast %7 : vector<2xf32> to vector<2x1xf32>
    %9 = tpu.reciprocal %8 {approx = true} : vector<2x1xf32> -> vector<2x1xf32>
    %10 = vector.broadcast %9 : vector<2x1xf32> to vector<2x32xf32>
    %11 = arith.mulf %6, %10 : vector<2x32xf32>
    %cst_8 = arith.constant dense<0.000000e+00> : vector<2x32xf32>
    %12 = tpu.matmul %5, %1, %cst_8 {dimension_numbers = #tpu.dot_dimension_numbers<[1], [0], [0], [1], [0, 0, 1, 1], [], []>} : vector<2x16xf32>, vector<16x32xf32>, vector<2x32xf32> -> vector<2x32xf32>
    %cst_9 = arith.constant dense<0.000000e+00> : vector<2xf32>
    %13 = vector.multi_reduction <add>, %5, %cst_9 [1] : vector<2x16xf32> to vector<2xf32>
    %14 = vector.shape_cast %13 : vector<2xf32> to vector<2x1xf32>
    %15 = tpu.reciprocal %14 {approx = true} : vector<2x1xf32> -> vector<2x1xf32>
    %16 = vector.broadcast %15 : vector<2x1xf32> to vector<2x32xf32>
    %17 = arith.mulf %12, %16 : vector<2x32xf32>
    %c0_10 = arith.constant 0 : index
    %c0_11 = arith.constant 0 : index
    %c0_12 = arith.constant 0 : index
    %18 = vector.load %arg3[%c0_10, %c0_11, %c0_12] : memref<4x32x32xf32, #tpu.memory_space<vmem>>, vector<1x32x32xf32>
    %19 = vector.shape_cast %18 : vector<1x32x32xf32> to vector<32x32xf32>
    %cst_13 = arith.constant dense<0.000000e+00> : vector<2x32xf32>
    %20 = tpu.matmul %11, %19, %cst_13 {dimension_numbers = #tpu.dot_dimension_numbers<[1], [0], [0], [1], [0, 0, 1, 1], [], []>} : vector<2x32xf32>, vector<32x32xf32>, vector<2x32xf32> -> vector<2x32xf32>
    %c1_14 = arith.constant 1 : index
    %c0_15 = arith.constant 0 : index
    %c0_16 = arith.constant 0 : index
    %21 = vector.load %arg3[%c1_14, %c0_15, %c0_16] : memref<4x32x32xf32, #tpu.memory_space<vmem>>, vector<1x32x32xf32>
    %22 = vector.shape_cast %21 : vector<1x32x32xf32> to vector<32x32xf32>
    %cst_17 = arith.constant dense<0.000000e+00> : vector<2x32xf32>
    %23 = tpu.matmul %17, %22, %cst_17 {dimension_numbers = #tpu.dot_dimension_numbers<[1], [0], [0], [1], [0, 0, 1, 1], [], []>} : vector<2x32xf32>, vector<32x32xf32>, vector<2x32xf32> -> vector<2x32xf32>
    %24 = arith.addf %20, %23 : vector<2x32xf32>
    %25 = arith.mulf %11, %17 : vector<2x32xf32>
    %c2 = arith.constant 2 : index
    %c0_18 = arith.constant 0 : index
    %c0_19 = arith.constant 0 : index
    %26 = vector.load %arg3[%c2, %c0_18, %c0_19] : memref<4x32x32xf32, #tpu.memory_space<vmem>>, vector<1x32x32xf32>
    %27 = vector.shape_cast %26 : vector<1x32x32xf32> to vector<32x32xf32>
    %cst_20 = arith.constant dense<0.000000e+00> : vector<2x32xf32>
    %28 = tpu.matmul %25, %27, %cst_20 {dimension_numbers = #tpu.dot_dimension_numbers<[1], [0], [0], [1], [0, 0, 1, 1], [], []>} : vector<2x32xf32>, vector<32x32xf32>, vector<2x32xf32> -> vector<2x32xf32>
    %29 = arith.addf %24, %28 : vector<2x32xf32>
    %30 = arith.subf %11, %17 : vector<2x32xf32>
    %31 = math.absf %30 : vector<2x32xf32>
    %c3 = arith.constant 3 : index
    %c0_21 = arith.constant 0 : index
    %c0_22 = arith.constant 0 : index
    %32 = vector.load %arg3[%c3, %c0_21, %c0_22] : memref<4x32x32xf32, #tpu.memory_space<vmem>>, vector<1x32x32xf32>
    %33 = vector.shape_cast %32 : vector<1x32x32xf32> to vector<32x32xf32>
    %cst_23 = arith.constant dense<0.000000e+00> : vector<2x32xf32>
    %34 = tpu.matmul %31, %33, %cst_23 {dimension_numbers = #tpu.dot_dimension_numbers<[1], [0], [0], [1], [0, 0, 1, 1], [], []>} : vector<2x32xf32>, vector<32x32xf32>, vector<2x32xf32> -> vector<2x32xf32>
    %35 = arith.addf %29, %34 : vector<2x32xf32>
    %c0_24 = arith.constant 0 : index
    %c0_25 = arith.constant 0 : index
    %36 = vector.load %arg4[%c0_24, %c0_25] : memref<1x32xf32, #tpu.memory_space<vmem>>, vector<1x32xf32>
    %37 = vector.broadcast %36 : vector<1x32xf32> to vector<2x32xf32>
    %38 = arith.addf %35, %37 : vector<2x32xf32>
    %39 = math.tanh %38 : vector<2x32xf32>
    %c0_26 = arith.constant 0 : index
    %c0_27 = arith.constant 0 : index
    %40 = vector.load %arg5[%c0_26, %c0_27] : memref<32x3xf32, #tpu.memory_space<vmem>>, vector<32x3xf32>
    %cst_28 = arith.constant dense<0.000000e+00> : vector<2x3xf32>
    %41 = tpu.matmul %39, %40, %cst_28 {dimension_numbers = #tpu.dot_dimension_numbers<[1], [0], [0], [1], [0, 0, 1, 1], [], []>} : vector<2x32xf32>, vector<32x3xf32>, vector<2x3xf32> -> vector<2x3xf32>
    %c0_29 = arith.constant 0 : index
    %c0_30 = arith.constant 0 : index
    %42 = vector.load %arg6[%c0_29, %c0_30] : memref<1x3xf32, #tpu.memory_space<vmem>>, vector<1x3xf32>
    %43 = vector.broadcast %42 : vector<1x3xf32> to vector<2x3xf32>
    %44 = arith.addf %41, %43 : vector<2x3xf32>
    %c0_31 = arith.constant 0 : index
    %c0_32 = arith.constant 0 : index
    %45 = vector.load %arg7[%c0_31, %c0_32] : memref<2x3xf32, #tpu.memory_space<vmem>>, vector<2x3xf32>
    tpu.vector_store %arg7[%c0_31, %c0_32], %44 {strides = array<i32>} : memref<2x3xf32, #tpu.memory_space<vmem>>, vector<2x3xf32>,
    return
  }
  func.func @transform_0(%arg0: i32) -> (i32, i32, i32) {
    %c0_i32 = arith.constant 0 : i32
    %c0_i32_0 = arith.constant 0 : i32
    %c0_i32_1 = arith.constant 0 : i32
    %c0_i32_2 = arith.constant 0 : i32
    return %c0_i32, %c0_i32_0, %c0_i32_1 : i32, i32, i32
  }
  func.func @transform_1(%arg0: i32) -> (i32, i32, i32) {
    %c0_i32 = arith.constant 0 : i32
    %c0_i32_0 = arith.constant 0 : i32
    %c0_i32_1 = arith.constant 0 : i32
    %c0_i32_2 = arith.constant 0 : i32
    return %c0_i32, %c0_i32_0, %c0_i32_1 : i32, i32, i32
  }
  func.func @transform_2(%arg0: i32) -> (i32, i32, i32) {
    %c0_i32 = arith.constant 0 : i32
    %c0_i32_0 = arith.constant 0 : i32
    %c0_i32_1 = arith.constant 0 : i32
    %c0_i32_2 = arith.constant 0 : i32
    return %c0_i32, %c0_i32_0, %c0_i32_1 : i32, i32, i32
  }
  func.func @transform_3(%arg0: i32) -> (i32, i32) {
    %c0_i32 = arith.constant 0 : i32
    %c0_i32_0 = arith.constant 0 : i32
    %c0_i32_1 = arith.constant 0 : i32
    return %c0_i32, %c0_i32_0 : i32, i32
  }
  func.func @transform_4(%arg0: i32) -> (i32, i32) {
    %c0_i32 = arith.constant 0 : i32
    %c0_i32_0 = arith.constant 0 : i32
    %c0_i32_1 = arith.constant 0 : i32
    return %c0_i32, %c0_i32_0 : i32, i32
  }
  func.func @transform_5(%arg0: i32) -> (i32, i32) {
    %c0_i32 = arith.constant 0 : i32
    %c0_i32_0 = arith.constant 0 : i32
    %c0_i32_1 = arith.constant 0 : i32
    return %c0_i32, %c0_i32_0 : i32, i32
  }
  func.func @transform_6(%arg0: i32) -> (i32, i32) {
    %c0_i32 = arith.constant 0 : i32
    %c0_i32_0 = arith.constant 0 : i32
    %c0_i32_1 = arith.constant 0 : i32
    return %c0_i32, %c0_i32_0 : i32, i32
  }
}

module attributes {stable_mosaic.version = 11 : i64} {
  func.func @_encoder_kernel(%arg0: i32, %arg1: memref<1x16x1xi32, #tpu.memory_space<vmem>>, %arg2: memref<1x16x16xf32, #tpu.memory_space<vmem>>, %arg3: memref<16x32xf32, #tpu.memory_space<vmem>>, %arg4: memref<50x32xf32, #tpu.memory_space<vmem>>, %arg5: memref<1x32xf32, #tpu.memory_space<vmem>>, %arg6: memref<1x32xf32, #tpu.memory_space<vmem>>, %arg7: memref<2x4x32x8xf32, #tpu.memory_space<vmem>>, %arg8: memref<2x4x1x8xf32, #tpu.memory_space<vmem>>, %arg9: memref<2x4x32x8xf32, #tpu.memory_space<vmem>>, %arg10: memref<2x4x1x8xf32, #tpu.memory_space<vmem>>, %arg11: memref<2x4x32x8xf32, #tpu.memory_space<vmem>>, %arg12: memref<2x4x1x8xf32, #tpu.memory_space<vmem>>, %arg13: memref<2x4x8x32xf32, #tpu.memory_space<vmem>>, %arg14: memref<2x1x32xf32, #tpu.memory_space<vmem>>, %arg15: memref<2x1x32xf32, #tpu.memory_space<vmem>>, %arg16: memref<2x1x32xf32, #tpu.memory_space<vmem>>, %arg17: memref<2x32x64xf32, #tpu.memory_space<vmem>>, %arg18: memref<2x1x64xf32, #tpu.memory_space<vmem>>, %arg19: memref<2x64x32xf32, #tpu.memory_space<vmem>>, %arg20: memref<2x1x32xf32, #tpu.memory_space<vmem>>, %arg21: memref<2x1x32xf32, #tpu.memory_space<vmem>>, %arg22: memref<2x1x32xf32, #tpu.memory_space<vmem>>, %arg23: memref<1x16x32xf32, #tpu.memory_space<vmem>>) attributes {dimension_semantics = [#tpu.dimension_semantics<parallel>], iteration_bounds = array<i64: 2>, scalar_prefetch = 0 : i64, scratch_operands = 0 : i64, tpu.core_type = #tpu.core_type<tc>, window_params = [{transform_indices = @transform_0, window_bounds = array<i64: 1, 16, 1>}, {transform_indices = @transform_1, window_bounds = array<i64: 1, 16, 16>}, {pipeline_mode = #tpu.pipeline_mode<synchronous>, transform_indices = @transform_2, window_bounds = array<i64: 16, 32>}, {pipeline_mode = #tpu.pipeline_mode<synchronous>, transform_indices = @transform_3, window_bounds = array<i64: 50, 32>}, {pipeline_mode = #tpu.pipeline_mode<synchronous>, transform_indices = @transform_4, window_bounds = array<i64: 1, 32>}, {pipeline_mode = #tpu.pipeline_mode<synchronous>, transform_indices = @transform_5, window_bounds = array<i64: 1, 32>}, {pipeline_mode = #tpu.pipeline_mode<synchronous>, transform_indices = @transform_6, window_bounds = array<i64: 2, 4, 32, 8>}, {pipeline_mode = #tpu.pipeline_mode<synchronous>, transform_indices = @transform_7, window_bounds = array<i64: 2, 4, 1, 8>}, {pipeline_mode = #tpu.pipeline_mode<synchronous>, transform_indices = @transform_8, window_bounds = array<i64: 2, 4, 32, 8>}, {pipeline_mode = #tpu.pipeline_mode<synchronous>, transform_indices = @transform_9, window_bounds = array<i64: 2, 4, 1, 8>}, {pipeline_mode = #tpu.pipeline_mode<synchronous>, transform_indices = @transform_10, window_bounds = array<i64: 2, 4, 32, 8>}, {pipeline_mode = #tpu.pipeline_mode<synchronous>, transform_indices = @transform_11, window_bounds = array<i64: 2, 4, 1, 8>}, {pipeline_mode = #tpu.pipeline_mode<synchronous>, transform_indices = @transform_12, window_bounds = array<i64: 2, 4, 8, 32>}, {pipeline_mode = #tpu.pipeline_mode<synchronous>, transform_indices = @transform_13, window_bounds = array<i64: 2, 1, 32>}, {pipeline_mode = #tpu.pipeline_mode<synchronous>, transform_indices = @transform_14, window_bounds = array<i64: 2, 1, 32>}, {pipeline_mode = #tpu.pipeline_mode<synchronous>, transform_indices = @transform_15, window_bounds = array<i64: 2, 1, 32>}, {pipeline_mode = #tpu.pipeline_mode<synchronous>, transform_indices = @transform_16, window_bounds = array<i64: 2, 32, 64>}, {pipeline_mode = #tpu.pipeline_mode<synchronous>, transform_indices = @transform_17, window_bounds = array<i64: 2, 1, 64>}, {pipeline_mode = #tpu.pipeline_mode<synchronous>, transform_indices = @transform_18, window_bounds = array<i64: 2, 64, 32>}, {pipeline_mode = #tpu.pipeline_mode<synchronous>, transform_indices = @transform_19, window_bounds = array<i64: 2, 1, 32>}, {pipeline_mode = #tpu.pipeline_mode<synchronous>, transform_indices = @transform_20, window_bounds = array<i64: 2, 1, 32>}, {pipeline_mode = #tpu.pipeline_mode<synchronous>, transform_indices = @transform_21, window_bounds = array<i64: 2, 1, 32>}, {transform_indices = @transform_22, window_bounds = array<i64: 1, 16, 32>}]} {
    %c0 = arith.constant 0 : index
    %c0_0 = arith.constant 0 : index
    %c0_1 = arith.constant 0 : index
    %0 = vector.load %arg1[%c0, %c0_0, %c0_1] : memref<1x16x1xi32, #tpu.memory_space<vmem>>, vector<1x16x1xi32>
    %1 = vector.shape_cast %0 : vector<1x16x1xi32> to vector<16x1xi32>
    %c0_2 = arith.constant 0 : index
    %c0_3 = arith.constant 0 : index
    %c0_4 = arith.constant 0 : index
    %2 = vector.load %arg2[%c0_2, %c0_3, %c0_4] : memref<1x16x16xf32, #tpu.memory_space<vmem>>, vector<1x16x16xf32>
    %3 = vector.shape_cast %2 : vector<1x16x16xf32> to vector<16x16xf32>
    %4 = tpu.iota {dimensions = array<i32: 1>} : vector<16x50xi32>
    %5 = vector.broadcast %1 : vector<16x1xi32> to vector<16x50xi32>
    %6 = arith.cmpi eq, %4, %5 : vector<16x50xi32>
    %7 = arith.extui %6 : vector<16x50xi1> to vector<16x50xi32>
    %8 = arith.sitofp %7 : vector<16x50xi32> to vector<16x50xf32>
    %c0_5 = arith.constant 0 : index
    %c0_6 = arith.constant 0 : index
    %9 = vector.load %arg4[%c0_5, %c0_6] : memref<50x32xf32, #tpu.memory_space<vmem>>, vector<50x32xf32>
    %cst = arith.constant dense<0.000000e+00> : vector<16x32xf32>
    %10 = tpu.matmul %8, %9, %cst {dimension_numbers = #tpu.dot_dimension_numbers<[1], [0], [0], [1], [0, 0, 1, 1], [], []>} : vector<16x50xf32>, vector<50x32xf32>, vector<16x32xf32> -> vector<16x32xf32>
    %c0_7 = arith.constant 0 : index
    %c0_8 = arith.constant 0 : index
    %11 = vector.load %arg3[%c0_7, %c0_8] : memref<16x32xf32, #tpu.memory_space<vmem>>, vector<16x32xf32>
    %12 = arith.addf %10, %11 : vector<16x32xf32>
    %c0_9 = arith.constant 0 : index
    %c0_10 = arith.constant 0 : index
    %13 = vector.load %arg5[%c0_9, %c0_10] : memref<1x32xf32, #tpu.memory_space<vmem>>, vector<1x32xf32>
    %c0_11 = arith.constant 0 : index
    %c0_12 = arith.constant 0 : index
    %14 = vector.load %arg6[%c0_11, %c0_12] : memref<1x32xf32, #tpu.memory_space<vmem>>, vector<1x32xf32>
    %cst_13 = arith.constant dense<0.000000e+00> : vector<16xf32>
    %15 = vector.multi_reduction <add>, %12, %cst_13 [1] : vector<16x32xf32> to vector<16xf32>
    %16 = vector.shape_cast %15 : vector<16xf32> to vector<16x1xf32>
    %cst_14 = arith.constant 3.200000e+01 : f32
    %17 = vector.broadcast %cst_14 : f32 to vector<16x1xf32>
    %18 = arith.divf %16, %17 : vector<16x1xf32>
    %19 = vector.broadcast %18 : vector<16x1xf32> to vector<16x32xf32>
    %20 = arith.subf %12, %19 : vector<16x32xf32>
    %21 = arith.mulf %20, %20 : vector<16x32xf32>
    %cst_15 = arith.constant dense<0.000000e+00> : vector<16xf32>
    %22 = vector.multi_reduction <add>, %21, %cst_15 [1] : vector<16x32xf32> to vector<16xf32>
    %23 = vector.shape_cast %22 : vector<16xf32> to vector<16x1xf32>
    %cst_16 = arith.constant 3.200000e+01 : f32
    %24 = vector.broadcast %cst_16 : f32 to vector<16x1xf32>
    %25 = arith.divf %23, %24 : vector<16x1xf32>
    %cst_17 = arith.constant 9.99999996E-13 : f32
    %26 = vector.broadcast %cst_17 : f32 to vector<16x1xf32>
    %27 = arith.addf %25, %26 : vector<16x1xf32>
    %28 = math.rsqrt %27 : vector<16x1xf32>
    %29 = vector.broadcast %28 : vector<16x1xf32> to vector<16x32xf32>
    %30 = arith.mulf %20, %29 : vector<16x32xf32>
    %31 = vector.broadcast %13 : vector<1x32xf32> to vector<16x32xf32>
    %32 = arith.mulf %30, %31 : vector<16x32xf32>
    %33 = vector.broadcast %14 : vector<1x32xf32> to vector<16x32xf32>
    %34 = arith.addf %32, %33 : vector<16x32xf32>
    %c0_18 = arith.constant 0 : index
    %c0_19 = arith.constant 0 : index
    %c0_20 = arith.constant 0 : index
    %c0_21 = arith.constant 0 : index
    %35 = vector.load %arg7[%c0_18, %c0_19, %c0_20, %c0_21] : memref<2x4x32x8xf32, #tpu.memory_space<vmem>>, vector<1x1x32x8xf32>
    %36 = vector.shape_cast %35 : vector<1x1x32x8xf32> to vector<32x8xf32>
    %cst_22 = arith.constant dense<0.000000e+00> : vector<16x8xf32>
    %37 = tpu.matmul %34, %36, %cst_22 {dimension_numbers = #tpu.dot_dimension_numbers<[1], [0], [0], [1], [0, 0, 1, 1], [], []>} : vector<16x32xf32>, vector<32x8xf32>, vector<16x8xf32> -> vector<16x8xf32>
    %c0_23 = arith.constant 0 : index
    %c0_24 = arith.constant 0 : index
    %c0_25 = arith.constant 0 : index
    %c0_26 = arith.constant 0 : index
    %38 = vector.load %arg8[%c0_23, %c0_24, %c0_25, %c0_26] : memref<2x4x1x8xf32, #tpu.memory_space<vmem>>, vector<1x1x1x8xf32>
    %39 = vector.shape_cast %38 : vector<1x1x1x8xf32> to vector<1x8xf32>
    %40 = vector.broadcast %39 : vector<1x8xf32> to vector<16x8xf32>
    %41 = arith.addf %37, %40 : vector<16x8xf32>
    %c0_27 = arith.constant 0 : index
    %c0_28 = arith.constant 0 : index
    %c0_29 = arith.constant 0 : index
    %c0_30 = arith.constant 0 : index
    %42 = vector.load %arg9[%c0_27, %c0_28, %c0_29, %c0_30] : memref<2x4x32x8xf32, #tpu.memory_space<vmem>>, vector<1x1x32x8xf32>
    %43 = vector.shape_cast %42 : vector<1x1x32x8xf32> to vector<32x8xf32>
    %cst_31 = arith.constant dense<0.000000e+00> : vector<16x8xf32>
    %44 = tpu.matmul %34, %43, %cst_31 {dimension_numbers = #tpu.dot_dimension_numbers<[1], [0], [0], [1], [0, 0, 1, 1], [], []>} : vector<16x32xf32>, vector<32x8xf32>, vector<16x8xf32> -> vector<16x8xf32>
    %c0_32 = arith.constant 0 : index
    %c0_33 = arith.constant 0 : index
    %c0_34 = arith.constant 0 : index
    %c0_35 = arith.constant 0 : index
    %45 = vector.load %arg10[%c0_32, %c0_33, %c0_34, %c0_35] : memref<2x4x1x8xf32, #tpu.memory_space<vmem>>, vector<1x1x1x8xf32>
    %46 = vector.shape_cast %45 : vector<1x1x1x8xf32> to vector<1x8xf32>
    %47 = vector.broadcast %46 : vector<1x8xf32> to vector<16x8xf32>
    %48 = arith.addf %44, %47 : vector<16x8xf32>
    %c0_36 = arith.constant 0 : index
    %c0_37 = arith.constant 0 : index
    %c0_38 = arith.constant 0 : index
    %c0_39 = arith.constant 0 : index
    %49 = vector.load %arg11[%c0_36, %c0_37, %c0_38, %c0_39] : memref<2x4x32x8xf32, #tpu.memory_space<vmem>>, vector<1x1x32x8xf32>
    %50 = vector.shape_cast %49 : vector<1x1x32x8xf32> to vector<32x8xf32>
    %cst_40 = arith.constant dense<0.000000e+00> : vector<16x8xf32>
    %51 = tpu.matmul %34, %50, %cst_40 {dimension_numbers = #tpu.dot_dimension_numbers<[1], [0], [0], [1], [0, 0, 1, 1], [], []>} : vector<16x32xf32>, vector<32x8xf32>, vector<16x8xf32> -> vector<16x8xf32>
    %c0_41 = arith.constant 0 : index
    %c0_42 = arith.constant 0 : index
    %c0_43 = arith.constant 0 : index
    %c0_44 = arith.constant 0 : index
    %52 = vector.load %arg12[%c0_41, %c0_42, %c0_43, %c0_44] : memref<2x4x1x8xf32, #tpu.memory_space<vmem>>, vector<1x1x1x8xf32>
    %53 = vector.shape_cast %52 : vector<1x1x1x8xf32> to vector<1x8xf32>
    %54 = vector.broadcast %53 : vector<1x8xf32> to vector<16x8xf32>
    %55 = arith.addf %51, %54 : vector<16x8xf32>
    %cst_45 = arith.constant dense<0.000000e+00> : vector<16x16xf32>
    %56 = tpu.matmul %41, %48, %cst_45 {dimension_numbers = #tpu.dot_dimension_numbers<[1], [1], [0], [0], [0, 0, 1, 0], [], []>} : vector<16x8xf32>, vector<16x8xf32>, vector<16x16xf32> -> vector<16x16xf32>
    %cst_46 = arith.constant 0.353553385 : f32
    %57 = vector.broadcast %cst_46 : f32 to vector<16x16xf32>
    %58 = arith.mulf %56, %57 : vector<16x16xf32>
    %cst_47 = arith.constant 0.000000e+00 : f32
    %59 = vector.broadcast %cst_47 : f32 to vector<16x16xf32>
    %60 = arith.cmpf ogt, %3, %59 : vector<16x16xf32>
    %cst_48 = arith.constant -1.000000e+09 : f32
    %61 = vector.broadcast %cst_48 : f32 to vector<16x16xf32>
    %62 = arith.select %60, %58, %61 : vector<16x16xi1>, vector<16x16xf32>
    %cst_49 = arith.constant dense<0xFF800000> : vector<16xf32>
    %63 = vector.multi_reduction <maximumf>, %62, %cst_49 [1] : vector<16x16xf32> to vector<16xf32>
    %64 = vector.shape_cast %63 : vector<16xf32> to vector<16x1xf32>
    %65 = vector.broadcast %64 : vector<16x1xf32> to vector<16x16xf32>
    %66 = arith.subf %62, %65 : vector<16x16xf32>
    %67 = math.exp %66 : vector<16x16xf32>
    %cst_50 = arith.constant dense<0.000000e+00> : vector<16xf32>
    %68 = vector.multi_reduction <add>, %67, %cst_50 [1] : vector<16x16xf32> to vector<16xf32>
    %69 = vector.shape_cast %68 : vector<16xf32> to vector<16x1xf32>
    %70 = tpu.reciprocal %69 {approx = true} : vector<16x1xf32> -> vector<16x1xf32>
    %71 = vector.broadcast %70 : vector<16x1xf32> to vector<16x16xf32>
    %72 = arith.mulf %67, %71 : vector<16x16xf32>
    %cst_51 = arith.constant dense<0.000000e+00> : vector<16x8xf32>
    %73 = tpu.matmul %72, %55, %cst_51 {dimension_numbers = #tpu.dot_dimension_numbers<[1], [0], [0], [1], [0, 0, 1, 1], [], []>} : vector<16x16xf32>, vector<16x8xf32>, vector<16x8xf32> -> vector<16x8xf32>
    %c0_52 = arith.constant 0 : index
    %c0_53 = arith.constant 0 : index
    %c0_54 = arith.constant 0 : index
    %c0_55 = arith.constant 0 : index
    %74 = vector.load %arg13[%c0_52, %c0_53, %c0_54, %c0_55] : memref<2x4x8x32xf32, #tpu.memory_space<vmem>>, vector<1x1x8x32xf32>
    %75 = vector.shape_cast %74 : vector<1x1x8x32xf32> to vector<8x32xf32>
    %cst_56 = arith.constant dense<0.000000e+00> : vector<16x32xf32>
    %76 = tpu.matmul %73, %75, %cst_56 {dimension_numbers = #tpu.dot_dimension_numbers<[1], [0], [0], [1], [0, 0, 1, 1], [], []>} : vector<16x8xf32>, vector<8x32xf32>, vector<16x32xf32> -> vector<16x32xf32>
    %c0_57 = arith.constant 0 : index
    %c1 = arith.constant 1 : index
    %c0_58 = arith.constant 0 : index
    %c0_59 = arith.constant 0 : index
    %77 = vector.load %arg7[%c0_57, %c1, %c0_58, %c0_59] : memref<2x4x32x8xf32, #tpu.memory_space<vmem>>, vector<1x1x32x8xf32>
    %78 = vector.shape_cast %77 : vector<1x1x32x8xf32> to vector<32x8xf32>
    %cst_60 = arith.constant dense<0.000000e+00> : vector<16x8xf32>
    %79 = tpu.matmul %34, %78, %cst_60 {dimension_numbers = #tpu.dot_dimension_numbers<[1], [0], [0], [1], [0, 0, 1, 1], [], []>} : vector<16x32xf32>, vector<32x8xf32>, vector<16x8xf32> -> vector<16x8xf32>
    %c0_61 = arith.constant 0 : index
    %c1_62 = arith.constant 1 : index
    %c0_63 = arith.constant 0 : index
    %c0_64 = arith.constant 0 : index
    %80 = vector.load %arg8[%c0_61, %c1_62, %c0_63, %c0_64] : memref<2x4x1x8xf32, #tpu.memory_space<vmem>>, vector<1x1x1x8xf32>
    %81 = vector.shape_cast %80 : vector<1x1x1x8xf32> to vector<1x8xf32>
    %82 = vector.broadcast %81 : vector<1x8xf32> to vector<16x8xf32>
    %83 = arith.addf %79, %82 : vector<16x8xf32>
    %c0_65 = arith.constant 0 : index
    %c1_66 = arith.constant 1 : index
    %c0_67 = arith.constant 0 : index
    %c0_68 = arith.constant 0 : index
    %84 = vector.load %arg9[%c0_65, %c1_66, %c0_67, %c0_68] : memref<2x4x32x8xf32, #tpu.memory_space<vmem>>, vector<1x1x32x8xf32>
    %85 = vector.shape_cast %84 : vector<1x1x32x8xf32> to vector<32x8xf32>
    %cst_69 = arith.constant dense<0.000000e+00> : vector<16x8xf32>
    %86 = tpu.matmul %34, %85, %cst_69 {dimension_numbers = #tpu.dot_dimension_numbers<[1], [0], [0], [1], [0, 0, 1, 1], [], []>} : vector<16x32xf32>, vector<32x8xf32>, vector<16x8xf32> -> vector<16x8xf32>
    %c0_70 = arith.constant 0 : index
    %c1_71 = arith.constant 1 : index
    %c0_72 = arith.constant 0 : index
    %c0_73 = arith.constant 0 : index
    %87 = vector.load %arg10[%c0_70, %c1_71, %c0_72, %c0_73] : memref<2x4x1x8xf32, #tpu.memory_space<vmem>>, vector<1x1x1x8xf32>
    %88 = vector.shape_cast %87 : vector<1x1x1x8xf32> to vector<1x8xf32>
    %89 = vector.broadcast %88 : vector<1x8xf32> to vector<16x8xf32>
    %90 = arith.addf %86, %89 : vector<16x8xf32>
    %c0_74 = arith.constant 0 : index
    %c1_75 = arith.constant 1 : index
    %c0_76 = arith.constant 0 : index
    %c0_77 = arith.constant 0 : index
    %91 = vector.load %arg11[%c0_74, %c1_75, %c0_76, %c0_77] : memref<2x4x32x8xf32, #tpu.memory_space<vmem>>, vector<1x1x32x8xf32>
    %92 = vector.shape_cast %91 : vector<1x1x32x8xf32> to vector<32x8xf32>
    %cst_78 = arith.constant dense<0.000000e+00> : vector<16x8xf32>
    %93 = tpu.matmul %34, %92, %cst_78 {dimension_numbers = #tpu.dot_dimension_numbers<[1], [0], [0], [1], [0, 0, 1, 1], [], []>} : vector<16x32xf32>, vector<32x8xf32>, vector<16x8xf32> -> vector<16x8xf32>
    %c0_79 = arith.constant 0 : index
    %c1_80 = arith.constant 1 : index
    %c0_81 = arith.constant 0 : index
    %c0_82 = arith.constant 0 : index
    %94 = vector.load %arg12[%c0_79, %c1_80, %c0_81, %c0_82] : memref<2x4x1x8xf32, #tpu.memory_space<vmem>>, vector<1x1x1x8xf32>
    %95 = vector.shape_cast %94 : vector<1x1x1x8xf32> to vector<1x8xf32>
    %96 = vector.broadcast %95 : vector<1x8xf32> to vector<16x8xf32>
    %97 = arith.addf %93, %96 : vector<16x8xf32>
    %cst_83 = arith.constant dense<0.000000e+00> : vector<16x16xf32>
    %98 = tpu.matmul %83, %90, %cst_83 {dimension_numbers = #tpu.dot_dimension_numbers<[1], [1], [0], [0], [0, 0, 1, 0], [], []>} : vector<16x8xf32>, vector<16x8xf32>, vector<16x16xf32> -> vector<16x16xf32>
    %cst_84 = arith.constant 0.353553385 : f32
    %99 = vector.broadcast %cst_84 : f32 to vector<16x16xf32>
    %100 = arith.mulf %98, %99 : vector<16x16xf32>
    %cst_85 = arith.constant 0.000000e+00 : f32
    %101 = vector.broadcast %cst_85 : f32 to vector<16x16xf32>
    %102 = arith.cmpf ogt, %3, %101 : vector<16x16xf32>
    %cst_86 = arith.constant -1.000000e+09 : f32
    %103 = vector.broadcast %cst_86 : f32 to vector<16x16xf32>
    %104 = arith.select %102, %100, %103 : vector<16x16xi1>, vector<16x16xf32>
    %cst_87 = arith.constant dense<0xFF800000> : vector<16xf32>
    %105 = vector.multi_reduction <maximumf>, %104, %cst_87 [1] : vector<16x16xf32> to vector<16xf32>
    %106 = vector.shape_cast %105 : vector<16xf32> to vector<16x1xf32>
    %107 = vector.broadcast %106 : vector<16x1xf32> to vector<16x16xf32>
    %108 = arith.subf %104, %107 : vector<16x16xf32>
    %109 = math.exp %108 : vector<16x16xf32>
    %cst_88 = arith.constant dense<0.000000e+00> : vector<16xf32>
    %110 = vector.multi_reduction <add>, %109, %cst_88 [1] : vector<16x16xf32> to vector<16xf32>
    %111 = vector.shape_cast %110 : vector<16xf32> to vector<16x1xf32>
    %112 = tpu.reciprocal %111 {approx = true} : vector<16x1xf32> -> vector<16x1xf32>
    %113 = vector.broadcast %112 : vector<16x1xf32> to vector<16x16xf32>
    %114 = arith.mulf %109, %113 : vector<16x16xf32>
    %cst_89 = arith.constant dense<0.000000e+00> : vector<16x8xf32>
    %115 = tpu.matmul %114, %97, %cst_89 {dimension_numbers = #tpu.dot_dimension_numbers<[1], [0], [0], [1], [0, 0, 1, 1], [], []>} : vector<16x16xf32>, vector<16x8xf32>, vector<16x8xf32> -> vector<16x8xf32>
    %c0_90 = arith.constant 0 : index
    %c1_91 = arith.constant 1 : index
    %c0_92 = arith.constant 0 : index
    %c0_93 = arith.constant 0 : index
    %116 = vector.load %arg13[%c0_90, %c1_91, %c0_92, %c0_93] : memref<2x4x8x32xf32, #tpu.memory_space<vmem>>, vector<1x1x8x32xf32>
    %117 = vector.shape_cast %116 : vector<1x1x8x32xf32> to vector<8x32xf32>
    %cst_94 = arith.constant dense<0.000000e+00> : vector<16x32xf32>
    %118 = tpu.matmul %115, %117, %cst_94 {dimension_numbers = #tpu.dot_dimension_numbers<[1], [0], [0], [1], [0, 0, 1, 1], [], []>} : vector<16x8xf32>, vector<8x32xf32>, vector<16x32xf32> -> vector<16x32xf32>
    %119 = arith.addf %76, %118 : vector<16x32xf32>
    %c0_95 = arith.constant 0 : index
    %c2 = arith.constant 2 : index
    %c0_96 = arith.constant 0 : index
    %c0_97 = arith.constant 0 : index
    %120 = vector.load %arg7[%c0_95, %c2, %c0_96, %c0_97] : memref<2x4x32x8xf32, #tpu.memory_space<vmem>>, vector<1x1x32x8xf32>
    %121 = vector.shape_cast %120 : vector<1x1x32x8xf32> to vector<32x8xf32>
    %cst_98 = arith.constant dense<0.000000e+00> : vector<16x8xf32>
    %122 = tpu.matmul %34, %121, %cst_98 {dimension_numbers = #tpu.dot_dimension_numbers<[1], [0], [0], [1], [0, 0, 1, 1], [], []>} : vector<16x32xf32>, vector<32x8xf32>, vector<16x8xf32> -> vector<16x8xf32>
    %c0_99 = arith.constant 0 : index
    %c2_100 = arith.constant 2 : index
    %c0_101 = arith.constant 0 : index
    %c0_102 = arith.constant 0 : index
    %123 = vector.load %arg8[%c0_99, %c2_100, %c0_101, %c0_102] : memref<2x4x1x8xf32, #tpu.memory_space<vmem>>, vector<1x1x1x8xf32>
    %124 = vector.shape_cast %123 : vector<1x1x1x8xf32> to vector<1x8xf32>
    %125 = vector.broadcast %124 : vector<1x8xf32> to vector<16x8xf32>
    %126 = arith.addf %122, %125 : vector<16x8xf32>
    %c0_103 = arith.constant 0 : index
    %c2_104 = arith.constant 2 : index
    %c0_105 = arith.constant 0 : index
    %c0_106 = arith.constant 0 : index
    %127 = vector.load %arg9[%c0_103, %c2_104, %c0_105, %c0_106] : memref<2x4x32x8xf32, #tpu.memory_space<vmem>>, vector<1x1x32x8xf32>
    %128 = vector.shape_cast %127 : vector<1x1x32x8xf32> to vector<32x8xf32>
    %cst_107 = arith.constant dense<0.000000e+00> : vector<16x8xf32>
    %129 = tpu.matmul %34, %128, %cst_107 {dimension_numbers = #tpu.dot_dimension_numbers<[1], [0], [0], [1], [0, 0, 1, 1], [], []>} : vector<16x32xf32>, vector<32x8xf32>, vector<16x8xf32> -> vector<16x8xf32>
    %c0_108 = arith.constant 0 : index
    %c2_109 = arith.constant 2 : index
    %c0_110 = arith.constant 0 : index
    %c0_111 = arith.constant 0 : index
    %130 = vector.load %arg10[%c0_108, %c2_109, %c0_110, %c0_111] : memref<2x4x1x8xf32, #tpu.memory_space<vmem>>, vector<1x1x1x8xf32>
    %131 = vector.shape_cast %130 : vector<1x1x1x8xf32> to vector<1x8xf32>
    %132 = vector.broadcast %131 : vector<1x8xf32> to vector<16x8xf32>
    %133 = arith.addf %129, %132 : vector<16x8xf32>
    %c0_112 = arith.constant 0 : index
    %c2_113 = arith.constant 2 : index
    %c0_114 = arith.constant 0 : index
    %c0_115 = arith.constant 0 : index
    %134 = vector.load %arg11[%c0_112, %c2_113, %c0_114, %c0_115] : memref<2x4x32x8xf32, #tpu.memory_space<vmem>>, vector<1x1x32x8xf32>
    %135 = vector.shape_cast %134 : vector<1x1x32x8xf32> to vector<32x8xf32>
    %cst_116 = arith.constant dense<0.000000e+00> : vector<16x8xf32>
    %136 = tpu.matmul %34, %135, %cst_116 {dimension_numbers = #tpu.dot_dimension_numbers<[1], [0], [0], [1], [0, 0, 1, 1], [], []>} : vector<16x32xf32>, vector<32x8xf32>, vector<16x8xf32> -> vector<16x8xf32>
    %c0_117 = arith.constant 0 : index
    %c2_118 = arith.constant 2 : index
    %c0_119 = arith.constant 0 : index
    %c0_120 = arith.constant 0 : index
    %137 = vector.load %arg12[%c0_117, %c2_118, %c0_119, %c0_120] : memref<2x4x1x8xf32, #tpu.memory_space<vmem>>, vector<1x1x1x8xf32>
    %138 = vector.shape_cast %137 : vector<1x1x1x8xf32> to vector<1x8xf32>
    %139 = vector.broadcast %138 : vector<1x8xf32> to vector<16x8xf32>
    %140 = arith.addf %136, %139 : vector<16x8xf32>
    %cst_121 = arith.constant dense<0.000000e+00> : vector<16x16xf32>
    %141 = tpu.matmul %126, %133, %cst_121 {dimension_numbers = #tpu.dot_dimension_numbers<[1], [1], [0], [0], [0, 0, 1, 0], [], []>} : vector<16x8xf32>, vector<16x8xf32>, vector<16x16xf32> -> vector<16x16xf32>
    %cst_122 = arith.constant 0.353553385 : f32
    %142 = vector.broadcast %cst_122 : f32 to vector<16x16xf32>
    %143 = arith.mulf %141, %142 : vector<16x16xf32>
    %cst_123 = arith.constant 0.000000e+00 : f32
    %144 = vector.broadcast %cst_123 : f32 to vector<16x16xf32>
    %145 = arith.cmpf ogt, %3, %144 : vector<16x16xf32>
    %cst_124 = arith.constant -1.000000e+09 : f32
    %146 = vector.broadcast %cst_124 : f32 to vector<16x16xf32>
    %147 = arith.select %145, %143, %146 : vector<16x16xi1>, vector<16x16xf32>
    %cst_125 = arith.constant dense<0xFF800000> : vector<16xf32>
    %148 = vector.multi_reduction <maximumf>, %147, %cst_125 [1] : vector<16x16xf32> to vector<16xf32>
    %149 = vector.shape_cast %148 : vector<16xf32> to vector<16x1xf32>
    %150 = vector.broadcast %149 : vector<16x1xf32> to vector<16x16xf32>
    %151 = arith.subf %147, %150 : vector<16x16xf32>
    %152 = math.exp %151 : vector<16x16xf32>
    %cst_126 = arith.constant dense<0.000000e+00> : vector<16xf32>
    %153 = vector.multi_reduction <add>, %152, %cst_126 [1] : vector<16x16xf32> to vector<16xf32>
    %154 = vector.shape_cast %153 : vector<16xf32> to vector<16x1xf32>
    %155 = tpu.reciprocal %154 {approx = true} : vector<16x1xf32> -> vector<16x1xf32>
    %156 = vector.broadcast %155 : vector<16x1xf32> to vector<16x16xf32>
    %157 = arith.mulf %152, %156 : vector<16x16xf32>
    %cst_127 = arith.constant dense<0.000000e+00> : vector<16x8xf32>
    %158 = tpu.matmul %157, %140, %cst_127 {dimension_numbers = #tpu.dot_dimension_numbers<[1], [0], [0], [1], [0, 0, 1, 1], [], []>} : vector<16x16xf32>, vector<16x8xf32>, vector<16x8xf32> -> vector<16x8xf32>
    %c0_128 = arith.constant 0 : index
    %c2_129 = arith.constant 2 : index
    %c0_130 = arith.constant 0 : index
    %c0_131 = arith.constant 0 : index
    %159 = vector.load %arg13[%c0_128, %c2_129, %c0_130, %c0_131] : memref<2x4x8x32xf32, #tpu.memory_space<vmem>>, vector<1x1x8x32xf32>
    %160 = vector.shape_cast %159 : vector<1x1x8x32xf32> to vector<8x32xf32>
    %cst_132 = arith.constant dense<0.000000e+00> : vector<16x32xf32>
    %161 = tpu.matmul %158, %160, %cst_132 {dimension_numbers = #tpu.dot_dimension_numbers<[1], [0], [0], [1], [0, 0, 1, 1], [], []>} : vector<16x8xf32>, vector<8x32xf32>, vector<16x32xf32> -> vector<16x32xf32>
    %162 = arith.addf %119, %161 : vector<16x32xf32>
    %c0_133 = arith.constant 0 : index
    %c3 = arith.constant 3 : index
    %c0_134 = arith.constant 0 : index
    %c0_135 = arith.constant 0 : index
    %163 = vector.load %arg7[%c0_133, %c3, %c0_134, %c0_135] : memref<2x4x32x8xf32, #tpu.memory_space<vmem>>, vector<1x1x32x8xf32>
    %164 = vector.shape_cast %163 : vector<1x1x32x8xf32> to vector<32x8xf32>
    %cst_136 = arith.constant dense<0.000000e+00> : vector<16x8xf32>
    %165 = tpu.matmul %34, %164, %cst_136 {dimension_numbers = #tpu.dot_dimension_numbers<[1], [0], [0], [1], [0, 0, 1, 1], [], []>} : vector<16x32xf32>, vector<32x8xf32>, vector<16x8xf32> -> vector<16x8xf32>
    %c0_137 = arith.constant 0 : index
    %c3_138 = arith.constant 3 : index
    %c0_139 = arith.constant 0 : index
    %c0_140 = arith.constant 0 : index
    %166 = vector.load %arg8[%c0_137, %c3_138, %c0_139, %c0_140] : memref<2x4x1x8xf32, #tpu.memory_space<vmem>>, vector<1x1x1x8xf32>
    %167 = vector.shape_cast %166 : vector<1x1x1x8xf32> to vector<1x8xf32>
    %168 = vector.broadcast %167 : vector<1x8xf32> to vector<16x8xf32>
    %169 = arith.addf %165, %168 : vector<16x8xf32>
    %c0_141 = arith.constant 0 : index
    %c3_142 = arith.constant 3 : index
    %c0_143 = arith.constant 0 : index
    %c0_144 = arith.constant 0 : index
    %170 = vector.load %arg9[%c0_141, %c3_142, %c0_143, %c0_144] : memref<2x4x32x8xf32, #tpu.memory_space<vmem>>, vector<1x1x32x8xf32>
    %171 = vector.shape_cast %170 : vector<1x1x32x8xf32> to vector<32x8xf32>
    %cst_145 = arith.constant dense<0.000000e+00> : vector<16x8xf32>
    %172 = tpu.matmul %34, %171, %cst_145 {dimension_numbers = #tpu.dot_dimension_numbers<[1], [0], [0], [1], [0, 0, 1, 1], [], []>} : vector<16x32xf32>, vector<32x8xf32>, vector<16x8xf32> -> vector<16x8xf32>
    %c0_146 = arith.constant 0 : index
    %c3_147 = arith.constant 3 : index
    %c0_148 = arith.constant 0 : index
    %c0_149 = arith.constant 0 : index
    %173 = vector.load %arg10[%c0_146, %c3_147, %c0_148, %c0_149] : memref<2x4x1x8xf32, #tpu.memory_space<vmem>>, vector<1x1x1x8xf32>
    %174 = vector.shape_cast %173 : vector<1x1x1x8xf32> to vector<1x8xf32>
    %175 = vector.broadcast %174 : vector<1x8xf32> to vector<16x8xf32>
    %176 = arith.addf %172, %175 : vector<16x8xf32>
    %c0_150 = arith.constant 0 : index
    %c3_151 = arith.constant 3 : index
    %c0_152 = arith.constant 0 : index
    %c0_153 = arith.constant 0 : index
    %177 = vector.load %arg11[%c0_150, %c3_151, %c0_152, %c0_153] : memref<2x4x32x8xf32, #tpu.memory_space<vmem>>, vector<1x1x32x8xf32>
    %178 = vector.shape_cast %177 : vector<1x1x32x8xf32> to vector<32x8xf32>
    %cst_154 = arith.constant dense<0.000000e+00> : vector<16x8xf32>
    %179 = tpu.matmul %34, %178, %cst_154 {dimension_numbers = #tpu.dot_dimension_numbers<[1], [0], [0], [1], [0, 0, 1, 1], [], []>} : vector<16x32xf32>, vector<32x8xf32>, vector<16x8xf32> -> vector<16x8xf32>
    %c0_155 = arith.constant 0 : index
    %c3_156 = arith.constant 3 : index
    %c0_157 = arith.constant 0 : index
    %c0_158 = arith.constant 0 : index
    %180 = vector.load %arg12[%c0_155, %c3_156, %c0_157, %c0_158] : memref<2x4x1x8xf32, #tpu.memory_space<vmem>>, vector<1x1x1x8xf32>
    %181 = vector.shape_cast %180 : vector<1x1x1x8xf32> to vector<1x8xf32>
    %182 = vector.broadcast %181 : vector<1x8xf32> to vector<16x8xf32>
    %183 = arith.addf %179, %182 : vector<16x8xf32>
    %cst_159 = arith.constant dense<0.000000e+00> : vector<16x16xf32>
    %184 = tpu.matmul %169, %176, %cst_159 {dimension_numbers = #tpu.dot_dimension_numbers<[1], [1], [0], [0], [0, 0, 1, 0], [], []>} : vector<16x8xf32>, vector<16x8xf32>, vector<16x16xf32> -> vector<16x16xf32>
    %cst_160 = arith.constant 0.353553385 : f32
    %185 = vector.broadcast %cst_160 : f32 to vector<16x16xf32>
    %186 = arith.mulf %184, %185 : vector<16x16xf32>
    %cst_161 = arith.constant 0.000000e+00 : f32
    %187 = vector.broadcast %cst_161 : f32 to vector<16x16xf32>
    %188 = arith.cmpf ogt, %3, %187 : vector<16x16xf32>
    %cst_162 = arith.constant -1.000000e+09 : f32
    %189 = vector.broadcast %cst_162 : f32 to vector<16x16xf32>
    %190 = arith.select %188, %186, %189 : vector<16x16xi1>, vector<16x16xf32>
    %cst_163 = arith.constant dense<0xFF800000> : vector<16xf32>
    %191 = vector.multi_reduction <maximumf>, %190, %cst_163 [1] : vector<16x16xf32> to vector<16xf32>
    %192 = vector.shape_cast %191 : vector<16xf32> to vector<16x1xf32>
    %193 = vector.broadcast %192 : vector<16x1xf32> to vector<16x16xf32>
    %194 = arith.subf %190, %193 : vector<16x16xf32>
    %195 = math.exp %194 : vector<16x16xf32>
    %cst_164 = arith.constant dense<0.000000e+00> : vector<16xf32>
    %196 = vector.multi_reduction <add>, %195, %cst_164 [1] : vector<16x16xf32> to vector<16xf32>
    %197 = vector.shape_cast %196 : vector<16xf32> to vector<16x1xf32>
    %198 = tpu.reciprocal %197 {approx = true} : vector<16x1xf32> -> vector<16x1xf32>
    %199 = vector.broadcast %198 : vector<16x1xf32> to vector<16x16xf32>
    %200 = arith.mulf %195, %199 : vector<16x16xf32>
    %cst_165 = arith.constant dense<0.000000e+00> : vector<16x8xf32>
    %201 = tpu.matmul %200, %183, %cst_165 {dimension_numbers = #tpu.dot_dimension_numbers<[1], [0], [0], [1], [0, 0, 1, 1], [], []>} : vector<16x16xf32>, vector<16x8xf32>, vector<16x8xf32> -> vector<16x8xf32>
    %c0_166 = arith.constant 0 : index
    %c3_167 = arith.constant 3 : index
    %c0_168 = arith.constant 0 : index
    %c0_169 = arith.constant 0 : index
    %202 = vector.load %arg13[%c0_166, %c3_167, %c0_168, %c0_169] : memref<2x4x8x32xf32, #tpu.memory_space<vmem>>, vector<1x1x8x32xf32>
    %203 = vector.shape_cast %202 : vector<1x1x8x32xf32> to vector<8x32xf32>
    %cst_170 = arith.constant dense<0.000000e+00> : vector<16x32xf32>
    %204 = tpu.matmul %201, %203, %cst_170 {dimension_numbers = #tpu.dot_dimension_numbers<[1], [0], [0], [1], [0, 0, 1, 1], [], []>} : vector<16x8xf32>, vector<8x32xf32>, vector<16x32xf32> -> vector<16x32xf32>
    %205 = arith.addf %162, %204 : vector<16x32xf32>
    %c0_171 = arith.constant 0 : index
    %c0_172 = arith.constant 0 : index
    %c0_173 = arith.constant 0 : index
    %206 = vector.load %arg14[%c0_171, %c0_172, %c0_173] : memref<2x1x32xf32, #tpu.memory_space<vmem>>, vector<1x1x32xf32>
    %207 = vector.shape_cast %206 : vector<1x1x32xf32> to vector<1x32xf32>
    %208 = vector.broadcast %207 : vector<1x32xf32> to vector<16x32xf32>
    %209 = arith.addf %205, %208 : vector<16x32xf32>
    %210 = arith.addf %209, %34 : vector<16x32xf32>
    %c0_174 = arith.constant 0 : index
    %c0_175 = arith.constant 0 : index
    %c0_176 = arith.constant 0 : index
    %211 = vector.load %arg15[%c0_174, %c0_175, %c0_176] : memref<2x1x32xf32, #tpu.memory_space<vmem>>, vector<1x1x32xf32>
    %212 = vector.shape_cast %211 : vector<1x1x32xf32> to vector<1x32xf32>
    %c0_177 = arith.constant 0 : index
    %c0_178 = arith.constant 0 : index
    %c0_179 = arith.constant 0 : index
    %213 = vector.load %arg16[%c0_177, %c0_178, %c0_179] : memref<2x1x32xf32, #tpu.memory_space<vmem>>, vector<1x1x32xf32>
    %214 = vector.shape_cast %213 : vector<1x1x32xf32> to vector<1x32xf32>
    %cst_180 = arith.constant dense<0.000000e+00> : vector<16xf32>
    %215 = vector.multi_reduction <add>, %210, %cst_180 [1] : vector<16x32xf32> to vector<16xf32>
    %216 = vector.shape_cast %215 : vector<16xf32> to vector<16x1xf32>
    %cst_181 = arith.constant 3.200000e+01 : f32
    %217 = vector.broadcast %cst_181 : f32 to vector<16x1xf32>
    %218 = arith.divf %216, %217 : vector<16x1xf32>
    %219 = vector.broadcast %218 : vector<16x1xf32> to vector<16x32xf32>
    %220 = arith.subf %210, %219 : vector<16x32xf32>
    %221 = arith.mulf %220, %220 : vector<16x32xf32>
    %cst_182 = arith.constant dense<0.000000e+00> : vector<16xf32>
    %222 = vector.multi_reduction <add>, %221, %cst_182 [1] : vector<16x32xf32> to vector<16xf32>
    %223 = vector.shape_cast %222 : vector<16xf32> to vector<16x1xf32>
    %cst_183 = arith.constant 3.200000e+01 : f32
    %224 = vector.broadcast %cst_183 : f32 to vector<16x1xf32>
    %225 = arith.divf %223, %224 : vector<16x1xf32>
    %cst_184 = arith.constant 9.99999996E-13 : f32
    %226 = vector.broadcast %cst_184 : f32 to vector<16x1xf32>
    %227 = arith.addf %225, %226 : vector<16x1xf32>
    %228 = math.rsqrt %227 : vector<16x1xf32>
    %229 = vector.broadcast %228 : vector<16x1xf32> to vector<16x32xf32>
    %230 = arith.mulf %220, %229 : vector<16x32xf32>
    %231 = vector.broadcast %212 : vector<1x32xf32> to vector<16x32xf32>
    %232 = arith.mulf %230, %231 : vector<16x32xf32>
    %233 = vector.broadcast %214 : vector<1x32xf32> to vector<16x32xf32>
    %234 = arith.addf %232, %233 : vector<16x32xf32>
    %c0_185 = arith.constant 0 : index
    %c0_186 = arith.constant 0 : index
    %c0_187 = arith.constant 0 : index
    %235 = vector.load %arg17[%c0_185, %c0_186, %c0_187] : memref<2x32x64xf32, #tpu.memory_space<vmem>>, vector<1x32x64xf32>
    %236 = vector.shape_cast %235 : vector<1x32x64xf32> to vector<32x64xf32>
    %cst_188 = arith.constant dense<0.000000e+00> : vector<16x64xf32>
    %237 = tpu.matmul %234, %236, %cst_188 {dimension_numbers = #tpu.dot_dimension_numbers<[1], [0], [0], [1], [0, 0, 1, 1], [], []>} : vector<16x32xf32>, vector<32x64xf32>, vector<16x64xf32> -> vector<16x64xf32>
    %c0_189 = arith.constant 0 : index
    %c0_190 = arith.constant 0 : index
    %c0_191 = arith.constant 0 : index
    %238 = vector.load %arg18[%c0_189, %c0_190, %c0_191] : memref<2x1x64xf32, #tpu.memory_space<vmem>>, vector<1x1x64xf32>
    %239 = vector.shape_cast %238 : vector<1x1x64xf32> to vector<1x64xf32>
    %240 = vector.broadcast %239 : vector<1x64xf32> to vector<16x64xf32>
    %241 = arith.addf %237, %240 : vector<16x64xf32>
    %242 = arith.mulf %241, %241 : vector<16x64xf32>
    %243 = arith.mulf %241, %242 : vector<16x64xf32>
    %cst_192 = arith.constant 4.471500e-02 : f32
    %244 = vector.broadcast %cst_192 : f32 to vector<16x64xf32>
    %245 = arith.mulf %244, %243 : vector<16x64xf32>
    %246 = arith.addf %241, %245 : vector<16x64xf32>
    %cst_193 = arith.constant 0.797884583 : f32
    %247 = vector.broadcast %cst_193 : f32 to vector<16x64xf32>
    %248 = arith.mulf %247, %246 : vector<16x64xf32>
    %249 = math.tanh %248 : vector<16x64xf32>
    %cst_194 = arith.constant 1.000000e+00 : f32
    %250 = vector.broadcast %cst_194 : f32 to vector<16x64xf32>
    %251 = arith.addf %250, %249 : vector<16x64xf32>
    %cst_195 = arith.constant 5.000000e-01 : f32
    %252 = vector.broadcast %cst_195 : f32 to vector<16x64xf32>
    %253 = arith.mulf %252, %251 : vector<16x64xf32>
    %254 = arith.mulf %241, %253 : vector<16x64xf32>
    %c0_196 = arith.constant 0 : index
    %c0_197 = arith.constant 0 : index
    %c0_198 = arith.constant 0 : index
    %255 = vector.load %arg19[%c0_196, %c0_197, %c0_198] : memref<2x64x32xf32, #tpu.memory_space<vmem>>, vector<1x64x32xf32>
    %256 = vector.shape_cast %255 : vector<1x64x32xf32> to vector<64x32xf32>
    %cst_199 = arith.constant dense<0.000000e+00> : vector<16x32xf32>
    %257 = tpu.matmul %254, %256, %cst_199 {dimension_numbers = #tpu.dot_dimension_numbers<[1], [0], [0], [1], [0, 0, 1, 1], [], []>} : vector<16x64xf32>, vector<64x32xf32>, vector<16x32xf32> -> vector<16x32xf32>
    %c0_200 = arith.constant 0 : index
    %c0_201 = arith.constant 0 : index
    %c0_202 = arith.constant 0 : index
    %258 = vector.load %arg20[%c0_200, %c0_201, %c0_202] : memref<2x1x32xf32, #tpu.memory_space<vmem>>, vector<1x1x32xf32>
    %259 = vector.shape_cast %258 : vector<1x1x32xf32> to vector<1x32xf32>
    %260 = vector.broadcast %259 : vector<1x32xf32> to vector<16x32xf32>
    %261 = arith.addf %257, %260 : vector<16x32xf32>
    %262 = arith.addf %261, %234 : vector<16x32xf32>
    %c0_203 = arith.constant 0 : index
    %c0_204 = arith.constant 0 : index
    %c0_205 = arith.constant 0 : index
    %263 = vector.load %arg21[%c0_203, %c0_204, %c0_205] : memref<2x1x32xf32, #tpu.memory_space<vmem>>, vector<1x1x32xf32>
    %264 = vector.shape_cast %263 : vector<1x1x32xf32> to vector<1x32xf32>
    %c0_206 = arith.constant 0 : index
    %c0_207 = arith.constant 0 : index
    %c0_208 = arith.constant 0 : index
    %265 = vector.load %arg22[%c0_206, %c0_207, %c0_208] : memref<2x1x32xf32, #tpu.memory_space<vmem>>, vector<1x1x32xf32>
    %266 = vector.shape_cast %265 : vector<1x1x32xf32> to vector<1x32xf32>
    %cst_209 = arith.constant dense<0.000000e+00> : vector<16xf32>
    %267 = vector.multi_reduction <add>, %262, %cst_209 [1] : vector<16x32xf32> to vector<16xf32>
    %268 = vector.shape_cast %267 : vector<16xf32> to vector<16x1xf32>
    %cst_210 = arith.constant 3.200000e+01 : f32
    %269 = vector.broadcast %cst_210 : f32 to vector<16x1xf32>
    %270 = arith.divf %268, %269 : vector<16x1xf32>
    %271 = vector.broadcast %270 : vector<16x1xf32> to vector<16x32xf32>
    %272 = arith.subf %262, %271 : vector<16x32xf32>
    %273 = arith.mulf %272, %272 : vector<16x32xf32>
    %cst_211 = arith.constant dense<0.000000e+00> : vector<16xf32>
    %274 = vector.multi_reduction <add>, %273, %cst_211 [1] : vector<16x32xf32> to vector<16xf32>
    %275 = vector.shape_cast %274 : vector<16xf32> to vector<16x1xf32>
    %cst_212 = arith.constant 3.200000e+01 : f32
    %276 = vector.broadcast %cst_212 : f32 to vector<16x1xf32>
    %277 = arith.divf %275, %276 : vector<16x1xf32>
    %cst_213 = arith.constant 9.99999996E-13 : f32
    %278 = vector.broadcast %cst_213 : f32 to vector<16x1xf32>
    %279 = arith.addf %277, %278 : vector<16x1xf32>
    %280 = math.rsqrt %279 : vector<16x1xf32>
    %281 = vector.broadcast %280 : vector<16x1xf32> to vector<16x32xf32>
    %282 = arith.mulf %272, %281 : vector<16x32xf32>
    %283 = vector.broadcast %264 : vector<1x32xf32> to vector<16x32xf32>
    %284 = arith.mulf %282, %283 : vector<16x32xf32>
    %285 = vector.broadcast %266 : vector<1x32xf32> to vector<16x32xf32>
    %286 = arith.addf %284, %285 : vector<16x32xf32>
    %c1_214 = arith.constant 1 : index
    %c0_215 = arith.constant 0 : index
    %c0_216 = arith.constant 0 : index
    %c0_217 = arith.constant 0 : index
    %287 = vector.load %arg7[%c1_214, %c0_215, %c0_216, %c0_217] : memref<2x4x32x8xf32, #tpu.memory_space<vmem>>, vector<1x1x32x8xf32>
    %288 = vector.shape_cast %287 : vector<1x1x32x8xf32> to vector<32x8xf32>
    %cst_218 = arith.constant dense<0.000000e+00> : vector<16x8xf32>
    %289 = tpu.matmul %286, %288, %cst_218 {dimension_numbers = #tpu.dot_dimension_numbers<[1], [0], [0], [1], [0, 0, 1, 1], [], []>} : vector<16x32xf32>, vector<32x8xf32>, vector<16x8xf32> -> vector<16x8xf32>
    %c1_219 = arith.constant 1 : index
    %c0_220 = arith.constant 0 : index
    %c0_221 = arith.constant 0 : index
    %c0_222 = arith.constant 0 : index
    %290 = vector.load %arg8[%c1_219, %c0_220, %c0_221, %c0_222] : memref<2x4x1x8xf32, #tpu.memory_space<vmem>>, vector<1x1x1x8xf32>
    %291 = vector.shape_cast %290 : vector<1x1x1x8xf32> to vector<1x8xf32>
    %292 = vector.broadcast %291 : vector<1x8xf32> to vector<16x8xf32>
    %293 = arith.addf %289, %292 : vector<16x8xf32>
    %c1_223 = arith.constant 1 : index
    %c0_224 = arith.constant 0 : index
    %c0_225 = arith.constant 0 : index
    %c0_226 = arith.constant 0 : index
    %294 = vector.load %arg9[%c1_223, %c0_224, %c0_225, %c0_226] : memref<2x4x32x8xf32, #tpu.memory_space<vmem>>, vector<1x1x32x8xf32>
    %295 = vector.shape_cast %294 : vector<1x1x32x8xf32> to vector<32x8xf32>
    %cst_227 = arith.constant dense<0.000000e+00> : vector<16x8xf32>
    %296 = tpu.matmul %286, %295, %cst_227 {dimension_numbers = #tpu.dot_dimension_numbers<[1], [0], [0], [1], [0, 0, 1, 1], [], []>} : vector<16x32xf32>, vector<32x8xf32>, vector<16x8xf32> -> vector<16x8xf32>
    %c1_228 = arith.constant 1 : index
    %c0_229 = arith.constant 0 : index
    %c0_230 = arith.constant 0 : index
    %c0_231 = arith.constant 0 : index
    %297 = vector.load %arg10[%c1_228, %c0_229, %c0_230, %c0_231] : memref<2x4x1x8xf32, #tpu.memory_space<vmem>>, vector<1x1x1x8xf32>
    %298 = vector.shape_cast %297 : vector<1x1x1x8xf32> to vector<1x8xf32>
    %299 = vector.broadcast %298 : vector<1x8xf32> to vector<16x8xf32>
    %300 = arith.addf %296, %299 : vector<16x8xf32>
    %c1_232 = arith.constant 1 : index
    %c0_233 = arith.constant 0 : index
    %c0_234 = arith.constant 0 : index
    %c0_235 = arith.constant 0 : index
    %301 = vector.load %arg11[%c1_232, %c0_233, %c0_234, %c0_235] : memref<2x4x32x8xf32, #tpu.memory_space<vmem>>, vector<1x1x32x8xf32>
    %302 = vector.shape_cast %301 : vector<1x1x32x8xf32> to vector<32x8xf32>
    %cst_236 = arith.constant dense<0.000000e+00> : vector<16x8xf32>
    %303 = tpu.matmul %286, %302, %cst_236 {dimension_numbers = #tpu.dot_dimension_numbers<[1], [0], [0], [1], [0, 0, 1, 1], [], []>} : vector<16x32xf32>, vector<32x8xf32>, vector<16x8xf32> -> vector<16x8xf32>
    %c1_237 = arith.constant 1 : index
    %c0_238 = arith.constant 0 : index
    %c0_239 = arith.constant 0 : index
    %c0_240 = arith.constant 0 : index
    %304 = vector.load %arg12[%c1_237, %c0_238, %c0_239, %c0_240] : memref<2x4x1x8xf32, #tpu.memory_space<vmem>>, vector<1x1x1x8xf32>
    %305 = vector.shape_cast %304 : vector<1x1x1x8xf32> to vector<1x8xf32>
    %306 = vector.broadcast %305 : vector<1x8xf32> to vector<16x8xf32>
    %307 = arith.addf %303, %306 : vector<16x8xf32>
    %cst_241 = arith.constant dense<0.000000e+00> : vector<16x16xf32>
    %308 = tpu.matmul %293, %300, %cst_241 {dimension_numbers = #tpu.dot_dimension_numbers<[1], [1], [0], [0], [0, 0, 1, 0], [], []>} : vector<16x8xf32>, vector<16x8xf32>, vector<16x16xf32> -> vector<16x16xf32>
    %cst_242 = arith.constant 0.353553385 : f32
    %309 = vector.broadcast %cst_242 : f32 to vector<16x16xf32>
    %310 = arith.mulf %308, %309 : vector<16x16xf32>
    %cst_243 = arith.constant 0.000000e+00 : f32
    %311 = vector.broadcast %cst_243 : f32 to vector<16x16xf32>
    %312 = arith.cmpf ogt, %3, %311 : vector<16x16xf32>
    %cst_244 = arith.constant -1.000000e+09 : f32
    %313 = vector.broadcast %cst_244 : f32 to vector<16x16xf32>
    %314 = arith.select %312, %310, %313 : vector<16x16xi1>, vector<16x16xf32>
    %cst_245 = arith.constant dense<0xFF800000> : vector<16xf32>
    %315 = vector.multi_reduction <maximumf>, %314, %cst_245 [1] : vector<16x16xf32> to vector<16xf32>
    %316 = vector.shape_cast %315 : vector<16xf32> to vector<16x1xf32>
    %317 = vector.broadcast %316 : vector<16x1xf32> to vector<16x16xf32>
    %318 = arith.subf %314, %317 : vector<16x16xf32>
    %319 = math.exp %318 : vector<16x16xf32>
    %cst_246 = arith.constant dense<0.000000e+00> : vector<16xf32>
    %320 = vector.multi_reduction <add>, %319, %cst_246 [1] : vector<16x16xf32> to vector<16xf32>
    %321 = vector.shape_cast %320 : vector<16xf32> to vector<16x1xf32>
    %322 = tpu.reciprocal %321 {approx = true} : vector<16x1xf32> -> vector<16x1xf32>
    %323 = vector.broadcast %322 : vector<16x1xf32> to vector<16x16xf32>
    %324 = arith.mulf %319, %323 : vector<16x16xf32>
    %cst_247 = arith.constant dense<0.000000e+00> : vector<16x8xf32>
    %325 = tpu.matmul %324, %307, %cst_247 {dimension_numbers = #tpu.dot_dimension_numbers<[1], [0], [0], [1], [0, 0, 1, 1], [], []>} : vector<16x16xf32>, vector<16x8xf32>, vector<16x8xf32> -> vector<16x8xf32>
    %c1_248 = arith.constant 1 : index
    %c0_249 = arith.constant 0 : index
    %c0_250 = arith.constant 0 : index
    %c0_251 = arith.constant 0 : index
    %326 = vector.load %arg13[%c1_248, %c0_249, %c0_250, %c0_251] : memref<2x4x8x32xf32, #tpu.memory_space<vmem>>, vector<1x1x8x32xf32>
    %327 = vector.shape_cast %326 : vector<1x1x8x32xf32> to vector<8x32xf32>
    %cst_252 = arith.constant dense<0.000000e+00> : vector<16x32xf32>
    %328 = tpu.matmul %325, %327, %cst_252 {dimension_numbers = #tpu.dot_dimension_numbers<[1], [0], [0], [1], [0, 0, 1, 1], [], []>} : vector<16x8xf32>, vector<8x32xf32>, vector<16x32xf32> -> vector<16x32xf32>
    %c1_253 = arith.constant 1 : index
    %c1_254 = arith.constant 1 : index
    %c0_255 = arith.constant 0 : index
    %c0_256 = arith.constant 0 : index
    %329 = vector.load %arg7[%c1_253, %c1_254, %c0_255, %c0_256] : memref<2x4x32x8xf32, #tpu.memory_space<vmem>>, vector<1x1x32x8xf32>
    %330 = vector.shape_cast %329 : vector<1x1x32x8xf32> to vector<32x8xf32>
    %cst_257 = arith.constant dense<0.000000e+00> : vector<16x8xf32>
    %331 = tpu.matmul %286, %330, %cst_257 {dimension_numbers = #tpu.dot_dimension_numbers<[1], [0], [0], [1], [0, 0, 1, 1], [], []>} : vector<16x32xf32>, vector<32x8xf32>, vector<16x8xf32> -> vector<16x8xf32>
    %c1_258 = arith.constant 1 : index
    %c1_259 = arith.constant 1 : index
    %c0_260 = arith.constant 0 : index
    %c0_261 = arith.constant 0 : index
    %332 = vector.load %arg8[%c1_258, %c1_259, %c0_260, %c0_261] : memref<2x4x1x8xf32, #tpu.memory_space<vmem>>, vector<1x1x1x8xf32>
    %333 = vector.shape_cast %332 : vector<1x1x1x8xf32> to vector<1x8xf32>
    %334 = vector.broadcast %333 : vector<1x8xf32> to vector<16x8xf32>
    %335 = arith.addf %331, %334 : vector<16x8xf32>
    %c1_262 = arith.constant 1 : index
    %c1_263 = arith.constant 1 : index
    %c0_264 = arith.constant 0 : index
    %c0_265 = arith.constant 0 : index
    %336 = vector.load %arg9[%c1_262, %c1_263, %c0_264, %c0_265] : memref<2x4x32x8xf32, #tpu.memory_space<vmem>>, vector<1x1x32x8xf32>
    %337 = vector.shape_cast %336 : vector<1x1x32x8xf32> to vector<32x8xf32>
    %cst_266 = arith.constant dense<0.000000e+00> : vector<16x8xf32>
    %338 = tpu.matmul %286, %337, %cst_266 {dimension_numbers = #tpu.dot_dimension_numbers<[1], [0], [0], [1], [0, 0, 1, 1], [], []>} : vector<16x32xf32>, vector<32x8xf32>, vector<16x8xf32> -> vector<16x8xf32>
    %c1_267 = arith.constant 1 : index
    %c1_268 = arith.constant 1 : index
    %c0_269 = arith.constant 0 : index
    %c0_270 = arith.constant 0 : index
    %339 = vector.load %arg10[%c1_267, %c1_268, %c0_269, %c0_270] : memref<2x4x1x8xf32, #tpu.memory_space<vmem>>, vector<1x1x1x8xf32>
    %340 = vector.shape_cast %339 : vector<1x1x1x8xf32> to vector<1x8xf32>
    %341 = vector.broadcast %340 : vector<1x8xf32> to vector<16x8xf32>
    %342 = arith.addf %338, %341 : vector<16x8xf32>
    %c1_271 = arith.constant 1 : index
    %c1_272 = arith.constant 1 : index
    %c0_273 = arith.constant 0 : index
    %c0_274 = arith.constant 0 : index
    %343 = vector.load %arg11[%c1_271, %c1_272, %c0_273, %c0_274] : memref<2x4x32x8xf32, #tpu.memory_space<vmem>>, vector<1x1x32x8xf32>
    %344 = vector.shape_cast %343 : vector<1x1x32x8xf32> to vector<32x8xf32>
    %cst_275 = arith.constant dense<0.000000e+00> : vector<16x8xf32>
    %345 = tpu.matmul %286, %344, %cst_275 {dimension_numbers = #tpu.dot_dimension_numbers<[1], [0], [0], [1], [0, 0, 1, 1], [], []>} : vector<16x32xf32>, vector<32x8xf32>, vector<16x8xf32> -> vector<16x8xf32>
    %c1_276 = arith.constant 1 : index
    %c1_277 = arith.constant 1 : index
    %c0_278 = arith.constant 0 : index
    %c0_279 = arith.constant 0 : index
    %346 = vector.load %arg12[%c1_276, %c1_277, %c0_278, %c0_279] : memref<2x4x1x8xf32, #tpu.memory_space<vmem>>, vector<1x1x1x8xf32>
    %347 = vector.shape_cast %346 : vector<1x1x1x8xf32> to vector<1x8xf32>
    %348 = vector.broadcast %347 : vector<1x8xf32> to vector<16x8xf32>
    %349 = arith.addf %345, %348 : vector<16x8xf32>
    %cst_280 = arith.constant dense<0.000000e+00> : vector<16x16xf32>
    %350 = tpu.matmul %335, %342, %cst_280 {dimension_numbers = #tpu.dot_dimension_numbers<[1], [1], [0], [0], [0, 0, 1, 0], [], []>} : vector<16x8xf32>, vector<16x8xf32>, vector<16x16xf32> -> vector<16x16xf32>
    %cst_281 = arith.constant 0.353553385 : f32
    %351 = vector.broadcast %cst_281 : f32 to vector<16x16xf32>
    %352 = arith.mulf %350, %351 : vector<16x16xf32>
    %cst_282 = arith.constant 0.000000e+00 : f32
    %353 = vector.broadcast %cst_282 : f32 to vector<16x16xf32>
    %354 = arith.cmpf ogt, %3, %353 : vector<16x16xf32>
    %cst_283 = arith.constant -1.000000e+09 : f32
    %355 = vector.broadcast %cst_283 : f32 to vector<16x16xf32>
    %356 = arith.select %354, %352, %355 : vector<16x16xi1>, vector<16x16xf32>
    %cst_284 = arith.constant dense<0xFF800000> : vector<16xf32>
    %357 = vector.multi_reduction <maximumf>, %356, %cst_284 [1] : vector<16x16xf32> to vector<16xf32>
    %358 = vector.shape_cast %357 : vector<16xf32> to vector<16x1xf32>
    %359 = vector.broadcast %358 : vector<16x1xf32> to vector<16x16xf32>
    %360 = arith.subf %356, %359 : vector<16x16xf32>
    %361 = math.exp %360 : vector<16x16xf32>
    %cst_285 = arith.constant dense<0.000000e+00> : vector<16xf32>
    %362 = vector.multi_reduction <add>, %361, %cst_285 [1] : vector<16x16xf32> to vector<16xf32>
    %363 = vector.shape_cast %362 : vector<16xf32> to vector<16x1xf32>
    %364 = tpu.reciprocal %363 {approx = true} : vector<16x1xf32> -> vector<16x1xf32>
    %365 = vector.broadcast %364 : vector<16x1xf32> to vector<16x16xf32>
    %366 = arith.mulf %361, %365 : vector<16x16xf32>
    %cst_286 = arith.constant dense<0.000000e+00> : vector<16x8xf32>
    %367 = tpu.matmul %366, %349, %cst_286 {dimension_numbers = #tpu.dot_dimension_numbers<[1], [0], [0], [1], [0, 0, 1, 1], [], []>} : vector<16x16xf32>, vector<16x8xf32>, vector<16x8xf32> -> vector<16x8xf32>
    %c1_287 = arith.constant 1 : index
    %c1_288 = arith.constant 1 : index
    %c0_289 = arith.constant 0 : index
    %c0_290 = arith.constant 0 : index
    %368 = vector.load %arg13[%c1_287, %c1_288, %c0_289, %c0_290] : memref<2x4x8x32xf32, #tpu.memory_space<vmem>>, vector<1x1x8x32xf32>
    %369 = vector.shape_cast %368 : vector<1x1x8x32xf32> to vector<8x32xf32>
    %cst_291 = arith.constant dense<0.000000e+00> : vector<16x32xf32>
    %370 = tpu.matmul %367, %369, %cst_291 {dimension_numbers = #tpu.dot_dimension_numbers<[1], [0], [0], [1], [0, 0, 1, 1], [], []>} : vector<16x8xf32>, vector<8x32xf32>, vector<16x32xf32> -> vector<16x32xf32>
    %371 = arith.addf %328, %370 : vector<16x32xf32>
    %c1_292 = arith.constant 1 : index
    %c2_293 = arith.constant 2 : index
    %c0_294 = arith.constant 0 : index
    %c0_295 = arith.constant 0 : index
    %372 = vector.load %arg7[%c1_292, %c2_293, %c0_294, %c0_295] : memref<2x4x32x8xf32, #tpu.memory_space<vmem>>, vector<1x1x32x8xf32>
    %373 = vector.shape_cast %372 : vector<1x1x32x8xf32> to vector<32x8xf32>
    %cst_296 = arith.constant dense<0.000000e+00> : vector<16x8xf32>
    %374 = tpu.matmul %286, %373, %cst_296 {dimension_numbers = #tpu.dot_dimension_numbers<[1], [0], [0], [1], [0, 0, 1, 1], [], []>} : vector<16x32xf32>, vector<32x8xf32>, vector<16x8xf32> -> vector<16x8xf32>
    %c1_297 = arith.constant 1 : index
    %c2_298 = arith.constant 2 : index
    %c0_299 = arith.constant 0 : index
    %c0_300 = arith.constant 0 : index
    %375 = vector.load %arg8[%c1_297, %c2_298, %c0_299, %c0_300] : memref<2x4x1x8xf32, #tpu.memory_space<vmem>>, vector<1x1x1x8xf32>
    %376 = vector.shape_cast %375 : vector<1x1x1x8xf32> to vector<1x8xf32>
    %377 = vector.broadcast %376 : vector<1x8xf32> to vector<16x8xf32>
    %378 = arith.addf %374, %377 : vector<16x8xf32>
    %c1_301 = arith.constant 1 : index
    %c2_302 = arith.constant 2 : index
    %c0_303 = arith.constant 0 : index
    %c0_304 = arith.constant 0 : index
    %379 = vector.load %arg9[%c1_301, %c2_302, %c0_303, %c0_304] : memref<2x4x32x8xf32, #tpu.memory_space<vmem>>, vector<1x1x32x8xf32>
    %380 = vector.shape_cast %379 : vector<1x1x32x8xf32> to vector<32x8xf32>
    %cst_305 = arith.constant dense<0.000000e+00> : vector<16x8xf32>
    %381 = tpu.matmul %286, %380, %cst_305 {dimension_numbers = #tpu.dot_dimension_numbers<[1], [0], [0], [1], [0, 0, 1, 1], [], []>} : vector<16x32xf32>, vector<32x8xf32>, vector<16x8xf32> -> vector<16x8xf32>
    %c1_306 = arith.constant 1 : index
    %c2_307 = arith.constant 2 : index
    %c0_308 = arith.constant 0 : index
    %c0_309 = arith.constant 0 : index
    %382 = vector.load %arg10[%c1_306, %c2_307, %c0_308, %c0_309] : memref<2x4x1x8xf32, #tpu.memory_space<vmem>>, vector<1x1x1x8xf32>
    %383 = vector.shape_cast %382 : vector<1x1x1x8xf32> to vector<1x8xf32>
    %384 = vector.broadcast %383 : vector<1x8xf32> to vector<16x8xf32>
    %385 = arith.addf %381, %384 : vector<16x8xf32>
    %c1_310 = arith.constant 1 : index
    %c2_311 = arith.constant 2 : index
    %c0_312 = arith.constant 0 : index
    %c0_313 = arith.constant 0 : index
    %386 = vector.load %arg11[%c1_310, %c2_311, %c0_312, %c0_313] : memref<2x4x32x8xf32, #tpu.memory_space<vmem>>, vector<1x1x32x8xf32>
    %387 = vector.shape_cast %386 : vector<1x1x32x8xf32> to vector<32x8xf32>
    %cst_314 = arith.constant dense<0.000000e+00> : vector<16x8xf32>
    %388 = tpu.matmul %286, %387, %cst_314 {dimension_numbers = #tpu.dot_dimension_numbers<[1], [0], [0], [1], [0, 0, 1, 1], [], []>} : vector<16x32xf32>, vector<32x8xf32>, vector<16x8xf32> -> vector<16x8xf32>
    %c1_315 = arith.constant 1 : index
    %c2_316 = arith.constant 2 : index
    %c0_317 = arith.constant 0 : index
    %c0_318 = arith.constant 0 : index
    %389 = vector.load %arg12[%c1_315, %c2_316, %c0_317, %c0_318] : memref<2x4x1x8xf32, #tpu.memory_space<vmem>>, vector<1x1x1x8xf32>
    %390 = vector.shape_cast %389 : vector<1x1x1x8xf32> to vector<1x8xf32>
    %391 = vector.broadcast %390 : vector<1x8xf32> to vector<16x8xf32>
    %392 = arith.addf %388, %391 : vector<16x8xf32>
    %cst_319 = arith.constant dense<0.000000e+00> : vector<16x16xf32>
    %393 = tpu.matmul %378, %385, %cst_319 {dimension_numbers = #tpu.dot_dimension_numbers<[1], [1], [0], [0], [0, 0, 1, 0], [], []>} : vector<16x8xf32>, vector<16x8xf32>, vector<16x16xf32> -> vector<16x16xf32>
    %cst_320 = arith.constant 0.353553385 : f32
    %394 = vector.broadcast %cst_320 : f32 to vector<16x16xf32>
    %395 = arith.mulf %393, %394 : vector<16x16xf32>
    %cst_321 = arith.constant 0.000000e+00 : f32
    %396 = vector.broadcast %cst_321 : f32 to vector<16x16xf32>
    %397 = arith.cmpf ogt, %3, %396 : vector<16x16xf32>
    %cst_322 = arith.constant -1.000000e+09 : f32
    %398 = vector.broadcast %cst_322 : f32 to vector<16x16xf32>
    %399 = arith.select %397, %395, %398 : vector<16x16xi1>, vector<16x16xf32>
    %cst_323 = arith.constant dense<0xFF800000> : vector<16xf32>
    %400 = vector.multi_reduction <maximumf>, %399, %cst_323 [1] : vector<16x16xf32> to vector<16xf32>
    %401 = vector.shape_cast %400 : vector<16xf32> to vector<16x1xf32>
    %402 = vector.broadcast %401 : vector<16x1xf32> to vector<16x16xf32>
    %403 = arith.subf %399, %402 : vector<16x16xf32>
    %404 = math.exp %403 : vector<16x16xf32>
    %cst_324 = arith.constant dense<0.000000e+00> : vector<16xf32>
    %405 = vector.multi_reduction <add>, %404, %cst_324 [1] : vector<16x16xf32> to vector<16xf32>
    %406 = vector.shape_cast %405 : vector<16xf32> to vector<16x1xf32>
    %407 = tpu.reciprocal %406 {approx = true} : vector<16x1xf32> -> vector<16x1xf32>
    %408 = vector.broadcast %407 : vector<16x1xf32> to vector<16x16xf32>
    %409 = arith.mulf %404, %408 : vector<16x16xf32>
    %cst_325 = arith.constant dense<0.000000e+00> : vector<16x8xf32>
    %410 = tpu.matmul %409, %392, %cst_325 {dimension_numbers = #tpu.dot_dimension_numbers<[1], [0], [0], [1], [0, 0, 1, 1], [], []>} : vector<16x16xf32>, vector<16x8xf32>, vector<16x8xf32> -> vector<16x8xf32>
    %c1_326 = arith.constant 1 : index
    %c2_327 = arith.constant 2 : index
    %c0_328 = arith.constant 0 : index
    %c0_329 = arith.constant 0 : index
    %411 = vector.load %arg13[%c1_326, %c2_327, %c0_328, %c0_329] : memref<2x4x8x32xf32, #tpu.memory_space<vmem>>, vector<1x1x8x32xf32>
    %412 = vector.shape_cast %411 : vector<1x1x8x32xf32> to vector<8x32xf32>
    %cst_330 = arith.constant dense<0.000000e+00> : vector<16x32xf32>
    %413 = tpu.matmul %410, %412, %cst_330 {dimension_numbers = #tpu.dot_dimension_numbers<[1], [0], [0], [1], [0, 0, 1, 1], [], []>} : vector<16x8xf32>, vector<8x32xf32>, vector<16x32xf32> -> vector<16x32xf32>
    %414 = arith.addf %371, %413 : vector<16x32xf32>
    %c1_331 = arith.constant 1 : index
    %c3_332 = arith.constant 3 : index
    %c0_333 = arith.constant 0 : index
    %c0_334 = arith.constant 0 : index
    %415 = vector.load %arg7[%c1_331, %c3_332, %c0_333, %c0_334] : memref<2x4x32x8xf32, #tpu.memory_space<vmem>>, vector<1x1x32x8xf32>
    %416 = vector.shape_cast %415 : vector<1x1x32x8xf32> to vector<32x8xf32>
    %cst_335 = arith.constant dense<0.000000e+00> : vector<16x8xf32>
    %417 = tpu.matmul %286, %416, %cst_335 {dimension_numbers = #tpu.dot_dimension_numbers<[1], [0], [0], [1], [0, 0, 1, 1], [], []>} : vector<16x32xf32>, vector<32x8xf32>, vector<16x8xf32> -> vector<16x8xf32>
    %c1_336 = arith.constant 1 : index
    %c3_337 = arith.constant 3 : index
    %c0_338 = arith.constant 0 : index
    %c0_339 = arith.constant 0 : index
    %418 = vector.load %arg8[%c1_336, %c3_337, %c0_338, %c0_339] : memref<2x4x1x8xf32, #tpu.memory_space<vmem>>, vector<1x1x1x8xf32>
    %419 = vector.shape_cast %418 : vector<1x1x1x8xf32> to vector<1x8xf32>
    %420 = vector.broadcast %419 : vector<1x8xf32> to vector<16x8xf32>
    %421 = arith.addf %417, %420 : vector<16x8xf32>
    %c1_340 = arith.constant 1 : index
    %c3_341 = arith.constant 3 : index
    %c0_342 = arith.constant 0 : index
    %c0_343 = arith.constant 0 : index
    %422 = vector.load %arg9[%c1_340, %c3_341, %c0_342, %c0_343] : memref<2x4x32x8xf32, #tpu.memory_space<vmem>>, vector<1x1x32x8xf32>
    %423 = vector.shape_cast %422 : vector<1x1x32x8xf32> to vector<32x8xf32>
    %cst_344 = arith.constant dense<0.000000e+00> : vector<16x8xf32>
    %424 = tpu.matmul %286, %423, %cst_344 {dimension_numbers = #tpu.dot_dimension_numbers<[1], [0], [0], [1], [0, 0, 1, 1], [], []>} : vector<16x32xf32>, vector<32x8xf32>, vector<16x8xf32> -> vector<16x8xf32>
    %c1_345 = arith.constant 1 : index
    %c3_346 = arith.constant 3 : index
    %c0_347 = arith.constant 0 : index
    %c0_348 = arith.constant 0 : index
    %425 = vector.load %arg10[%c1_345, %c3_346, %c0_347, %c0_348] : memref<2x4x1x8xf32, #tpu.memory_space<vmem>>, vector<1x1x1x8xf32>
    %426 = vector.shape_cast %425 : vector<1x1x1x8xf32> to vector<1x8xf32>
    %427 = vector.broadcast %426 : vector<1x8xf32> to vector<16x8xf32>
    %428 = arith.addf %424, %427 : vector<16x8xf32>
    %c1_349 = arith.constant 1 : index
    %c3_350 = arith.constant 3 : index
    %c0_351 = arith.constant 0 : index
    %c0_352 = arith.constant 0 : index
    %429 = vector.load %arg11[%c1_349, %c3_350, %c0_351, %c0_352] : memref<2x4x32x8xf32, #tpu.memory_space<vmem>>, vector<1x1x32x8xf32>
    %430 = vector.shape_cast %429 : vector<1x1x32x8xf32> to vector<32x8xf32>
    %cst_353 = arith.constant dense<0.000000e+00> : vector<16x8xf32>
    %431 = tpu.matmul %286, %430, %cst_353 {dimension_numbers = #tpu.dot_dimension_numbers<[1], [0], [0], [1], [0, 0, 1, 1], [], []>} : vector<16x32xf32>, vector<32x8xf32>, vector<16x8xf32> -> vector<16x8xf32>
    %c1_354 = arith.constant 1 : index
    %c3_355 = arith.constant 3 : index
    %c0_356 = arith.constant 0 : index
    %c0_357 = arith.constant 0 : index
    %432 = vector.load %arg12[%c1_354, %c3_355, %c0_356, %c0_357] : memref<2x4x1x8xf32, #tpu.memory_space<vmem>>, vector<1x1x1x8xf32>
    %433 = vector.shape_cast %432 : vector<1x1x1x8xf32> to vector<1x8xf32>
    %434 = vector.broadcast %433 : vector<1x8xf32> to vector<16x8xf32>
    %435 = arith.addf %431, %434 : vector<16x8xf32>
    %cst_358 = arith.constant dense<0.000000e+00> : vector<16x16xf32>
    %436 = tpu.matmul %421, %428, %cst_358 {dimension_numbers = #tpu.dot_dimension_numbers<[1], [1], [0], [0], [0, 0, 1, 0], [], []>} : vector<16x8xf32>, vector<16x8xf32>, vector<16x16xf32> -> vector<16x16xf32>
    %cst_359 = arith.constant 0.353553385 : f32
    %437 = vector.broadcast %cst_359 : f32 to vector<16x16xf32>
    %438 = arith.mulf %436, %437 : vector<16x16xf32>
    %cst_360 = arith.constant 0.000000e+00 : f32
    %439 = vector.broadcast %cst_360 : f32 to vector<16x16xf32>
    %440 = arith.cmpf ogt, %3, %439 : vector<16x16xf32>
    %cst_361 = arith.constant -1.000000e+09 : f32
    %441 = vector.broadcast %cst_361 : f32 to vector<16x16xf32>
    %442 = arith.select %440, %438, %441 : vector<16x16xi1>, vector<16x16xf32>
    %cst_362 = arith.constant dense<0xFF800000> : vector<16xf32>
    %443 = vector.multi_reduction <maximumf>, %442, %cst_362 [1] : vector<16x16xf32> to vector<16xf32>
    %444 = vector.shape_cast %443 : vector<16xf32> to vector<16x1xf32>
    %445 = vector.broadcast %444 : vector<16x1xf32> to vector<16x16xf32>
    %446 = arith.subf %442, %445 : vector<16x16xf32>
    %447 = math.exp %446 : vector<16x16xf32>
    %cst_363 = arith.constant dense<0.000000e+00> : vector<16xf32>
    %448 = vector.multi_reduction <add>, %447, %cst_363 [1] : vector<16x16xf32> to vector<16xf32>
    %449 = vector.shape_cast %448 : vector<16xf32> to vector<16x1xf32>
    %450 = tpu.reciprocal %449 {approx = true} : vector<16x1xf32> -> vector<16x1xf32>
    %451 = vector.broadcast %450 : vector<16x1xf32> to vector<16x16xf32>
    %452 = arith.mulf %447, %451 : vector<16x16xf32>
    %cst_364 = arith.constant dense<0.000000e+00> : vector<16x8xf32>
    %453 = tpu.matmul %452, %435, %cst_364 {dimension_numbers = #tpu.dot_dimension_numbers<[1], [0], [0], [1], [0, 0, 1, 1], [], []>} : vector<16x16xf32>, vector<16x8xf32>, vector<16x8xf32> -> vector<16x8xf32>
    %c1_365 = arith.constant 1 : index
    %c3_366 = arith.constant 3 : index
    %c0_367 = arith.constant 0 : index
    %c0_368 = arith.constant 0 : index
    %454 = vector.load %arg13[%c1_365, %c3_366, %c0_367, %c0_368] : memref<2x4x8x32xf32, #tpu.memory_space<vmem>>, vector<1x1x8x32xf32>
    %455 = vector.shape_cast %454 : vector<1x1x8x32xf32> to vector<8x32xf32>
    %cst_369 = arith.constant dense<0.000000e+00> : vector<16x32xf32>
    %456 = tpu.matmul %453, %455, %cst_369 {dimension_numbers = #tpu.dot_dimension_numbers<[1], [0], [0], [1], [0, 0, 1, 1], [], []>} : vector<16x8xf32>, vector<8x32xf32>, vector<16x32xf32> -> vector<16x32xf32>
    %457 = arith.addf %414, %456 : vector<16x32xf32>
    %c1_370 = arith.constant 1 : index
    %c0_371 = arith.constant 0 : index
    %c0_372 = arith.constant 0 : index
    %458 = vector.load %arg14[%c1_370, %c0_371, %c0_372] : memref<2x1x32xf32, #tpu.memory_space<vmem>>, vector<1x1x32xf32>
    %459 = vector.shape_cast %458 : vector<1x1x32xf32> to vector<1x32xf32>
    %460 = vector.broadcast %459 : vector<1x32xf32> to vector<16x32xf32>
    %461 = arith.addf %457, %460 : vector<16x32xf32>
    %462 = arith.addf %461, %286 : vector<16x32xf32>
    %c1_373 = arith.constant 1 : index
    %c0_374 = arith.constant 0 : index
    %c0_375 = arith.constant 0 : index
    %463 = vector.load %arg15[%c1_373, %c0_374, %c0_375] : memref<2x1x32xf32, #tpu.memory_space<vmem>>, vector<1x1x32xf32>
    %464 = vector.shape_cast %463 : vector<1x1x32xf32> to vector<1x32xf32>
    %c1_376 = arith.constant 1 : index
    %c0_377 = arith.constant 0 : index
    %c0_378 = arith.constant 0 : index
    %465 = vector.load %arg16[%c1_376, %c0_377, %c0_378] : memref<2x1x32xf32, #tpu.memory_space<vmem>>, vector<1x1x32xf32>
    %466 = vector.shape_cast %465 : vector<1x1x32xf32> to vector<1x32xf32>
    %cst_379 = arith.constant dense<0.000000e+00> : vector<16xf32>
    %467 = vector.multi_reduction <add>, %462, %cst_379 [1] : vector<16x32xf32> to vector<16xf32>
    %468 = vector.shape_cast %467 : vector<16xf32> to vector<16x1xf32>
    %cst_380 = arith.constant 3.200000e+01 : f32
    %469 = vector.broadcast %cst_380 : f32 to vector<16x1xf32>
    %470 = arith.divf %468, %469 : vector<16x1xf32>
    %471 = vector.broadcast %470 : vector<16x1xf32> to vector<16x32xf32>
    %472 = arith.subf %462, %471 : vector<16x32xf32>
    %473 = arith.mulf %472, %472 : vector<16x32xf32>
    %cst_381 = arith.constant dense<0.000000e+00> : vector<16xf32>
    %474 = vector.multi_reduction <add>, %473, %cst_381 [1] : vector<16x32xf32> to vector<16xf32>
    %475 = vector.shape_cast %474 : vector<16xf32> to vector<16x1xf32>
    %cst_382 = arith.constant 3.200000e+01 : f32
    %476 = vector.broadcast %cst_382 : f32 to vector<16x1xf32>
    %477 = arith.divf %475, %476 : vector<16x1xf32>
    %cst_383 = arith.constant 9.99999996E-13 : f32
    %478 = vector.broadcast %cst_383 : f32 to vector<16x1xf32>
    %479 = arith.addf %477, %478 : vector<16x1xf32>
    %480 = math.rsqrt %479 : vector<16x1xf32>
    %481 = vector.broadcast %480 : vector<16x1xf32> to vector<16x32xf32>
    %482 = arith.mulf %472, %481 : vector<16x32xf32>
    %483 = vector.broadcast %464 : vector<1x32xf32> to vector<16x32xf32>
    %484 = arith.mulf %482, %483 : vector<16x32xf32>
    %485 = vector.broadcast %466 : vector<1x32xf32> to vector<16x32xf32>
    %486 = arith.addf %484, %485 : vector<16x32xf32>
    %c1_384 = arith.constant 1 : index
    %c0_385 = arith.constant 0 : index
    %c0_386 = arith.constant 0 : index
    %487 = vector.load %arg17[%c1_384, %c0_385, %c0_386] : memref<2x32x64xf32, #tpu.memory_space<vmem>>, vector<1x32x64xf32>
    %488 = vector.shape_cast %487 : vector<1x32x64xf32> to vector<32x64xf32>
    %cst_387 = arith.constant dense<0.000000e+00> : vector<16x64xf32>
    %489 = tpu.matmul %486, %488, %cst_387 {dimension_numbers = #tpu.dot_dimension_numbers<[1], [0], [0], [1], [0, 0, 1, 1], [], []>} : vector<16x32xf32>, vector<32x64xf32>, vector<16x64xf32> -> vector<16x64xf32>
    %c1_388 = arith.constant 1 : index
    %c0_389 = arith.constant 0 : index
    %c0_390 = arith.constant 0 : index
    %490 = vector.load %arg18[%c1_388, %c0_389, %c0_390] : memref<2x1x64xf32, #tpu.memory_space<vmem>>, vector<1x1x64xf32>
    %491 = vector.shape_cast %490 : vector<1x1x64xf32> to vector<1x64xf32>
    %492 = vector.broadcast %491 : vector<1x64xf32> to vector<16x64xf32>
    %493 = arith.addf %489, %492 : vector<16x64xf32>
    %494 = arith.mulf %493, %493 : vector<16x64xf32>
    %495 = arith.mulf %493, %494 : vector<16x64xf32>
    %cst_391 = arith.constant 4.471500e-02 : f32
    %496 = vector.broadcast %cst_391 : f32 to vector<16x64xf32>
    %497 = arith.mulf %496, %495 : vector<16x64xf32>
    %498 = arith.addf %493, %497 : vector<16x64xf32>
    %cst_392 = arith.constant 0.797884583 : f32
    %499 = vector.broadcast %cst_392 : f32 to vector<16x64xf32>
    %500 = arith.mulf %499, %498 : vector<16x64xf32>
    %501 = math.tanh %500 : vector<16x64xf32>
    %cst_393 = arith.constant 1.000000e+00 : f32
    %502 = vector.broadcast %cst_393 : f32 to vector<16x64xf32>
    %503 = arith.addf %502, %501 : vector<16x64xf32>
    %cst_394 = arith.constant 5.000000e-01 : f32
    %504 = vector.broadcast %cst_394 : f32 to vector<16x64xf32>
    %505 = arith.mulf %504, %503 : vector<16x64xf32>
    %506 = arith.mulf %493, %505 : vector<16x64xf32>
    %c1_395 = arith.constant 1 : index
    %c0_396 = arith.constant 0 : index
    %c0_397 = arith.constant 0 : index
    %507 = vector.load %arg19[%c1_395, %c0_396, %c0_397] : memref<2x64x32xf32, #tpu.memory_space<vmem>>, vector<1x64x32xf32>
    %508 = vector.shape_cast %507 : vector<1x64x32xf32> to vector<64x32xf32>
    %cst_398 = arith.constant dense<0.000000e+00> : vector<16x32xf32>
    %509 = tpu.matmul %506, %508, %cst_398 {dimension_numbers = #tpu.dot_dimension_numbers<[1], [0], [0], [1], [0, 0, 1, 1], [], []>} : vector<16x64xf32>, vector<64x32xf32>, vector<16x32xf32> -> vector<16x32xf32>
    %c1_399 = arith.constant 1 : index
    %c0_400 = arith.constant 0 : index
    %c0_401 = arith.constant 0 : index
    %510 = vector.load %arg20[%c1_399, %c0_400, %c0_401] : memref<2x1x32xf32, #tpu.memory_space<vmem>>, vector<1x1x32xf32>
    %511 = vector.shape_cast %510 : vector<1x1x32xf32> to vector<1x32xf32>
    %512 = vector.broadcast %511 : vector<1x32xf32> to vector<16x32xf32>
    %513 = arith.addf %509, %512 : vector<16x32xf32>
    %514 = arith.addf %513, %486 : vector<16x32xf32>
    %c1_402 = arith.constant 1 : index
    %c0_403 = arith.constant 0 : index
    %c0_404 = arith.constant 0 : index
    %515 = vector.load %arg21[%c1_402, %c0_403, %c0_404] : memref<2x1x32xf32, #tpu.memory_space<vmem>>, vector<1x1x32xf32>
    %516 = vector.shape_cast %515 : vector<1x1x32xf32> to vector<1x32xf32>
    %c1_405 = arith.constant 1 : index
    %c0_406 = arith.constant 0 : index
    %c0_407 = arith.constant 0 : index
    %517 = vector.load %arg22[%c1_405, %c0_406, %c0_407] : memref<2x1x32xf32, #tpu.memory_space<vmem>>, vector<1x1x32xf32>
    %518 = vector.shape_cast %517 : vector<1x1x32xf32> to vector<1x32xf32>
    %cst_408 = arith.constant dense<0.000000e+00> : vector<16xf32>
    %519 = vector.multi_reduction <add>, %514, %cst_408 [1] : vector<16x32xf32> to vector<16xf32>
    %520 = vector.shape_cast %519 : vector<16xf32> to vector<16x1xf32>
    %cst_409 = arith.constant 3.200000e+01 : f32
    %521 = vector.broadcast %cst_409 : f32 to vector<16x1xf32>
    %522 = arith.divf %520, %521 : vector<16x1xf32>
    %523 = vector.broadcast %522 : vector<16x1xf32> to vector<16x32xf32>
    %524 = arith.subf %514, %523 : vector<16x32xf32>
    %525 = arith.mulf %524, %524 : vector<16x32xf32>
    %cst_410 = arith.constant dense<0.000000e+00> : vector<16xf32>
    %526 = vector.multi_reduction <add>, %525, %cst_410 [1] : vector<16x32xf32> to vector<16xf32>
    %527 = vector.shape_cast %526 : vector<16xf32> to vector<16x1xf32>
    %cst_411 = arith.constant 3.200000e+01 : f32
    %528 = vector.broadcast %cst_411 : f32 to vector<16x1xf32>
    %529 = arith.divf %527, %528 : vector<16x1xf32>
    %cst_412 = arith.constant 9.99999996E-13 : f32
    %530 = vector.broadcast %cst_412 : f32 to vector<16x1xf32>
    %531 = arith.addf %529, %530 : vector<16x1xf32>
    %532 = math.rsqrt %531 : vector<16x1xf32>
    %533 = vector.broadcast %532 : vector<16x1xf32> to vector<16x32xf32>
    %534 = arith.mulf %524, %533 : vector<16x32xf32>
    %535 = vector.broadcast %516 : vector<1x32xf32> to vector<16x32xf32>
    %536 = arith.mulf %534, %535 : vector<16x32xf32>
    %537 = vector.broadcast %518 : vector<1x32xf32> to vector<16x32xf32>
    %538 = arith.addf %536, %537 : vector<16x32xf32>
    %c0_413 = arith.constant 0 : index
    %c0_414 = arith.constant 0 : index
    %c0_415 = arith.constant 0 : index
    %539 = vector.load %arg23[%c0_413, %c0_414, %c0_415] : memref<1x16x32xf32, #tpu.memory_space<vmem>>, vector<1x16x32xf32>
    %540 = vector.shape_cast %539 : vector<1x16x32xf32> to vector<16x32xf32>
    %541 = vector.shape_cast %538 : vector<16x32xf32> to vector<1x16x32xf32>
    tpu.vector_store %arg23[%c0_413, %c0_414, %c0_415], %541 {strides = array<i32>} : memref<1x16x32xf32, #tpu.memory_space<vmem>>, vector<1x16x32xf32>,
    return
  }
  func.func @transform_0(%arg0: i32) -> (i32, i32, i32) {
    %c0_i32 = arith.constant 0 : i32
    %c0_i32_0 = arith.constant 0 : i32
    %c0_i32_1 = arith.constant 0 : i32
    return %arg0, %c0_i32, %c0_i32_0 : i32, i32, i32
  }
  func.func @transform_1(%arg0: i32) -> (i32, i32, i32) {
    %c0_i32 = arith.constant 0 : i32
    %c0_i32_0 = arith.constant 0 : i32
    %c0_i32_1 = arith.constant 0 : i32
    return %arg0, %c0_i32, %c0_i32_0 : i32, i32, i32
  }
  func.func @transform_2(%arg0: i32) -> (i32, i32) {
    %c0_i32 = arith.constant 0 : i32
    %c0_i32_0 = arith.constant 0 : i32
    %c0_i32_1 = arith.constant 0 : i32
    return %c0_i32, %c0_i32_0 : i32, i32
  }
  func.func @transform_3(%arg0: i32) -> (i32, i32) {
    %c0_i32 = arith.constant 0 : i32
    %c0_i32_0 = arith.constant 0 : i32
    %c0_i32_1 = arith.constant 0 : i32
    return %c0_i32, %c0_i32_0 : i32, i32
  }
  func.func @transform_4(%arg0: i32) -> (i32, i32) {
    %c0_i32 = arith.constant 0 : i32
    %c0_i32_0 = arith.constant 0 : i32
    %c0_i32_1 = arith.constant 0 : i32
    return %c0_i32, %c0_i32_0 : i32, i32
  }
  func.func @transform_5(%arg0: i32) -> (i32, i32) {
    %c0_i32 = arith.constant 0 : i32
    %c0_i32_0 = arith.constant 0 : i32
    %c0_i32_1 = arith.constant 0 : i32
    return %c0_i32, %c0_i32_0 : i32, i32
  }
  func.func @transform_6(%arg0: i32) -> (i32, i32, i32, i32) {
    %c0_i32 = arith.constant 0 : i32
    %c0_i32_0 = arith.constant 0 : i32
    %c0_i32_1 = arith.constant 0 : i32
    %c0_i32_2 = arith.constant 0 : i32
    %c0_i32_3 = arith.constant 0 : i32
    return %c0_i32, %c0_i32_0, %c0_i32_1, %c0_i32_2 : i32, i32, i32, i32
  }
  func.func @transform_7(%arg0: i32) -> (i32, i32, i32, i32) {
    %c0_i32 = arith.constant 0 : i32
    %c0_i32_0 = arith.constant 0 : i32
    %c0_i32_1 = arith.constant 0 : i32
    %c0_i32_2 = arith.constant 0 : i32
    %c0_i32_3 = arith.constant 0 : i32
    return %c0_i32, %c0_i32_0, %c0_i32_1, %c0_i32_2 : i32, i32, i32, i32
  }
  func.func @transform_8(%arg0: i32) -> (i32, i32, i32, i32) {
    %c0_i32 = arith.constant 0 : i32
    %c0_i32_0 = arith.constant 0 : i32
    %c0_i32_1 = arith.constant 0 : i32
    %c0_i32_2 = arith.constant 0 : i32
    %c0_i32_3 = arith.constant 0 : i32
    return %c0_i32, %c0_i32_0, %c0_i32_1, %c0_i32_2 : i32, i32, i32, i32
  }
  func.func @transform_9(%arg0: i32) -> (i32, i32, i32, i32) {
    %c0_i32 = arith.constant 0 : i32
    %c0_i32_0 = arith.constant 0 : i32
    %c0_i32_1 = arith.constant 0 : i32
    %c0_i32_2 = arith.constant 0 : i32
    %c0_i32_3 = arith.constant 0 : i32
    return %c0_i32, %c0_i32_0, %c0_i32_1, %c0_i32_2 : i32, i32, i32, i32
  }
  func.func @transform_10(%arg0: i32) -> (i32, i32, i32, i32) {
    %c0_i32 = arith.constant 0 : i32
    %c0_i32_0 = arith.constant 0 : i32
    %c0_i32_1 = arith.constant 0 : i32
    %c0_i32_2 = arith.constant 0 : i32
    %c0_i32_3 = arith.constant 0 : i32
    return %c0_i32, %c0_i32_0, %c0_i32_1, %c0_i32_2 : i32, i32, i32, i32
  }
  func.func @transform_11(%arg0: i32) -> (i32, i32, i32, i32) {
    %c0_i32 = arith.constant 0 : i32
    %c0_i32_0 = arith.constant 0 : i32
    %c0_i32_1 = arith.constant 0 : i32
    %c0_i32_2 = arith.constant 0 : i32
    %c0_i32_3 = arith.constant 0 : i32
    return %c0_i32, %c0_i32_0, %c0_i32_1, %c0_i32_2 : i32, i32, i32, i32
  }
  func.func @transform_12(%arg0: i32) -> (i32, i32, i32, i32) {
    %c0_i32 = arith.constant 0 : i32
    %c0_i32_0 = arith.constant 0 : i32
    %c0_i32_1 = arith.constant 0 : i32
    %c0_i32_2 = arith.constant 0 : i32
    %c0_i32_3 = arith.constant 0 : i32
    return %c0_i32, %c0_i32_0, %c0_i32_1, %c0_i32_2 : i32, i32, i32, i32
  }
  func.func @transform_13(%arg0: i32) -> (i32, i32, i32) {
    %c0_i32 = arith.constant 0 : i32
    %c0_i32_0 = arith.constant 0 : i32
    %c0_i32_1 = arith.constant 0 : i32
    %c0_i32_2 = arith.constant 0 : i32
    return %c0_i32, %c0_i32_0, %c0_i32_1 : i32, i32, i32
  }
  func.func @transform_14(%arg0: i32) -> (i32, i32, i32) {
    %c0_i32 = arith.constant 0 : i32
    %c0_i32_0 = arith.constant 0 : i32
    %c0_i32_1 = arith.constant 0 : i32
    %c0_i32_2 = arith.constant 0 : i32
    return %c0_i32, %c0_i32_0, %c0_i32_1 : i32, i32, i32
  }
  func.func @transform_15(%arg0: i32) -> (i32, i32, i32) {
    %c0_i32 = arith.constant 0 : i32
    %c0_i32_0 = arith.constant 0 : i32
    %c0_i32_1 = arith.constant 0 : i32
    %c0_i32_2 = arith.constant 0 : i32
    return %c0_i32, %c0_i32_0, %c0_i32_1 : i32, i32, i32
  }
  func.func @transform_16(%arg0: i32) -> (i32, i32, i32) {
    %c0_i32 = arith.constant 0 : i32
    %c0_i32_0 = arith.constant 0 : i32
    %c0_i32_1 = arith.constant 0 : i32
    %c0_i32_2 = arith.constant 0 : i32
    return %c0_i32, %c0_i32_0, %c0_i32_1 : i32, i32, i32
  }
  func.func @transform_17(%arg0: i32) -> (i32, i32, i32) {
    %c0_i32 = arith.constant 0 : i32
    %c0_i32_0 = arith.constant 0 : i32
    %c0_i32_1 = arith.constant 0 : i32
    %c0_i32_2 = arith.constant 0 : i32
    return %c0_i32, %c0_i32_0, %c0_i32_1 : i32, i32, i32
  }
  func.func @transform_18(%arg0: i32) -> (i32, i32, i32) {
    %c0_i32 = arith.constant 0 : i32
    %c0_i32_0 = arith.constant 0 : i32
    %c0_i32_1 = arith.constant 0 : i32
    %c0_i32_2 = arith.constant 0 : i32
    return %c0_i32, %c0_i32_0, %c0_i32_1 : i32, i32, i32
  }
  func.func @transform_19(%arg0: i32) -> (i32, i32, i32) {
    %c0_i32 = arith.constant 0 : i32
    %c0_i32_0 = arith.constant 0 : i32
    %c0_i32_1 = arith.constant 0 : i32
    %c0_i32_2 = arith.constant 0 : i32
    return %c0_i32, %c0_i32_0, %c0_i32_1 : i32, i32, i32
  }
  func.func @transform_20(%arg0: i32) -> (i32, i32, i32) {
    %c0_i32 = arith.constant 0 : i32
    %c0_i32_0 = arith.constant 0 : i32
    %c0_i32_1 = arith.constant 0 : i32
    %c0_i32_2 = arith.constant 0 : i32
    return %c0_i32, %c0_i32_0, %c0_i32_1 : i32, i32, i32
  }
  func.func @transform_21(%arg0: i32) -> (i32, i32, i32) {
    %c0_i32 = arith.constant 0 : i32
    %c0_i32_0 = arith.constant 0 : i32
    %c0_i32_1 = arith.constant 0 : i32
    %c0_i32_2 = arith.constant 0 : i32
    return %c0_i32, %c0_i32_0, %c0_i32_1 : i32, i32, i32
  }
  func.func @transform_22(%arg0: i32) -> (i32, i32, i32) {
    %c0_i32 = arith.constant 0 : i32
    %c0_i32_0 = arith.constant 0 : i32
    %c0_i32_1 = arith.constant 0 : i32
    return %arg0, %c0_i32, %c0_i32_0 : i32, i32, i32
  }
}

</mosaic_0001>

<bundles_post_ra>
// kernel: forward.3
= control target key start
LH: loop header
LB: loop body
LE: loop exit
PB: predicated region body
PF: predicated region fallthrough
CT: control target
= control target key end

     0   :  { %v769_v1 = vmov 0.0   ;;  %vm770_vm0 = vmmov 0   ;;  %vm104_vm1 = vcmask 123904   ;;  %s931_s0 = inlined_call_operand.vmem [shape: f32[2,16,32], index: 0, kind: input, shape index: {}]   ;;  %s932_s1 = inlined_call_operand.vmem [shape: f32[2,2,16], index: 1, kind: input, shape index: {}]   ;;  %s933_s2 = inlined_call_operand.vmem [shape: f32[4,32,32], index: 2, kind: input, shape index: {}]   ;;  %s934_s3 = inlined_call_operand.vmem [shape: f32[1,32], index: 3, kind: input, shape index: {}]   ;;  %s935_s4 = inlined_call_operand.vmem [shape: f32[32,3], index: 4, kind: input, shape index: {}]   ;;  %s936_s5 = inlined_call_operand.vmem [shape: f32[1,3], index: 5, kind: input, shape index: {}]   ;;  %s937_s6 = inlined_call_operand.hbm [shape: f32[2,3], index: 6, kind: output, shape index: {}]  }
   0x1   :  { %v615_v0 = vld [vmem:[%s931_s0 + $0x18] sm:$0xff]  ;;  %669 = vmatprep.subr.mxu1 %v769_v1  ;;  %v614_v2 = vld [vmem:[%s931_s0 + $0x10] sm:$0xff]  ;;  %673 = vmatprep.mubr.msk.f32.mxu1 %vm770_vm0, %v769_v1  ;;  %v616_v3 = vld [vmem:[%s932_s1 + $0x2] sm:$0x3] }
   0x2   :  { %11 = vsyncpa [#allocation3], 0  ;;  %670 = vmatpush3.msra.mxu1 %v615_v0  ;;  %v27_v4 = vld [vmem:[%s932_s1] sm:$0x3]  ;;  %vm30_vm2 = vcmask 130048   ;;  %v183_v5 = vsel %vm104_vm1, %v616_v3, 0.0  ;;  %683 = vmatprep.subr.mxu0 %v769_v1 }
   0x3   :  { %671 = vmatprep.subr.mxu1 %v769_v1  ;;  %184 = vadd.xlane.f32.xlu0 %v183_v5  ;;  %v105_v6 = vsel %vm104_vm1, %v27_v4, 0.0  ;;  %v191_v7 = vld [vmem:[%s933_s2 + $0x18] sm:$0xff]  ;;  %v190_v8 = vld [vmem:[%s933_s2 + $0x10] sm:$0xff]  ;;  %v189_v10 = vld [vmem:[%s933_s2 + $0x8] sm:$0xff]  ;;  %vm197_vm3 = vcmask 261120   ;;  %s771_s19 = smov [#allocation2]  }
   0x4   :  { %672 = vmatpush3.msra.mxu1 %v614_v2  ;;  %691 = vmatprep.mubr.msk.f32.mxu0 %vm770_vm0, %v769_v1  ;;  %v622_v9 = vld [vmem:[%s933_s2 + $0x38] sm:$0xff]  ;;  %v621_v11 = vld [vmem:[%s933_s2 + $0x30] sm:$0xff]  ;;  %v188_v12 = vld [vmem:[%s933_s2] sm:$0xff]  ;;  %s606_s20 = sshll.u32 %s771_s19, 4  ;;  %vm598_vm4 = vcmask 17408   ;;  %s607_s20 = int_to_ptr.vmem [resolvable:$true] %s606_s20 }
   0x5   :  { %674 = vmatmul.mubr.msk.f32.vlgmr.msra.gmra.mxu1 %vm30_vm2, %v27_v4  ;;  %676 = vmatprep.subr.mxu1 %v769_v1  ;;  %v620_v13 = vld [vmem:[%s933_s2 + $0x28] sm:$0xff]  ;;  %v619_v14 = vld [vmem:[%s933_s2 + $0x20] sm:$0xff]  ;;  %v633_v20 = vld [vmem:[%s933_s2 + $0x78] sm:$0xff]  ;;  %p752_p1 = scmp.lt.s32.totalorder %s607_s20, %s607_s20 }
   0x6   :  { %677 = vmatpush3.msra.mxu1 %v615_v0  ;;  %680 = vmatprep.mubr.msk.f32.mxu1 %vm770_vm0, %v769_v1  ;;  %v632_v22 = vld [vmem:[%s933_s2 + $0x70] sm:$0xff]  ;;  %v628_v26 = vld [vmem:[%s933_s2 + $0x58] sm:$0xff]  ;;  %v631_v27 = vld [vmem:[%s933_s2 + $0x68] sm:$0xff] }
   0x7   :  { %678 = vmatprep.subr.mxu1 %v769_v1  ;;  %106 = vadd.xlane.f32.xlu0 %v105_v6  ;;  %v627_v30 = vld [vmem:[%s933_s2 + $0x50] sm:$0xff]  ;;  %v630_v31 = vld [vmem:[%s933_s2 + $0x60] sm:$0xff]  ;;  %v626_v33 = vld [vmem:[%s933_s2 + $0x48] sm:$0xff] }
   0x8   :  { %679 = vmatpush3.msra.mxu1 %v614_v2  ;;  %684 = vmatpush3.msra.mxu0 %v622_v9  ;;  %v625_v34 = vld [vmem:[%s933_s2 + $0x40] sm:$0xff]  ;;  %v517_v36 = vld [vmem:[%s935_s4 + $0x18] sm:$0xff]  ;;  %v516_v37 = vld [vmem:[%s935_s4 + $0x10] sm:$0xff] }
   0x9   :  { %681 = vmatmul.mubr.msk.f32.vlgmr.msra.gmra.mxu1 %vm30_vm2, %v616_v3  ;;  %694 = vmatprep.subr.mxu1 %v769_v1  ;;  %v515_v38 = vld [vmem:[%s935_s4 + $0x8] sm:$0xff]  ;;  %v514_v39 = vld [vmem:[%s935_s4] sm:$0xff] }
   0xa   :  { %702 = vmatprep.mubr.msk.f32.mxu1 %vm770_vm0, %v769_v1  ;;  %695 = vmatpush3.msra.mxu1 %v191_v7  ;;  %v635_v49 = vld [vmem:[%s934_s3] ss:$0 sm:$0xff]  ;;  %s747_s3 = scalar_lea.vmem %s607_s20, 32 }
   0xb   :  { %696 = vmatprep.subr.mxu1 %v769_v1  ;;  %685 = vmatprep.subr.mxu0 %v769_v1  ;;  %v636_v54 = vld [vmem:[%s936_s5] ss:$0 sm:$0xff]  ;;  %p748_p0 = scmp.ne.s32.totalorder %s607_s20, %s747_s3  ;;  %p753_p2 = scmp.lt.s32.totalorder %s747_s3, %s747_s3 }
   0xc   :  { %697 = vmatpush3.msra.mxu1 %v190_v8  ;;  %686 = vmatpush3.msra.mxu0 %v621_v11 }
   0xd   :  { %698 = vmatprep.subr.mxu1 %v769_v1  ;;  %687 = vmatprep.subr.mxu0 %v769_v1  ;;  %p754_p3 = por %p753_p2, %p752_p1 }
   0xe   :  { %699 = vmatpush3.msra.mxu1 %v189_v10  ;;  %688 = vmatpush3.msra.mxu0 %v620_v13 }
   0xf   :  { %700 = vmatprep.subr.mxu1 %v769_v1  ;;  %689 = vmatprep.subr.mxu0 %v769_v1  ;;  %p755_p4 = pnand %p754_p3, %p748_p0 }
  0x10   :  { %701 = vmatpush3.msra.mxu1 %v188_v12  ;;  %690 = vmatpush3.msra.mxu0 %v619_v14 }
  0x11   :  { %716 = vmatprep.subr.mxu1 %v769_v1  ;;  %705 = vmatprep.subr.mxu0 %v769_v1 }
  0x8c   :  { %v185_v15 = vpop.xlane.xlu0 %184 }
  0x90   :  { %v107_v16 = vpop.xlane.xlu0 %106 }
  0x91   :  { %741 = vrcp.f32 %v107_v16 }
  0x92   :  { %743 = vrcp.f32 %v185_v15 }
  0x9e   :  { %v742_v17 = vpop.eup %741 }
  0x9f   :  { %v744_v23 = vpop.eup %743 }
  0xc5   :  { %v100_v18 = vpop.f32.mrf.mxu1 }
  0xc6   :  { %v109_v19 = vmul.f32 %v742_v17, %v100_v18 }
  0xc7   :  { %v675_v21 = vpop.f32.mrf.mxu1 }
  0xc8   :  { %703 = vmatmul.mubr.msk.f32.vlgmr.msra.gmra.mxu1 %vm197_vm3, %v109_v19 }
  0xc9   :  { %v179_v24 = vpop.f32.mrf.mxu1  ;;  %717 = vmatpush3.msra.mxu1 %v633_v20  ;;  %724 = vmatprep.mubr.msk.f32.mxu1 %vm770_vm0, %v769_v1 }
  0xca   :  { %v187_v25 = vmul.f32 %v744_v23, %v179_v24  ;;  %718 = vmatprep.subr.mxu1 %v769_v1 }
  0xcb   :  { %v682_v28 = vpop.f32.mrf.mxu1  ;;  %719 = vmatpush3.msra.mxu1 %v632_v22 }
  0xcc   :  { %v424_v29 = vsub.f32 %v109_v19, %v187_v25  ;;  %692 = vmatmul.mubr.msk.f32.vlgmr.msra.gmra.mxu0 %vm197_vm3, %v187_v25  ;;  %720 = vmatprep.subr.mxu1 %v769_v1  ;;  %v344_v35 = vmul.f32 %v187_v25, %v109_v19 }
  0xcd   :  { %706 = vmatpush3.msra.mxu0 %v628_v26  ;;  %721 = vmatpush3.msra.mxu1 %v631_v27 }
  0xce   :  { %v425_v32 = vand.u32 2147483647, %v424_v29  ;;  %707 = vmatprep.subr.mxu0 %v769_v1  ;;  %722 = vmatprep.subr.mxu1 %v769_v1 }
  0xcf   :  { %708 = vmatpush3.msra.mxu0 %v627_v30  ;;  %723 = vmatpush3.msra.mxu1 %v630_v31 }
  0xd0   :  { %709 = vmatprep.subr.mxu0 %v769_v1  ;;  %725 = vmatmul.mubr.msk.f32.vlgmr.msra.gmra.mxu1 %vm197_vm3, %v425_v32 }
  0xd1   :  { %710 = vmatpush3.msra.mxu0 %v626_v33  ;;  %713 = vmatprep.mubr.msk.f32.mxu0 %vm770_vm0, %v769_v1 }
  0xd2   :  { %711 = vmatprep.subr.mxu0 %v769_v1 }
  0xd3   :  { %712 = vmatpush3.msra.mxu0 %v625_v34 }
  0xd4   :  { %714 = vmatmul.mubr.msk.f32.vlgmr.msra.gmra.mxu0 %vm197_vm3, %v344_v35  ;;  %727 = vmatprep.subr.mxu0 %v769_v1 }
  0xd5   :  { %735 = vmatprep.mubr.msk.f32.mxu0 %vm770_vm0, %v769_v1  ;;  %728 = vmatpush3.msra.mxu0 %v517_v36 }
  0xd6   :  { %729 = vmatprep.subr.mxu0 %v769_v1 }
  0xd7   :  { %730 = vmatpush3.msra.mxu0 %v516_v37 }
  0xd8   :  { %731 = vmatprep.subr.mxu0 %v769_v1 }
  0xd9   :  { %732 = vmatpush3.msra.mxu0 %v515_v38 }
  0xda   :  { %733 = vmatprep.subr.mxu0 %v769_v1 }
  0xdb   :  { %734 = vmatpush3.msra.mxu0 %v514_v39 }
 0x188   :  { %v340_v40 = vpop.f32.mrf.mxu1 }
 0x18a   :  { %v704_v41 = vpop.f32.mrf.mxu1 }
 0x18c   :  { %v267_v42 = vpop.f32.mrf.mxu0 }
 0x18d   :  { %v341_v46 = vadd.f32 %v340_v40, %v267_v42 }
 0x18e   :  { %v693_v43 = vpop.f32.mrf.mxu0 }
 0x190   :  { %v500_v44 = vpop.f32.mrf.mxu1 }
 0x192   :  { %v726_v45 = vpop.f32.mrf.mxu1 }
 0x194   :  { %v419_v47 = vpop.f32.mrf.mxu0 }
 0x195   :  { %v423_v48 = vadd.f32 %v419_v47, %v341_v46 }
 0x196   :  { %v715_v50 = vpop.f32.mrf.mxu0 }
 0x197   :  { %v504_v51 = vadd.f32 %v500_v44, %v423_v48 }
 0x199   :  { %v512_v52 = vadd.f32 %v635_v49, %v504_v51 }
 0x19b   :  { %745 = vtanh.f32 %v512_v52 }
 0x1a8   :  { %v746_v53 = vpop.eup %745 }
 0x1a9   :  { %736 = vmatmul.mubr.msk.f32.vlgmr.msra.gmra.mxu0 %vm197_vm3, %v746_v53 }
 0x269   :  { %v594_v55 = vpop.f32.mrf.mxu0 }
 0x26a   :  { %v595_v56 = vadd.f32 %v636_v54, %v594_v55 }
 0x26b   :  { %v737_v57 = vpop.f32.mrf.mxu0 }
 0x26c   :  { %599 = vst.msk [vmem:[#allocation2] sm:$0x3] %vm598_vm4, %v595_v56 }
 0x26d   :  { %758 = shalt.err (!%p755_p4)
}
 0x26e   :  { %609 = dma.vmem_to_hbm [thread:$0]  %s607_s20, 32, %s937_s6, [#allocation3]  }
 0x26f   :  { %767 = dma.done.wait [#allocation3], 32  }
 0x270   :  { %768 = vsyncadd [#allocation3], 4294967264 }
 0x271   :  { %613 = vsyncpa [#allocation3], 1 }

// kernel: forward.2
= control target key start
LH: loop header
LB: loop body
LE: loop exit
PB: predicated region body
PF: predicated region fallthrough
CT: control target
= control target key end

     0   :  { %s8082_s0 = inlined_call_operand.vmem [shape: s32[2,16,1], index: 0, kind: input, shape index: {}]   ;;  %s8083_s1 = inlined_call_operand.vmem [shape: f32[2,16,16], index: 1, kind: input, shape index: {}]   ;;  %s8084_s2 = inlined_call_operand.vmem [shape: f32[16,32], index: 2, kind: input, shape index: {}]   ;;  %s8085_s3 = inlined_call_operand.vmem [shape: f32[50,32], index: 3, kind: input, shape index: {}]   ;;  %s8086_s4 = inlined_call_operand.vmem [shape: f32[1,32], index: 4, kind: input, shape index: {}]   ;;  %s8087_s5 = inlined_call_operand.vmem [shape: f32[1,32], index: 5, kind: input, shape index: {}]   ;;  %s8088_s6 = inlined_call_operand.vmem [shape: f32[2,4,32,8], index: 6, kind: input, shape index: {}]   ;;  %s8089_s7 = inlined_call_operand.vmem [shape: f32[2,4,1,8], index: 7, kind: input, shape index: {}]   ;;  %s8090_s8 = inlined_call_operand.vmem [shape: f32[2,4,32,8], index: 8, kind: input, shape index: {}]   ;;  %s8091_s9 = inlined_call_operand.vmem [shape: f32[2,4,1,8], index: 9, kind: input, shape index: {}]   ;;  %s8092_s10 = inlined_call_operand.vmem [shape: f32[2,4,32,8], index: 10, kind: input, shape index: {}]   ;;  %s8093_s11 = inlined_call_operand.vmem [shape: f32[2,4,1,8], index: 11, kind: input, shape index: {}]   ;;  %s8094_s12 = inlined_call_operand.vmem [shape: f32[2,4,8,32], index: 12, kind: input, shape index: {}]   ;;  %s8095_s13 = inlined_call_operand.vmem [shape: f32[2,1,32], index: 13, kind: input, shape index: {}]   ;;  %s8096_s14 = inlined_call_operand.vmem [shape: f32[2,1,32], index: 14, kind: input, shape index: {}]   ;;  %s8097_s15 = inlined_call_operand.vmem [shape: f32[2,1,32], index: 15, kind: input, shape index: {}]   ;;  %s8098_s16 = inlined_call_operand.vmem [shape: f32[2,32,64], index: 16, kind: input, shape index: {}]   ;;  %s8099_s17 = inlined_call_operand.vmem [shape: f32[2,1,64], index: 17, kind: input, shape index: {}]   ;;  %s8100_s18 = inlined_call_operand.vmem [shape: f32[2,64,32], index: 18, kind: input, shape index: {}]   ;;  %s8101_s19 = inlined_call_operand.vmem [shape: f32[2,1,32], index: 19, kind: input, shape index: {}]   ;;  %s8102_s20 = inlined_call_operand.vmem [shape: f32[2,1,32], index: 20, kind: input, shape index: {}]   ;;  %s8103_s21 = inlined_call_operand.vmem [shape: f32[2,1,32], index: 21, kind: input, shape index: {}]   ;;  %s8104_s22 = inlined_call_operand.vmem [shape: f32[2,16,32], index: 22, kind: output, shape index: {}]  }
   0x1   :  { %8108 = sst [smem:[#allocation2_spill]] %s8082_s0 }
   0x2   :  { %8109 = sst [smem:[#allocation3_spill]] %s8083_s1 }
   0x3   :  { %8110 = sst [smem:[#allocation4_spill]] %s8084_s2 }
   0x4   :  { %8111 = sst [smem:[#allocation5_spill]] %s8085_s3  ;;  %s7207_s3 = smov 0  }
   0x5   :  { %8112 = sst [smem:[#allocation6_spill]] %s8086_s4 }
   0x6   :  { %8113 = sst [smem:[#allocation7_spill]] %s8087_s5 }
   0x7   :  { %8114 = sst [smem:[#allocation8_spill]] %s8088_s6 }
   0x8 LB: > { %s5901_s28 = sadd.s32 4294967295, %s7088_s3   ;;  %p5905_p0 = scmp.ge.s32.totalorder %s7088_s3, 1  ;;  %s7088_s3 = sphi %s7207_s3, %s32_s3  }
   0x9   : > { %p622_p1 = scmp.lt.s32.totalorder %s7088_s3, 3 }
   0xb   : > { %p623_p2 = pnand %p5905_p0, %p622_p1 }
   0xc   : > { %p689_p3 = scmp.lt.s32.totalorder (!%p623_p2), %s5901_s28, 1  ;;  %s8115_s4 = sld [smem:[#allocation5_spill]] (!%p623_p2) }
   0xd   : > { %626 = sbr.rel (%p623_p2) target bundleno = 10096 (0x2770), region = 108  ;;  %s8116_s27 = sld [smem:[#allocation2_spill]] (!%p623_p2) }
   0xe   : > { %s8117_s26 = sld [smem:[#allocation4_spill]] (!%p623_p2) }
   0xf   : > { %s8118_s0 = sld [smem:[#allocation8_spill]] (!%p623_p2) }
  0x10   : > { %s8120_s23 = sld [smem:[#allocation7_spill]] (!%p623_p2) }
  0x11   : > { %s8121_s1 = sld [smem:[#allocation3_spill]] (!%p623_p2) }
  0x12   : > { %v728_v0 = vld [vmem:[%s8115_s4 + $0x30] sm:$0x3]  ;;  %vm738_vm0 = vcmask 1041408   ;;  %v727_v1 = vld [vmem:[%s8115_s4 + $0x28] sm:$0xff]  ;;  %v7090_v2 = vmov 0   ;;  %s8123_s28 = smov (!%p689_p3, %s5901_s28), 1  ;;  %v708_v10 = vlaneseq }
  0x13   : > { %6989 = vset.pattern.permute.xlu0 %v7090_v2  ;;  %6486 = vmatprep.subr.msk.mxu0 %vm738_vm0, %v728_v0  ;;  %v726_v3 = vld [vmem:[%s8115_s4 + $0x20] sm:$0xff]  ;;  %s7224_s24 = sshll.u32 %s8123_s28, 4  ;;  %v725_v4 = vld [vmem:[%s8115_s4 + $0x18] sm:$0xff]  ;;  %v724_v6 = vld [vmem:[%s8115_s4 + $0x10] sm:$0xff]  ;;  %vm731_vm1 = vcmask 408576   ;;  %v7091_v13 = vmov 0.0  }
  0x14   : > { %6487 = vmatpush3.msk.msra.mxu0 %vm738_vm0, %v728_v0  ;;  %s693_s29 = scalar_lea.vmem %s8116_s27, %s7224_s24  ;;  %v723_v8 = vld [vmem:[%s8115_s4 + $0x8] sm:$0xff]  ;;  %v722_v9 = vld [vmem:[%s8115_s4] sm:$0xff]  ;;  %v709_v11 = vand.u32 127, %v708_v10  ;;  %vm819_vm4 = vcmask 261120   ;;  %v1044_v36 = vld [vmem:[%s8092_s10 + $0x18] sm:$0xff]  ;;  %vm1127_vm5 = vcmask 64512  }
  0x15   : > { %6488 = vmatprep.subr.mxu0 %v727_v1  ;;  %v704_v5 = vld [vmem:[%s693_s29] sm:$0xff]  ;;  %v705_v7 = vld [vmem:[%s693_s29 + $0x8] sm:$0xff]  ;;  %v866_v35 = vld [vmem:[%s8118_s0 + $0x18] sm:$0xff]  ;;  %s8119_s29 = sld [smem:[#allocation6_spill]]  ;;  %vm1221_vm8 = vcmask 130048   ;;  %vm3214_vm9 = vcmask 523264  }
  0x16   : > { %6489 = vmatpush3.msra.mxu0 %v727_v1  ;;  %711 = vperm.xlu0 %6989, %v704_v5   ;;  %v729_v18 = vld [vmem:[%s8117_s26] sm:$0xff]  ;;  %v730_v19 = vld [vmem:[%s8117_s26 + $0x8] sm:$0xff]  ;;  %v865_v37 = vld [vmem:[%s8118_s0 + $0x10] sm:$0xff] }
  0x17   : > { %6490 = vmatprep.subr.mxu0 %v726_v3  ;;  %6503 = vmatprep.subr.mxu1 %v866_v35  ;;  %v1043_v38 = vld [vmem:[%s8092_s10 + $0x10] sm:$0xff]  ;;  %v864_v39 = vld [vmem:[%s8118_s0 + $0x8] sm:$0xff]  ;;  %v863_v41 = vld [vmem:[%s8118_s0] sm:$0xff]  ;;  %s698_s5 = scalar_lea.vmem %s8121_s1, %s7224_s24  ;;  %s703_s1 = scalar_lea.vmem %s8104_s22, %s7224_s24 }
  0x18   : > { %6491 = vmatpush3.msra.mxu0 %v726_v3  ;;  %6504 = vmatpush3.msra.mxu1 %v866_v35  ;;  %v1042_v40 = vld [vmem:[%s8092_s10 + $0x8] sm:$0xff]  ;;  %v1041_v42 = vld [vmem:[%s8092_s10] sm:$0xff]  ;;  %v958_v43 = vld [vmem:[%s8090_s8 + $0x18] sm:$0xff] }
  0x19   : > { %6492 = vmatprep.subr.mxu0 %v725_v4  ;;  %6505 = vmatprep.subr.mxu1 %v865_v37  ;;  %v5918_v53 = vld [vmem:[%s8120_s23] ss:$0 sm:$0xff]  ;;  %v957_v60 = vld [vmem:[%s8090_s8 + $0x10] sm:$0xff]  ;;  %v956_v61 = vld [vmem:[%s8090_s8 + $0x8] sm:$0xff] }
  0x1a   : > { %6493 = vmatpush3.msra.mxu0 %v725_v4  ;;  %714 = vperm.xlu0 %6989, %v705_v7   ;;  %v955_v62 = vld [vmem:[%s8090_s8] sm:$0xff] }
  0x1b   : > { %6494 = vmatprep.subr.mxu0 %v724_v6  ;;  %6506 = vmatpush3.msra.mxu1 %v865_v37  ;;  %v5917_v51 = vld [vmem:[%s8119_s29] ss:$0 sm:$0xff] }
  0x1c   : > { %6495 = vmatpush3.msra.mxu0 %v724_v6  ;;  %6507 = vmatprep.subr.mxu1 %v864_v39  ;;  %v5925_v63 = vld [vmem:[%s8093_s11] ss:$0 sm:$0xff] }
  0x1d   : > { %6496 = vmatprep.subr.mxu0 %v723_v8  ;;  %6508 = vmatpush3.msra.mxu1 %v864_v39  ;;  %v5919_v3 = vld [vmem:[%s8089_s7] ss:$0 sm:$0xff] }
  0x1e   : > { %6497 = vmatpush3.msra.mxu0 %v723_v8  ;;  %6509 = vmatprep.subr.mxu1 %v863_v41  ;;  %v5922_v8 = vld [vmem:[%s8091_s9] ss:$0 sm:$0xff] }
  0x1f   : > { %6498 = vmatprep.subr.mxu0 %v722_v9  ;;  %6510 = vmatpush3.msra.mxu1 %v863_v41 }
  0x20   : > { %6499 = vmatpush3.msra.mxu0 %v722_v9  ;;  %6514 = vmatprep.subr.mxu1 %v958_v43 }
  0x21   : > { %6525 = vmatprep.subr.mxu0 %v1044_v36 }
  0x91   : > { %v712_v12 = vpop.permute.xlu0 %711 }
  0x92   : > { %vm716_vm2 = vcmp.eq.s32.totalorder %v709_v11, %v712_v12 }
  0x93   : > { %v5912_v14 = vsel %vm716_vm2, 1.0, %v7091_v13 }
  0x94   : > { %6500 = vmatprep.mubr.msk.f32.mxu0 %vm731_vm1, %v5912_v14 }
  0x95   : > { %v715_v15 = vpop.permute.xlu0 %714 }
  0x96   : > { %vm717_vm3 = vcmp.eq.s32.totalorder %v709_v11, %v715_v15  ;;  %v5936_v15 = vld [vmem:[%s8118_s0 + $0x30] sm:$0xff] }
  0x97   : > { %v5913_v16 = vsel %vm717_vm3, 1.0, %v7091_v13  ;;  %v5937_v13 = vld [vmem:[%s8118_s0 + $0x38] sm:$0xff] }
  0x98   : > { %6501 = vmatmul.mubr.msk.f32.vlgmr.msra.gmra.mxu0 %vm731_vm1, %v5913_v16  ;;  %v5935_v16 = vld [vmem:[%s8118_s0 + $0x28] sm:$0xff] }
  0x99   : > { %6526 = vmatpush3.msra.mxu0 %v1044_v36 }
  0x9a   : > { %6527 = vmatprep.subr.mxu0 %v1043_v38 }
  0x9b   : > { %6528 = vmatpush3.msra.mxu0 %v1043_v38 }
  0x9c   : > { %6529 = vmatprep.subr.mxu0 %v1042_v40 }
  0x9d   : > { %6530 = vmatpush3.msra.mxu0 %v1042_v40 }
  0x9e   : > { %6531 = vmatprep.subr.mxu0 %v1041_v42 }
  0x9f   : > { %6532 = vmatpush3.msra.mxu0 %v1041_v42 }
 0x158   : > { %v6502_v17 = vpop.f32.mrf.mxu0 }
 0x159   : > { %v814_v22 = vadd.f32 %v6502_v17, %v730_v19  ;;  %v5934_v17 = vld [vmem:[%s8118_s0 + $0x20] sm:$0xff]  ;;  %v5952_v19 = vld [vmem:[%s8092_s10 + $0x30] sm:$0xff] }
 0x15a   : > { %v808_v20 = vpop.f32.mrf.mxu0 }
 0x15b   : > { %v809_v21 = vadd.f32 %v808_v20, %v729_v18  ;;  %v823_v24 = vsel %vm819_vm4, %v814_v22, 0.0  ;;  %v5953_v18 = vld [vmem:[%s8092_s10 + $0x38] sm:$0xff]  ;;  %v5951_v20 = vld [vmem:[%s8092_s10 + $0x28] sm:$0xff] }
 0x15d   : > { %v820_v23 = vsel %vm819_vm4, %v809_v21, 0.0 }
 0x15e   : > { %821 = vadd.xlane.f32.xlu1 %v820_v23 }
 0x162   : > { %824 = vadd.xlane.f32.xlu1 %v823_v24  ;;  %v7363_v24 = vld [vmem:[%s698_s5 + $0x8] sm:$0xff] }
 0x163   : > { %vm1218_vm7 = vcmp.gt.f32.partialorder %v7363_v24, 0.0 }
 0x1e7   : > { %v822_v25 = vpop.xlane.xlu1 %821 }
 0x1e8   : > { %v827_v26 = vmul.f32 0.03125, %v822_v25 }
 0x1ea   : > { %v829_v27 = vsub.f32 %v809_v21, %v827_v26  ;;  %v5950_v21 = vld [vmem:[%s8092_s10 + $0x20] sm:$0xff] }
 0x1eb   : > { %v825_v28 = vpop.xlane.xlu1 %824 }
 0x1ec   : > { %v828_v29 = vmul.f32 0.03125, %v825_v28  ;;  %v831_v30 = vmul.f32 %v829_v27, %v829_v27 }
 0x1ee   : > { %v830_v31 = vsub.f32 %v814_v22, %v828_v29  ;;  %v833_v32 = vsel %vm819_vm4, %v831_v30, 0.0  ;;  %v7361_v22 = vld [vmem:[%s698_s5] sm:$0xff] }
 0x1ef   : > { %834 = vadd.xlane.f32.xlu0 %v833_v32  ;;  %vm1217_vm6 = vcmp.gt.f32.partialorder %v7361_v22, 0.0  ;;  %v5939_v30 = vld [vmem:[%s8089_s7 + $0x1] ss:$0 sm:$0xff]  ;;  %v6175_v22 = vld [vmem:[%s8094_s12 + $0x38] sm:$0xff] }
 0x1f0   : > { %v832_v33 = vmul.f32 %v830_v31, %v830_v31 }
 0x1f2   : > { %v836_v34 = vsel %vm819_vm4, %v832_v33, 0.0 }
 0x1f3   : > { %837 = vadd.xlane.f32.xlu1 %v836_v34 }
 0x278   : > { %v835_v44 = vpop.xlane.xlu0 %834 }
 0x279   : > { %v839_v45 = vmul.f32 0.03125, %v835_v44 }
 0x27b   : > { %v841_v46 = vadd.f32 1e-12, %v839_v45  ;;  %v5945_v45 = vld [vmem:[%s8090_s8 + $0x38] sm:$0xff] }
 0x27c   : > { %v838_v47 = vpop.xlane.xlu1 %837 }
 0x27d   : > { %6990 = vrsqrt.f32 %v841_v46  ;;  %v840_v48 = vmul.f32 0.03125, %v838_v47 }
 0x27f   : > { %v842_v49 = vadd.f32 1e-12, %v840_v48 }
 0x281   : > { %6992 = vrsqrt.f32 %v842_v49 }
 0x28a   : > { %v6991_v50 = vpop.eup %6990 }
 0x28b   : > { %v845_v52 = vmul.f32 %v6991_v50, %v829_v27 }
 0x28d   : > { %v853_v54 = vmul.f32 %v5917_v51, %v845_v52  ;;  %v5944_v52 = vld [vmem:[%s8090_s8 + $0x30] sm:$0xff] }
 0x28e   : > { %v6993_v55 = vpop.eup %6992 }
 0x28f   : > { %v7285_v56 = vadd.f32 %v5918_v53, %v853_v54  ;;  %v846_v57 = vmul.f32 %v6993_v55, %v830_v31  ;;  %v5942_v54 = vld [vmem:[%s8090_s8 + $0x20] sm:$0xff] }
 0x291   : > { %v854_v58 = vmul.f32 %v5917_v51, %v846_v57  ;;  %6511 = vmatprep.mubr.msk.f32.mxu1 %vm819_vm4, %v7285_v56  ;;  %6533 = vmatprep.mubr.msk.f32.mxu0 %vm819_vm4, %v7285_v56 }
 0x293   : > { %v7291_v59 = vadd.f32 %v5918_v53, %v854_v58  ;;  %v5943_v53 = vld [vmem:[%s8090_s8 + $0x28] sm:$0xff]  ;;  %v1325_v58 = vld [vmem:[%s8094_s12] sm:$0xff] }
 0x295   : > { %6512 = vmatmul.mubr.msk.f32.vlgmr.msra.gmra.mxu1 %vm819_vm4, %v7291_v59  ;;  %6534 = vmatmul.mubr.msk.f32.vlgmr.msra.gmra.mxu0 %vm819_vm4, %v7291_v59 }
 0x296   : > { %6515 = vmatpush3.msra.mxu1 %v958_v43  ;;  %6522 = vmatprep.mubr.msk.f32.mxu1 %vm819_vm4, %v7285_v56 }
 0x297   : > { %6516 = vmatprep.subr.mxu1 %v957_v60 }
 0x298   : > { %6517 = vmatpush3.msra.mxu1 %v957_v60  ;;  %v5980_v60 = vld [vmem:[%s8090_s8 + $0x58] sm:$0xff] }
 0x299   : > { %6518 = vmatprep.subr.mxu1 %v956_v61 }
 0x29a   : > { %6519 = vmatpush3.msra.mxu1 %v956_v61 }
 0x29b   : > { %6520 = vmatprep.subr.mxu1 %v955_v62 }
 0x29c   : > { %6521 = vmatpush3.msra.mxu1 %v955_v62 }
 0x29d   : > { %6523 = vmatmul.mubr.msk.f32.vlgmr.msra.gmra.mxu1 %vm819_vm4, %v7291_v59 }
 0x355   : > { %v6513_v0 = vpop.f32.mrf.mxu1  ;;  %v6535_v1 = vpop.f32.mrf.mxu0 }
 0x356   : > { %v1124_v2 = vadd.f32 %v6535_v1, %v5925_v63  ;;  %v952_v14 = vadd.f32 %v6513_v0, %v5919_v3  ;;  %v5978_v0 = vld [vmem:[%s8090_s8 + $0x48] sm:$0xff]  ;;  %v5947_v1 = vld [vmem:[%s8091_s9 + $0x1] ss:$0 sm:$0xff] }
 0x357   : > { %v946_v4 = vpop.f32.mrf.mxu1  ;;  %v1118_v5 = vpop.f32.mrf.mxu0 }
 0x358   : > { %v947_v6 = vadd.f32 %v5919_v3, %v946_v4  ;;  %v1119_v7 = vadd.f32 %v5925_v63, %v1118_v5  ;;  %6543 = vmatprep.subr.mxu0 %v1124_v2  ;;  %v5979_v63 = vld [vmem:[%s8090_s8 + $0x50] sm:$0xff] }
 0x359   : > { %6544 = vmatpush3.msra.mxu0 %v1124_v2  ;;  %v5977_v2 = vld [vmem:[%s8090_s8 + $0x40] sm:$0xff] }
 0x35a   : > { %6540 = vmatprep.mubr.msk.f32.mxu1 %vm1127_vm5, %v947_v6  ;;  %6545 = vmatprep.subr.mxu0 %v1119_v7 }
 0x35b   : > { %6546 = vmatpush3.msra.mxu0 %v1119_v7 }
 0x35c   : > { %6561 = vmatprep.subr.mxu0 %v5945_v45 }
 0x35d   : > { %v6524_v9 = vpop.f32.mrf.mxu1 }
 0x35e   : > { %v1038_v10 = vadd.f32 %v6524_v9, %v5922_v8 }
 0x35f   : > { %v1032_v11 = vpop.f32.mrf.mxu1 }
 0x360   : > { %v1033_v12 = vadd.f32 %v5922_v8, %v1032_v11  ;;  %6536 = vmatprep.subr.msk.mxu1 %vm1127_vm5, %v1038_v10  ;;  %v5955_v8 = vld [vmem:[%s8093_s11 + $0x1] ss:$0 sm:$0xff] }
 0x361   : > { %6537 = vmatpush3.xpose.msk.msra.mxu1 %vm1127_vm5, %v1038_v10 }
 0x362   : > { %6538 = vmatprep.subr.msk.mxu1 %vm1127_vm5, %v1033_v12 }
 0x365   : > { %6539 = vmatpush3.xpose.msk.msra.mxu1 %vm1127_vm5, %v1033_v12 }
 0x366   : > { %6550 = vmatprep.subr.mxu1 %v5937_v13 }
 0x368   : > { %6541 = vmatmul.mubr.msk.f32.vlgmr.msra.gmra.mxu1 %vm1127_vm5, %v952_v14  ;;  %v5982_v14 = vld [vmem:[%s8091_s9 + $0x2] ss:$0 sm:$0xff] }
 0x369   : > { %6551 = vmatpush3.msra.mxu1 %v5937_v13  ;;  %6558 = vmatprep.mubr.msk.f32.mxu1 %vm819_vm4, %v7285_v56 }
 0x36a   : > { %6552 = vmatprep.subr.mxu1 %v5936_v15 }
 0x36b   : > { %6553 = vmatpush3.msra.mxu1 %v5936_v15 }
 0x36c   : > { %6554 = vmatprep.subr.mxu1 %v5935_v16 }
 0x36d   : > { %6555 = vmatpush3.msra.mxu1 %v5935_v16 }
 0x36e   : > { %6556 = vmatprep.subr.mxu1 %v5934_v17 }
 0x36f   : > { %6557 = vmatpush3.msra.mxu1 %v5934_v17 }
 0x370   : > { %6559 = vmatmul.mubr.msk.f32.vlgmr.msra.gmra.mxu1 %vm819_vm4, %v7291_v59  ;;  %6572 = vmatprep.subr.mxu1 %v5953_v18 }
 0x371   : > { %6573 = vmatpush3.msra.mxu1 %v5953_v18  ;;  %6580 = vmatprep.mubr.msk.f32.mxu1 %vm819_vm4, %v7285_v56 }
 0x372   : > { %6574 = vmatprep.subr.mxu1 %v5952_v19 }
 0x373   : > { %6575 = vmatpush3.msra.mxu1 %v5952_v19 }
 0x374   : > { %6576 = vmatprep.subr.mxu1 %v5951_v20 }
 0x375   : > { %6577 = vmatpush3.msra.mxu1 %v5951_v20 }
 0x376   : > { %6578 = vmatprep.subr.mxu1 %v5950_v21 }
 0x377   : > { %6579 = vmatpush3.msra.mxu1 %v5950_v21 }
 0x378   : > { %6581 = vmatmul.mubr.msk.f32.vlgmr.msra.gmra.mxu1 %vm819_vm4, %v7291_v59  ;;  %6602 = vmatprep.subr.mxu1 %v1325_v58 }
 0x379   : > { %6603 = vmatpush3.msra.mxu1 %v1325_v58 }
 0x37a   : > { %6618 = vmatprep.subr.mxu1 %v5980_v60 }
 0x428   : > { %v6542_v23 = vpop.f32.mrf.mxu1 }
 0x429   : > { %v1216_v26 = vmul.f32 0.35355338, %v6542_v23 }
 0x42a   : > { %v1206_v25 = vpop.f32.mrf.mxu1 }
 0x42b   : > { %v1215_v27 = vmul.f32 0.35355338, %v1206_v25  ;;  %v1220_v31 = vsel %vm1218_vm7, %v1216_v26, -1e+09 }
 0x42c   : > { %v1225_v34 = vsel %vm1221_vm8, %v1220_v31, -inf }
 0x42d   : > { %v1219_v28 = vsel %vm1217_vm6, %v1215_v27, -1e+09 }
 0x42e   : > { %v1222_v29 = vsel %vm1221_vm8, %v1219_v28, -inf }
 0x42f   : > { %1223 = vmax.xlane.f32.xlu1 %v1222_v29 }
 0x430   : > { %v6560_v32 = vpop.f32.mrf.mxu1 }
 0x431   : > { %v7375_v33 = vadd.f32 %v6560_v32, %v5939_v30 }
 0x432   : > { %v1405_v55 = vpop.f32.mrf.mxu1 }
 0x433   : > { %1226 = vmax.xlane.f32.xlu1 %v1225_v34  ;;  %v1406_v57 = vadd.f32 %v5939_v30, %v1405_v55  ;;  %v5985_v55 = vld [vmem:[%s8092_s10 + $0x40] sm:$0xff] }
 0x438   : > { %v6582_v7 = vpop.f32.mrf.mxu1 }
 0x439   : > { %v1587_v9 = vadd.f32 %v6582_v7, %v5955_v8 }
 0x43a   : > { %v1581_v10 = vpop.f32.mrf.mxu1 }
 0x43b   : > { %v1582_v11 = vadd.f32 %v5955_v8, %v1581_v10 }
 0x4b8   : > { %v1224_v35 = vpop.xlane.xlu1 %1223 }
 0x4b9   : > { %v1228_v36 = vsub.f32 %v1219_v28, %v1224_v35 }
 0x4bb   : > { %v1230_v37 = vmul.f32 1.442695, %v1228_v36 }
 0x4bc   : > { %v1227_v38 = vpop.xlane.xlu1 %1226 }
 0x4bd   : > { %6994 = vpow2.f32 %v1230_v37  ;;  %v1229_v39 = vsub.f32 %v1220_v31, %v1227_v38 }
 0x4bf   : > { %v1232_v40 = vmul.f32 1.442695, %v1229_v39  ;;  %v5964_v39 = vld [vmem:[%s8094_s12 + $0x8] sm:$0xff] }
 0x4c1   : > { %6996 = vpow2.f32 %v1232_v40 }
 0x4ca   : > { %v6995_v41 = vpop.eup %6994 }
 0x4cb   : > { %v1234_v42 = vsel %vm1221_vm8, %v6995_v41, 0.0 }
 0x4cc   : > { %1235 = vadd.xlane.f32.xlu1 %v1234_v42 }
 0x4ce   : > { %v6997_v43 = vpop.eup %6996 }
 0x4cf   : > { %v1237_v44 = vsel %vm1221_vm8, %v6997_v43, 0.0 }
 0x4d0   : > { %1238 = vadd.xlane.f32.xlu1 %v1237_v44 }
 0x555   : > { %v1236_v46 = vpop.xlane.xlu1 %1235 }
 0x556   : > { %6998 = vrcp.f32 %v1236_v46  ;;  %v5972_v46 = vld [vmem:[%s8118_s0 + $0x58] sm:$0xff] }
 0x559   : > { %v1239_v47 = vpop.xlane.xlu1 %1238 }
 0x55a   : > { %7000 = vrcp.f32 %v1239_v47 }
 0x563   : > { %v6999_v48 = vpop.eup %6998 }
 0x564   : > { %v1242_v49 = vmul.f32 %v6999_v48, %v6995_v41 }
 0x566   : > { %6547 = vmatprep.mubr.msk.f32.mxu0 %vm1221_vm8, %v1242_v49  ;;  %v5971_v49 = vld [vmem:[%s8118_s0 + $0x50] sm:$0xff] }
 0x567   : > { %v7001_v50 = vpop.eup %7000 }
 0x568   : > { %v1243_v51 = vmul.f32 %v7001_v50, %v6997_v43  ;;  %v5970_v50 = vld [vmem:[%s8118_s0 + $0x48] sm:$0xff] }
 0x56a   : > { %6548 = vmatmul.mubr.msk.f32.vlgmr.msra.gmra.mxu0 %vm1221_vm8, %v1243_v51  ;;  %v5969_v51 = vld [vmem:[%s8118_s0 + $0x40] sm:$0xff] }
 0x56b   : > { %6562 = vmatpush3.msra.mxu0 %v5945_v45  ;;  %6569 = vmatprep.mubr.msk.f32.mxu0 %vm819_vm4, %v7285_v56 }
 0x56c   : > { %6563 = vmatprep.subr.mxu0 %v5944_v52 }
 0x56d   : > { %6564 = vmatpush3.msra.mxu0 %v5944_v52  ;;  %v5988_v52 = vld [vmem:[%s8092_s10 + $0x58] sm:$0xff] }
 0x56e   : > { %6565 = vmatprep.subr.mxu0 %v5943_v53 }
 0x56f   : > { %6566 = vmatpush3.msra.mxu0 %v5943_v53  ;;  %v5987_v53 = vld [vmem:[%s8092_s10 + $0x50] sm:$0xff] }
 0x570   : > { %6567 = vmatprep.subr.mxu0 %v5942_v54 }
 0x571   : > { %6568 = vmatpush3.msra.mxu0 %v5942_v54  ;;  %v5986_v54 = vld [vmem:[%s8092_s10 + $0x48] sm:$0xff] }
 0x572   : > { %6570 = vmatmul.mubr.msk.f32.vlgmr.msra.gmra.mxu0 %vm819_vm4, %v7291_v59 }
 0x573   : > { %6587 = vmatprep.mubr.msk.f32.mxu0 %vm1127_vm5, %v1406_v57 }
 0x62a   : > { %v6549_v61 = vpop.f32.mrf.mxu0 }
 0x62c   : > { %v1316_v62 = vpop.f32.mrf.mxu0 }
 0x62d   : > { %6604 = vmatprep.mubr.msk.f32.mxu1 %vm1127_vm5, %v1316_v62 }
 0x62e   : > { %6605 = vmatmul.mubr.msk.f32.vlgmr.msra.gmra.mxu1 %vm1127_vm5, %v6549_v61  ;;  %v5974_v61 = vld [vmem:[%s8089_s7 + $0x2] ss:$0 sm:$0xff] }
 0x62f   : > { %6619 = vmatpush3.msra.mxu1 %v5980_v60  ;;  %6626 = vmatprep.mubr.msk.f32.mxu1 %vm819_vm4, %v7285_v56 }
 0x630   : > { %6620 = vmatprep.subr.mxu1 %v5979_v63 }
 0x631   : > { %6621 = vmatpush3.msra.mxu1 %v5979_v63 }
 0x632   : > { %v6571_v3 = vpop.f32.mrf.mxu0  ;;  %6622 = vmatprep.subr.mxu1 %v5978_v0 }
 0x633   : > { %v1499_v4 = vadd.f32 %v6571_v3, %v5947_v1  ;;  %6623 = vmatpush3.msra.mxu1 %v5978_v0 }
 0x634   : > { %v1493_v5 = vpop.f32.mrf.mxu0  ;;  %6624 = vmatprep.subr.mxu1 %v5977_v2 }
 0x635   : > { %v1494_v6 = vadd.f32 %v5947_v1, %v1493_v5  ;;  %6583 = vmatprep.subr.msk.mxu0 %vm1127_vm5, %v1499_v4  ;;  %6625 = vmatpush3.msra.mxu1 %v5977_v2  ;;  %v5990_v1 = vld [vmem:[%s8093_s11 + $0x2] ss:$0 sm:$0xff] }
 0x636   : > { %6584 = vmatpush3.xpose.msk.msra.mxu0 %vm1127_vm5, %v1499_v4  ;;  %6627 = vmatmul.mubr.msk.f32.vlgmr.msra.gmra.mxu1 %vm819_vm4, %v7291_v59 }
 0x637   : > { %6585 = vmatprep.subr.msk.mxu0 %vm1127_vm5, %v1494_v6 }
 0x63a   : > { %6586 = vmatpush3.xpose.msk.msra.mxu0 %vm1127_vm5, %v1494_v6 }
 0x63b   : > { %6590 = vmatprep.subr.mxu0 %v1587_v9 }
 0x63d   : > { %6588 = vmatmul.mubr.msk.f32.vlgmr.msra.gmra.mxu0 %vm1127_vm5, %v7375_v33 }
 0x63e   : > { %6591 = vmatpush3.msra.mxu0 %v1587_v9 }
 0x63f   : > { %6592 = vmatprep.subr.mxu0 %v1582_v11 }
 0x640   : > { %6593 = vmatpush3.msra.mxu0 %v1582_v11 }
 0x641   : > { %6597 = vmatprep.subr.mxu0 %v5964_v39 }
 0x6ee   : > { %v7432_v12 = vpop.f32.mrf.mxu1 }
 0x6f0   : > { %v7434_v13 = vpop.f32.mrf.mxu1 }
 0x6f6   : > { %v6628_v15 = vpop.f32.mrf.mxu1 }
 0x6f7   : > { %v2121_v16 = vadd.f32 %v6628_v15, %v5982_v14 }
 0x6f8   : > { %v2115_v17 = vpop.f32.mrf.mxu1 }
 0x6f9   : > { %v2116_v18 = vadd.f32 %v5982_v14, %v2115_v17  ;;  %6640 = vmatprep.subr.msk.mxu1 %vm1127_vm5, %v2121_v16 }
 0x6fa   : > { %6641 = vmatpush3.xpose.msk.msra.mxu1 %vm1127_vm5, %v2121_v16 }
 0x6fb   : > { %6642 = vmatprep.subr.msk.mxu1 %vm1127_vm5, %v2116_v18 }
 0x6fd   : > { %v6589_v19 = vpop.f32.mrf.mxu0 }
 0x6fe   : > { %6643 = vmatpush3.xpose.msk.msra.mxu1 %vm1127_vm5, %v2116_v18  ;;  %v1678_v21 = vmul.f32 0.35355338, %v6589_v19 }
 0x6ff   : > { %v1668_v20 = vpop.f32.mrf.mxu0 }
 0x700   : > { %v1677_v23 = vmul.f32 0.35355338, %v1668_v20  ;;  %v1680_v27 = vsel %vm1218_vm7, %v1678_v21, -1e+09 }
 0x701   : > { %v1684_v28 = vsel %vm1221_vm8, %v1680_v27, -inf }
 0x702   : > { %v1679_v25 = vsel %vm1217_vm6, %v1677_v23, -1e+09 }
 0x703   : > { %v1681_v26 = vsel %vm1221_vm8, %v1679_v25, -inf }
 0x704   : > { %1682 = vmax.xlane.f32.xlu1 %v1681_v26 }
 0x708   : > { %1685 = vmax.xlane.f32.xlu1 %v1684_v28  ;;  %v6005_v28 = vld [vmem:[%s8118_s0 + $0x78] sm:$0xff] }
 0x78d   : > { %v1683_v29 = vpop.xlane.xlu1 %1682 }
 0x78e   : > { %v1687_v30 = vsub.f32 %v1679_v25, %v1683_v29  ;;  %v5999_v29 = vld [vmem:[%s8094_s12 + $0x10] sm:$0xff] }
 0x78f   : > { %6654 = vmatprep.subr.mxu1 %v5999_v29 }
 0x790   : > { %v1689_v31 = vmul.f32 1.442695, %v1687_v30 }
 0x791   : > { %v1686_v32 = vpop.xlane.xlu1 %1685 }
 0x792   : > { %7002 = vpow2.f32 %v1689_v31  ;;  %v1688_v33 = vsub.f32 %v1680_v27, %v1686_v32 }
 0x794   : > { %v1691_v34 = vmul.f32 1.442695, %v1688_v33 }
 0x796   : > { %7004 = vpow2.f32 %v1691_v34 }
 0x79f   : > { %v7003_v35 = vpop.eup %7002 }
 0x7a0   : > { %v1693_v36 = vsel %vm1221_vm8, %v7003_v35, 0.0 }
 0x7a1   : > { %1694 = vadd.xlane.f32.xlu1 %v1693_v36  ;;  %v6004_v36 = vld [vmem:[%s8118_s0 + $0x70] sm:$0xff] }
 0x7a3   : > { %v7005_v37 = vpop.eup %7004 }
 0x7a4   : > { %v1696_v38 = vsel %vm1221_vm8, %v7005_v37, 0.0 }
 0x7a5   : > { %1697 = vadd.xlane.f32.xlu0 %v1696_v38  ;;  %v6002_v38 = vld [vmem:[%s8118_s0 + $0x60] sm:$0xff] }
 0x82a   : > { %v1695_v40 = vpop.xlane.xlu1 %1694 }
 0x82b   : > { %7006 = vrcp.f32 %v1695_v40  ;;  %v6020_v40 = vld [vmem:[%s8092_s10 + $0x70] sm:$0xff] }
 0x82e   : > { %v1698_v41 = vpop.xlane.xlu0 %1697 }
 0x82f   : > { %7008 = vrcp.f32 %v1698_v41  ;;  %v6019_v41 = vld [vmem:[%s8092_s10 + $0x68] sm:$0xff] }
 0x838   : > { %v7007_v42 = vpop.eup %7006 }
 0x839   : > { %v1701_v43 = vmul.f32 %v7007_v42, %v7003_v35  ;;  %v6018_v42 = vld [vmem:[%s8092_s10 + $0x60] sm:$0xff] }
 0x83b   : > { %6594 = vmatprep.mubr.msk.f32.mxu0 %vm1221_vm8, %v1701_v43  ;;  %v6013_v43 = vld [vmem:[%s8090_s8 + $0x78] sm:$0xff] }
 0x83c   : > { %v7009_v44 = vpop.eup %7008 }
 0x83d   : > { %v1702_v45 = vmul.f32 %v7009_v44, %v7005_v37  ;;  %v6003_v37 = vld [vmem:[%s8118_s0 + $0x68] sm:$0xff] }
 0x83f   : > { %6595 = vmatmul.mubr.msk.f32.vlgmr.msra.gmra.mxu0 %vm1221_vm8, %v1702_v45 }
 0x840   : > { %6598 = vmatpush3.msra.mxu0 %v5964_v39  ;;  %v6021_v39 = vld [vmem:[%s8092_s10 + $0x78] sm:$0xff] }
 0x841   : > { %6607 = vmatprep.subr.mxu0 %v5972_v46 }
 0x8ff   : > { %v6596_v47 = vpop.f32.mrf.mxu0 }
 0x901   : > { %v1775_v48 = vpop.f32.mrf.mxu0 }
 0x902   : > { %6599 = vmatprep.mubr.msk.f32.mxu0 %vm1127_vm5, %v1775_v48  ;;  %v6007_v48 = vld [vmem:[%s8089_s7 + $0x3] ss:$0 sm:$0xff] }
 0x903   : > { %6600 = vmatmul.mubr.msk.f32.vlgmr.msra.gmra.mxu0 %vm1127_vm5, %v6596_v47  ;;  %v6011_v47 = vld [vmem:[%s8090_s8 + $0x68] sm:$0xff] }
 0x904   : > { %6608 = vmatpush3.msra.mxu0 %v5972_v46  ;;  %6615 = vmatprep.mubr.msk.f32.mxu0 %vm819_vm4, %v7285_v56  ;;  %v6012_v46 = vld [vmem:[%s8090_s8 + $0x70] sm:$0xff] }
 0x905   : > { %6609 = vmatprep.subr.mxu0 %v5971_v49 }
 0x906   : > { %6610 = vmatpush3.msra.mxu0 %v5971_v49  ;;  %v6010_v49 = vld [vmem:[%s8090_s8 + $0x60] sm:$0xff] }
 0x907   : > { %6611 = vmatprep.subr.mxu0 %v5970_v50 }
 0x908   : > { %6612 = vmatpush3.msra.mxu0 %v5970_v50 }
 0x909   : > { %6613 = vmatprep.subr.mxu0 %v5969_v51 }
 0x90a   : > { %6614 = vmatpush3.msra.mxu0 %v5969_v51 }
 0x90b   : > { %6616 = vmatmul.mubr.msk.f32.vlgmr.msra.gmra.mxu0 %vm819_vm4, %v7291_v59  ;;  %6629 = vmatprep.subr.mxu0 %v5988_v52 }
 0x90c   : > { %6630 = vmatpush3.msra.mxu0 %v5988_v52  ;;  %6637 = vmatprep.mubr.msk.f32.mxu0 %vm819_vm4, %v7285_v56 }
 0x90d   : > { %6631 = vmatprep.subr.mxu0 %v5987_v53 }
 0x90e   : > { %6632 = vmatpush3.msra.mxu0 %v5987_v53 }
 0x90f   : > { %6633 = vmatprep.subr.mxu0 %v5986_v54 }
 0x910   : > { %6634 = vmatpush3.msra.mxu0 %v5986_v54  ;;  %v6023_v54 = vld [vmem:[%s8093_s11 + $0x3] ss:$0 sm:$0xff] }
 0x911   : > { %6635 = vmatprep.subr.mxu0 %v5985_v55 }
 0x912   : > { %6636 = vmatpush3.msra.mxu0 %v5985_v55 }
 0x913   : > { %6638 = vmatmul.mubr.msk.f32.vlgmr.msra.gmra.mxu0 %vm819_vm4, %v7291_v59 }
 0x9c3   : > { %v7490_v57 = vpop.f32.mrf.mxu0 }
 0x9c5   : > { %v7492_v58 = vpop.f32.mrf.mxu0 }
 0x9cb   : > { %v6617_v60 = vpop.f32.mrf.mxu0 }
 0x9cc   : > { %v2033_v0 = vadd.f32 %v6617_v60, %v5974_v61 }
 0x9cd   : > { %v2027_v62 = vpop.f32.mrf.mxu0 }
 0x9ce   : > { %v2028_v63 = vadd.f32 %v5974_v61, %v2027_v62 }
 0x9d0   : > { %6644 = vmatprep.mubr.msk.f32.mxu1 %vm1127_vm5, %v2028_v63  ;;  %v1945_v63 = vadd.f32 %v7432_v12, %v7490_v57 }
 0x9d1   : > { %6645 = vmatmul.mubr.msk.f32.vlgmr.msra.gmra.mxu1 %vm1127_vm5, %v2033_v0 }
 0x9d2   : > { %6655 = vmatpush3.msra.mxu1 %v5999_v29 }
 0x9d3   : > { %v6639_v2 = vpop.f32.mrf.mxu0  ;;  %6670 = vmatprep.subr.mxu1 %v6013_v43 }
 0x9d4   : > { %v2209_v3 = vadd.f32 %v6639_v2, %v5990_v1 }
 0x9d5   : > { %v2203_v4 = vpop.f32.mrf.mxu0 }
 0x9d6   : > { %v2204_v5 = vadd.f32 %v5990_v1, %v2203_v4  ;;  %6647 = vmatprep.subr.mxu0 %v2209_v3  ;;  %v1940_v1 = vadd.f32 %v7434_v13, %v7492_v58 }
 0x9d7   : > { %6648 = vmatpush3.msra.mxu0 %v2209_v3 }
 0x9d8   : > { %6649 = vmatprep.subr.mxu0 %v2204_v5 }
 0x9d9   : > { %6650 = vmatpush3.msra.mxu0 %v2204_v5  ;;  %v6015_v5 = vld [vmem:[%s8091_s9 + $0x3] ss:$0 sm:$0xff] }
 0x9da   : > { %6659 = vmatprep.subr.mxu0 %v6005_v28 }
 0xa91   : > { %v6646_v6 = vpop.f32.mrf.mxu1 }
 0xa92   : > { %v2300_v7 = vmul.f32 0.35355338, %v6646_v6 }
 0xa93   : > { %v2290_v8 = vpop.f32.mrf.mxu1 }
 0xa94   : > { %v2299_v9 = vmul.f32 0.35355338, %v2290_v8  ;;  %v2302_v10 = vsel %vm1218_vm7, %v2300_v7, -1e+09 }
 0xa95   : > { %v2306_v11 = vsel %vm1221_vm8, %v2302_v10, -inf }
 0xa96   : > { %2307 = vmax.xlane.f32.xlu0 %v2306_v11  ;;  %v2301_v14 = vsel %vm1217_vm6, %v2299_v9, -1e+09 }
 0xa97   : > { %v2303_v15 = vsel %vm1221_vm8, %v2301_v14, -inf }
 0xa98   : > { %2304 = vmax.xlane.f32.xlu1 %v2303_v15 }
 0xb1f   : > { %v2308_v16 = vpop.xlane.xlu0 %2307 }
 0xb20   : > { %v2310_v17 = vsub.f32 %v2302_v10, %v2308_v16 }
 0xb21   : > { %v2305_v18 = vpop.xlane.xlu1 %2304 }
 0xb22   : > { %v2313_v19 = vmul.f32 1.442695, %v2310_v17  ;;  %v2309_v20 = vsub.f32 %v2301_v14, %v2305_v18 }
 0xb24   : > { %7010 = vpow2.f32 %v2313_v19  ;;  %v2311_v21 = vmul.f32 1.442695, %v2309_v20 }
 0xb26   : > { %7012 = vpow2.f32 %v2311_v21 }
 0xb31   : > { %v7011_v23 = vpop.eup %7010 }
 0xb32   : > { %v2318_v25 = vsel %vm1221_vm8, %v7011_v23, 0.0 }
 0xb33   : > { %v7013_v26 = vpop.eup %7012  ;;  %2319 = vadd.xlane.f32.xlu0 %v2318_v25 }
 0xb34   : > { %v2315_v27 = vsel %vm1221_vm8, %v7013_v26, 0.0 }
 0xb35   : > { %2316 = vadd.xlane.f32.xlu1 %v2315_v27 }
 0xbbc   : > { %v2320_v30 = vpop.xlane.xlu0 %2319 }
 0xbbd   : > { %7014 = vrcp.f32 %v2320_v30 }
 0xbbe   : > { %v2317_v31 = vpop.xlane.xlu1 %2316 }
 0xbbf   : > { %7016 = vrcp.f32 %v2317_v31 }
 0xbca   : > { %v7015_v32 = vpop.eup %7014 }
 0xbcb   : > { %v2324_v35 = vmul.f32 %v7015_v32, %v7011_v23 }
 0xbcc   : > { %v7017_v33 = vpop.eup %7016 }
 0xbcd   : > { %v2323_v34 = vmul.f32 %v7017_v33, %v7013_v26 }
 0xbcf   : > { %6651 = vmatprep.mubr.msk.f32.mxu0 %vm1221_vm8, %v2323_v34 }
 0xbd0   : > { %6652 = vmatmul.mubr.msk.f32.vlgmr.msra.gmra.mxu0 %vm1221_vm8, %v2324_v35 }
 0xbd1   : > { %6660 = vmatpush3.msra.mxu0 %v6005_v28  ;;  %6667 = vmatprep.mubr.msk.f32.mxu0 %vm819_vm4, %v7285_v56  ;;  %v6032_v28 = vld [vmem:[%s8094_s12 + $0x18] sm:$0xff] }
 0xbd2   : > { %6661 = vmatprep.subr.mxu0 %v6004_v36 }
 0xbd3   : > { %6662 = vmatpush3.msra.mxu0 %v6004_v36 }
 0xbd4   : > { %6663 = vmatprep.subr.mxu0 %v6003_v37 }
 0xbd5   : > { %6664 = vmatpush3.msra.mxu0 %v6003_v37 }
 0xbd6   : > { %6665 = vmatprep.subr.mxu0 %v6002_v38 }
 0xbd7   : > { %6666 = vmatpush3.msra.mxu0 %v6002_v38  ;;  %v6035_v38 = vld [vmem:[%s8095_s13] ss:$0 sm:$0xff] }
 0xbd8   : > { %6668 = vmatmul.mubr.msk.f32.vlgmr.msra.gmra.mxu0 %vm819_vm4, %v7291_v59  ;;  %6681 = vmatprep.subr.mxu0 %v6021_v39 }
 0xbd9   : > { %6682 = vmatpush3.msra.mxu0 %v6021_v39  ;;  %6689 = vmatprep.mubr.msk.f32.mxu0 %vm819_vm4, %v7285_v56 }
 0xbda   : > { %6683 = vmatprep.subr.mxu0 %v6020_v40 }
 0xbdb   : > { %6684 = vmatpush3.msra.mxu0 %v6020_v40 }
 0xbdc   : > { %6685 = vmatprep.subr.mxu0 %v6019_v41 }
 0xbdd   : > { %6686 = vmatpush3.msra.mxu0 %v6019_v41 }
 0xbde   : > { %6687 = vmatprep.subr.mxu0 %v6018_v42 }
 0xbdf   : > { %6688 = vmatpush3.msra.mxu0 %v6018_v42 }
 0xbe0   : > { %6690 = vmatmul.mubr.msk.f32.vlgmr.msra.gmra.mxu0 %vm819_vm4, %v7291_v59 }
 0xc90   : > { %v6653_v44 = vpop.f32.mrf.mxu0 }
 0xc92   : > { %v2397_v45 = vpop.f32.mrf.mxu0 }
 0xc93   : > { %6656 = vmatprep.mubr.msk.f32.mxu1 %vm1127_vm5, %v2397_v45 }
 0xc94   : > { %6657 = vmatmul.mubr.msk.f32.vlgmr.msra.gmra.mxu1 %vm1127_vm5, %v6653_v44 }
 0xc95   : > { %6671 = vmatpush3.msra.mxu1 %v6013_v43  ;;  %6678 = vmatprep.mubr.msk.f32.mxu1 %vm819_vm4, %v7285_v56 }
 0xc96   : > { %6672 = vmatprep.subr.mxu1 %v6012_v46 }
 0xc97   : > { %6673 = vmatpush3.msra.mxu1 %v6012_v46 }
 0xc98   : > { %v6669_v50 = vpop.f32.mrf.mxu0  ;;  %6674 = vmatprep.subr.mxu1 %v6011_v47 }
 0xc99   : > { %v2576_v51 = vadd.f32 %v6669_v50, %v6007_v48  ;;  %6675 = vmatpush3.msra.mxu1 %v6011_v47 }
 0xc9a   : > { %v2570_v52 = vpop.f32.mrf.mxu0  ;;  %6676 = vmatprep.subr.mxu1 %v6010_v49 }
 0xc9b   : > { %v2571_v53 = vadd.f32 %v6007_v48, %v2570_v52  ;;  %6677 = vmatpush3.msra.mxu1 %v6010_v49 }
 0xc9c   : > { %6679 = vmatmul.mubr.msk.f32.vlgmr.msra.gmra.mxu1 %vm819_vm4, %v7291_v59 }
 0xc9d   : > { %6696 = vmatprep.mubr.msk.f32.mxu1 %vm1127_vm5, %v2571_v53 }
 0xca0   : > { %v6691_v55 = vpop.f32.mrf.mxu0 }
 0xca1   : > { %v2752_v60 = vadd.f32 %v6691_v55, %v6023_v54 }
 0xca2   : > { %v2746_v61 = vpop.f32.mrf.mxu0 }
 0xca3   : > { %v2747_v62 = vadd.f32 %v6023_v54, %v2746_v61  ;;  %6699 = vmatprep.subr.mxu0 %v2752_v60  ;;  %v3091_v61 = vld [vmem:[%s8098_s16 + $0x10] sm:$0xff] }
 0xca4   : > { %6700 = vmatpush3.msra.mxu0 %v2752_v60 }
 0xca5   : > { %6701 = vmatprep.subr.mxu0 %v2747_v62 }
 0xca6   : > { %6702 = vmatpush3.msra.mxu0 %v2747_v62  ;;  %v3090_v62 = vld [vmem:[%s8098_s16 + $0x8] sm:$0xff] }
 0xd54   : > { %v6658_v0 = vpop.f32.mrf.mxu1 }
 0xd55   : > { %v2490_v2 = vadd.f32 %v6658_v0, %v1945_v63  ;;  %v3089_v63 = vld [vmem:[%s8098_s16] sm:$0xff] }
 0xd56   : > { %v2480_v3 = vpop.f32.mrf.mxu1 }
 0xd57   : > { %v2489_v4 = vadd.f32 %v2480_v3, %v1940_v1 }
 0xd5c   : > { %v6680_v6 = vpop.f32.mrf.mxu1 }
 0xd5d   : > { %v2664_v7 = vadd.f32 %v6680_v6, %v6015_v5 }
 0xd5e   : > { %v2658_v8 = vpop.f32.mrf.mxu1 }
 0xd5f   : > { %v2659_v9 = vadd.f32 %v6015_v5, %v2658_v8  ;;  %6692 = vmatprep.subr.msk.mxu1 %vm1127_vm5, %v2664_v7 }
 0xd60   : > { %6693 = vmatpush3.xpose.msk.msra.mxu1 %vm1127_vm5, %v2664_v7  ;;  %v6036_v7 = vld [vmem:[%s8096_s14] ss:$0 sm:$0xff] }
 0xd61   : > { %6694 = vmatprep.subr.msk.mxu1 %vm1127_vm5, %v2659_v9 }
 0xd64   : > { %6695 = vmatpush3.xpose.msk.msra.mxu1 %vm1127_vm5, %v2659_v9 }
 0xd65   : > { %6706 = vmatprep.subr.mxu1 %v6032_v28 }
 0xd67   : > { %6697 = vmatmul.mubr.msk.f32.vlgmr.msra.gmra.mxu1 %vm1127_vm5, %v2576_v51 }
 0xd68   : > { %6707 = vmatpush3.msra.mxu1 %v6032_v28 }
 0xe27   : > { %v6698_v12 = vpop.f32.mrf.mxu1 }
 0xe28   : > { %v2843_v13 = vmul.f32 0.35355338, %v6698_v12 }
 0xe29   : > { %v2833_v57 = vpop.f32.mrf.mxu1 }
 0xe2a   : > { %v2842_v58 = vmul.f32 0.35355338, %v2833_v57  ;;  %v2845_v10 = vsel %vm1218_vm7, %v2843_v13, -1e+09  ;;  %v6037_v57 = vld [vmem:[%s8097_s15] ss:$0 sm:$0xff] }
 0xe2b   : > { %v2849_v11 = vsel %vm1221_vm8, %v2845_v10, -inf }
 0xe2c   : > { %2850 = vmax.xlane.f32.xlu0 %v2849_v11  ;;  %v2844_v14 = vsel %vm1217_vm6, %v2842_v58, -1e+09 }
 0xe2d   : > { %v2846_v15 = vsel %vm1221_vm8, %v2844_v14, -inf }
 0xe2e   : > { %2847 = vmax.xlane.f32.xlu1 %v2846_v15  ;;  %v3205_v15 = vld [vmem:[%s8100_s18 + $0x30] sm:$0xff] }
 0xeb5   : > { %v2851_v16 = vpop.xlane.xlu0 %2850 }
 0xeb6   : > { %v2853_v17 = vsub.f32 %v2845_v10, %v2851_v16  ;;  %v3204_v16 = vld [vmem:[%s8100_s18 + $0x28] sm:$0xff] }
 0xeb7   : > { %v2848_v18 = vpop.xlane.xlu1 %2847 }
 0xeb8   : > { %v2856_v19 = vmul.f32 1.442695, %v2853_v17  ;;  %v2852_v20 = vsub.f32 %v2844_v14, %v2848_v18  ;;  %v3206_v14 = vld [vmem:[%s8100_s18 + $0x38] sm:$0xff]  ;;  %v3203_v17 = vld [vmem:[%s8100_s18 + $0x20] sm:$0xff] }
 0xeb9   : > { %6722 = vmatprep.subr.mxu1 %v3206_v14  ;;  %v3202_v18 = vld [vmem:[%s8100_s18 + $0x18] sm:$0xff] }
 0xeba   : > { %7018 = vpow2.f32 %v2856_v19  ;;  %v2854_v21 = vmul.f32 1.442695, %v2852_v20  ;;  %v3201_v19 = vld [vmem:[%s8100_s18 + $0x10] sm:$0xff]  ;;  %v3200_v20 = vld [vmem:[%s8100_s18 + $0x8] sm:$0xff] }
 0xebc   : > { %7020 = vpow2.f32 %v2854_v21  ;;  %v3199_v21 = vld [vmem:[%s8100_s18] sm:$0xff] }
 0xec7   : > { %v7019_v23 = vpop.eup %7018 }
 0xec8   : > { %v2861_v25 = vsel %vm1221_vm8, %v7019_v23, 0.0 }
 0xec9   : > { %v7021_v26 = vpop.eup %7020  ;;  %2862 = vadd.xlane.f32.xlu0 %v2861_v25 }
 0xeca   : > { %v2858_v27 = vsel %vm1221_vm8, %v7021_v26, 0.0 }
 0xecb   : > { %2859 = vadd.xlane.f32.xlu1 %v2858_v27 }
 0xf52   : > { %v2863_v29 = vpop.xlane.xlu0 %2862 }
 0xf53   : > { %7022 = vrcp.f32 %v2863_v29 }
 0xf54   : > { %v2860_v30 = vpop.xlane.xlu1 %2859 }
 0xf55   : > { %7024 = vrcp.f32 %v2860_v30 }
 0xf60   : > { %v7023_v31 = vpop.eup %7022 }
 0xf61   : > { %v2867_v34 = vmul.f32 %v7023_v31, %v7019_v23  ;;  %v6038_v23 = vld [vmem:[%s8099_s17] ss:$0 sm:$0xff] }
 0xf62   : > { %v7025_v32 = vpop.eup %7024 }
 0xf63   : > { %v2866_v33 = vmul.f32 %v7025_v32, %v7021_v26 }
 0xf65   : > { %6703 = vmatprep.mubr.msk.f32.mxu0 %vm1221_vm8, %v2866_v33 }
 0xf66   : > { %6704 = vmatmul.mubr.msk.f32.vlgmr.msra.gmra.mxu0 %vm1221_vm8, %v2867_v34 }
0x1026   : > { %v6705_v35 = vpop.f32.mrf.mxu0 }
0x1028   : > { %v2940_v36 = vpop.f32.mrf.mxu0 }
0x1029   : > { %6708 = vmatprep.mubr.msk.f32.mxu1 %vm1127_vm5, %v2940_v36 }
0x102a   : > { %6709 = vmatmul.mubr.msk.f32.vlgmr.msra.gmra.mxu1 %vm1127_vm5, %v6705_v35 }
0x102b   : > { %6723 = vmatpush3.msra.mxu1 %v3206_v14 }
0x102c   : > { %6724 = vmatprep.subr.mxu1 %v3205_v15 }
0x102d   : > { %6725 = vmatpush3.msra.mxu1 %v3205_v15 }
0x102e   : > { %6726 = vmatprep.subr.mxu1 %v3204_v16 }
0x102f   : > { %6727 = vmatpush3.msra.mxu1 %v3204_v16 }
0x1030   : > { %6728 = vmatprep.subr.mxu1 %v3203_v17 }
0x1031   : > { %6729 = vmatpush3.msra.mxu1 %v3203_v17 }
0x1032   : > { %6730 = vmatprep.subr.mxu1 %v3202_v18 }
0x1033   : > { %6731 = vmatpush3.msra.mxu1 %v3202_v18  ;;  %v6044_v18 = vld [vmem:[%s8102_s20] ss:$0 sm:$0xff] }
0x1034   : > { %6732 = vmatprep.subr.mxu1 %v3201_v19 }
0x1035   : > { %6733 = vmatpush3.msra.mxu1 %v3201_v19 }
0x1036   : > { %6734 = vmatprep.subr.mxu1 %v3200_v20 }
0x1037   : > { %6735 = vmatpush3.msra.mxu1 %v3200_v20 }
0x1038   : > { %6736 = vmatprep.subr.mxu1 %v3199_v21 }
0x1039   : > { %6737 = vmatpush3.msra.mxu1 %v3199_v21 }
0x10ea   : > { %v6710_v37 = vpop.f32.mrf.mxu1 }
0x10eb   : > { %v3033_v39 = vadd.f32 %v6710_v37, %v2490_v2 }
0x10ec   : > { %v3023_v40 = vpop.f32.mrf.mxu1 }
0x10ed   : > { %v3042_v41 = vadd.f32 %v6035_v38, %v3033_v39  ;;  %v3032_v42 = vadd.f32 %v3023_v40, %v2489_v4 }
0x10ef   : > { %v3041_v43 = vadd.f32 %v6035_v38, %v3032_v42  ;;  %v3044_v44 = vadd.f32 %v3042_v41, %v7291_v59 }
0x10f1   : > { %v3050_v45 = vsel %vm819_vm4, %v3044_v44, 0.0  ;;  %v3043_v46 = vadd.f32 %v3041_v43, %v7285_v56  ;;  %v3092_v56 = vld [vmem:[%s8098_s16 + $0x18] sm:$0xff] }
0x10f2   : > { %3051 = vadd.xlane.f32.xlu0 %v3050_v45  ;;  %6711 = vmatprep.subr.mxu0 %v3092_v56 }
0x10f3   : > { %v3047_v47 = vsel %vm819_vm4, %v3043_v46, 0.0  ;;  %6712 = vmatpush3.msra.mxu0 %v3092_v56 }
0x10f4   : > { %3048 = vadd.xlane.f32.xlu1 %v3047_v47  ;;  %6713 = vmatprep.subr.mxu0 %v3091_v61  ;;  %v6041_v47 = vld [vmem:[%s8101_s19] ss:$0 sm:$0xff] }
0x10f5   : > { %6714 = vmatpush3.msra.mxu0 %v3091_v61 }
0x10f6   : > { %6715 = vmatprep.subr.mxu0 %v3090_v62 }
0x10f7   : > { %6716 = vmatpush3.msra.mxu0 %v3090_v62 }
0x10f8   : > { %6717 = vmatprep.subr.mxu0 %v3089_v63 }
0x10f9   : > { %6718 = vmatpush3.msra.mxu0 %v3089_v63 }
0x117b   : > { %v3052_v48 = vpop.xlane.xlu0 %3051 }
0x117c   : > { %v3054_v49 = vmul.f32 0.03125, %v3052_v48 }
0x117d   : > { %v3049_v50 = vpop.xlane.xlu1 %3048 }
0x117e   : > { %v3056_v51 = vsub.f32 %v3044_v44, %v3054_v49  ;;  %v3053_v52 = vmul.f32 0.03125, %v3049_v50 }
0x1180   : > { %v3055_v53 = vsub.f32 %v3043_v46, %v3053_v52  ;;  %v3058_v54 = vmul.f32 %v3056_v51, %v3056_v51 }
0x1182   : > { %v3062_v55 = vsel %vm819_vm4, %v3058_v54, 0.0  ;;  %v3057_v60 = vmul.f32 %v3055_v53, %v3055_v53 }
0x1183   : > { %3063 = vadd.xlane.f32.xlu0 %v3062_v55 }
0x1184   : > { %v3059_v59 = vsel %vm819_vm4, %v3057_v60, 0.0 }
0x1185   : > { %3060 = vadd.xlane.f32.xlu1 %v3059_v59 }
0x120c   : > { %v3064_v0 = vpop.xlane.xlu0 %3063 }
0x120d   : > { %v3066_v1 = vmul.f32 0.03125, %v3064_v0 }
0x120e   : > { %v3061_v2 = vpop.xlane.xlu1 %3060 }
0x120f   : > { %v3068_v3 = vadd.f32 1e-12, %v3066_v1  ;;  %v3065_v4 = vmul.f32 0.03125, %v3061_v2 }
0x1211   : > { %7026 = vrsqrt.f32 %v3068_v3  ;;  %v3067_v5 = vadd.f32 1e-12, %v3065_v4  ;;  %v6049_v4 = vld [vmem:[%s8118_s0 + $0x98] sm:$0xff] }
0x1212   : > { %6741 = vmatprep.subr.mxu0 %v6049_v4 }
0x1213   : > { %7028 = vrsqrt.f32 %v3067_v5  ;;  %v6065_v5 = vld [vmem:[%s8092_s10 + $0x98] sm:$0xff] }
0x1214   : > { %6763 = vmatprep.subr.mxu1 %v6065_v5 }
0x121e   : > { %v7027_v6 = vpop.eup %7026 }
0x121f   : > { %v3072_v8 = vmul.f32 %v7027_v6, %v3056_v51  ;;  %v6048_v6 = vld [vmem:[%s8118_s0 + $0x90] sm:$0xff] }
0x1220   : > { %v7029_v9 = vpop.eup %7028 }
0x1221   : > { %v3071_v12 = vmul.f32 %v7029_v9, %v3055_v53  ;;  %v3080_v13 = vmul.f32 %v6036_v7, %v3072_v8  ;;  %v6047_v8 = vld [vmem:[%s8118_s0 + $0x88] sm:$0xff] }
0x1222   : > { %v6063_v9 = vld [vmem:[%s8092_s10 + $0x88] sm:$0xff] }
0x1223   : > { %v3079_v58 = vmul.f32 %v6036_v7, %v3071_v12  ;;  %v3088_v11 = vadd.f32 %v6037_v57, %v3080_v13  ;;  %v6064_v7 = vld [vmem:[%s8092_s10 + $0x90] sm:$0xff]  ;;  %v6046_v12 = vld [vmem:[%s8118_s0 + $0x80] sm:$0xff] }
0x1224   : > { %v6062_v13 = vld [vmem:[%s8092_s10 + $0x80] sm:$0xff] }
0x1225   : > { %v7626_v10 = vadd.f32 %v6037_v57, %v3079_v58  ;;  %v6057_v57 = vld [vmem:[%s8090_s8 + $0x98] sm:$0xff] }
0x1227   : > { %6719 = vmatprep.mubr.msk.f32.mxu0 %vm819_vm4, %v7626_v10 }
0x1228   : > { %6720 = vmatmul.mubr.msk.f32.vlgmr.msra.gmra.mxu0 %vm819_vm4, %v3088_v11 }
0x1229   : > { %6742 = vmatpush3.msra.mxu0 %v6049_v4 }
0x122a   : > { %6743 = vmatprep.subr.mxu0 %v6048_v6 }
0x122b   : > { %6744 = vmatpush3.msra.mxu0 %v6048_v6 }
0x122c   : > { %6745 = vmatprep.subr.mxu0 %v6047_v8 }
0x122d   : > { %6746 = vmatpush3.msra.mxu0 %v6047_v8 }
0x122e   : > { %6747 = vmatprep.subr.mxu0 %v6046_v12 }
0x122f   : > { %6748 = vmatpush3.msra.mxu0 %v6046_v12 }
0x1230   : > { %6752 = vmatprep.subr.mxu0 %v6057_v57 }
0x12e8   : > { %v6721_v25 = vpop.f32.mrf.mxu0 }
0x12e9   : > { %v3178_v26 = vadd.f32 %v6721_v25, %v6038_v23  ;;  %v6045_v25 = vld [vmem:[%s8103_s21] ss:$0 sm:$0xff] }
0x12ea   : > { %v3172_v27 = vpop.f32.mrf.mxu0 }
0x12eb   : > { %v3182_v28 = vmul.f32 %v3178_v26, %v3178_v26  ;;  %v3173_v29 = vadd.f32 %v6038_v23, %v3172_v27 }
0x12ed   : > { %v3184_v30 = vmul.f32 %v3182_v28, %v3178_v26  ;;  %v3181_v31 = vmul.f32 %v3173_v29, %v3173_v29 }
0x12ef   : > { %v3186_v32 = vmul.f32 0.044715, %v3184_v30  ;;  %v3183_v33 = vmul.f32 %v3181_v31, %v3173_v29  ;;  %v6055_v30 = vld [vmem:[%s8090_s8 + $0x88] sm:$0xff]  ;;  %v6054_v31 = vld [vmem:[%s8090_s8 + $0x80] sm:$0xff] }
0x12f1   : > { %v3188_v34 = vadd.f32 %v3186_v32, %v3178_v26  ;;  %v3185_v35 = vmul.f32 0.044715, %v3183_v33  ;;  %v6067_v32 = vld [vmem:[%s8093_s11 + $0x4] ss:$0 sm:$0xff] }
0x12f3   : > { %v3190_v36 = vmul.f32 0.7978846, %v3188_v34  ;;  %v3187_v37 = vadd.f32 %v3185_v35, %v3173_v29 }
0x12f5   : > { %7030 = vtanh.f32 %v3190_v36  ;;  %v3189_v38 = vmul.f32 0.7978846, %v3187_v37  ;;  %v6051_v36 = vld [vmem:[%s8089_s7 + $0x4] ss:$0 sm:$0xff] }
0x12f7   : > { %7032 = vtanh.f32 %v3189_v38 }
0x1302   : > { %v7031_v39 = vpop.eup %7030 }
0x1303   : > { %v3194_v40 = vadd.f32 1.0, %v7031_v39 }
0x1304   : > { %v7033_v41 = vpop.eup %7032 }
0x1305   : > { %v3193_v42 = vadd.f32 1.0, %v7033_v41  ;;  %v3196_v43 = vmul.f32 0.5, %v3194_v40  ;;  %v6059_v41 = vld [vmem:[%s8091_s9 + $0x4] ss:$0 sm:$0xff] }
0x1307   : > { %v3195_v44 = vmul.f32 0.5, %v3193_v42  ;;  %v3198_v46 = vmul.f32 %v3196_v43, %v3178_v26 }
0x1309   : > { %v3197_v45 = vmul.f32 %v3195_v44, %v3173_v29  ;;  %v6056_v29 = vld [vmem:[%s8090_s8 + $0x90] sm:$0xff] }
0x130b   : > { %6738 = vmatprep.mubr.msk.f32.mxu1 %vm3214_vm9, %v3197_v45 }
0x130c   : > { %6739 = vmatmul.mubr.msk.f32.vlgmr.msra.gmra.mxu1 %vm3214_vm9, %v3198_v46  ;;  %v6088_v46 = vld [vmem:[%s8090_s8 + $0xb8] sm:$0xff] }
0x130d   : > { %6764 = vmatpush3.msra.mxu1 %v6065_v5 }
0x130e   : > { %6765 = vmatprep.subr.mxu1 %v6064_v7 }
0x130f   : > { %6766 = vmatpush3.msra.mxu1 %v6064_v7 }
0x1310   : > { %6767 = vmatprep.subr.mxu1 %v6063_v9 }
0x1311   : > { %6768 = vmatpush3.msra.mxu1 %v6063_v9 }
0x1312   : > { %6769 = vmatprep.subr.mxu1 %v6062_v13 }
0x1313   : > { %6770 = vmatpush3.msra.mxu1 %v6062_v13 }
0x13cc   : > { %v6740_v48 = vpop.f32.mrf.mxu1 }
0x13cd   : > { %v3293_v49 = vadd.f32 %v6740_v48, %v6041_v47  ;;  %v6087_v48 = vld [vmem:[%s8090_s8 + $0xb0] sm:$0xff] }
0x13ce   : > { %v3287_v50 = vpop.f32.mrf.mxu1 }
0x13cf   : > { %v3288_v51 = vadd.f32 %v6041_v47, %v3287_v50  ;;  %v3297_v52 = vadd.f32 %v3293_v49, %v3088_v11  ;;  %v6086_v49 = vld [vmem:[%s8090_s8 + $0xa8] sm:$0xff]  ;;  %v6085_v50 = vld [vmem:[%s8090_s8 + $0xa0] sm:$0xff] }
0x13d1   : > { %v3303_v53 = vsel %vm819_vm4, %v3297_v52, 0.0  ;;  %v3296_v54 = vadd.f32 %v3288_v51, %v7626_v10 }
0x13d2   : > { %3304 = vadd.xlane.f32.xlu0 %v3303_v53 }
0x13d3   : > { %v3300_v55 = vsel %vm819_vm4, %v3296_v54, 0.0 }
0x13d4   : > { %3301 = vadd.xlane.f32.xlu1 %v3300_v55 }
0x145b   : > { %v3305_v60 = vpop.xlane.xlu0 %3304 }
0x145c   : > { %v3307_v59 = vmul.f32 0.03125, %v3305_v60 }
0x145d   : > { %v3302_v56 = vpop.xlane.xlu1 %3301 }
0x145e   : > { %v3309_v61 = vsub.f32 %v3297_v52, %v3307_v59  ;;  %v3306_v62 = vmul.f32 0.03125, %v3302_v56 }
0x1460   : > { %v3308_v63 = vsub.f32 %v3296_v54, %v3306_v62  ;;  %v3311_v0 = vmul.f32 %v3309_v61, %v3309_v61 }
0x1462   : > { %v3315_v1 = vsel %vm819_vm4, %v3311_v0, 0.0  ;;  %v3310_v2 = vmul.f32 %v3308_v63, %v3308_v63 }
0x1463   : > { %3316 = vadd.xlane.f32.xlu0 %v3315_v1 }
0x1464   : > { %v3312_v3 = vsel %vm819_vm4, %v3310_v2, 0.0 }
0x1465   : > { %3313 = vadd.xlane.f32.xlu1 %v3312_v3 }
0x14ec   : > { %v3317_v58 = vpop.xlane.xlu0 %3316 }
0x14ed   : > { %v3319_v10 = vmul.f32 0.03125, %v3317_v58 }
0x14ee   : > { %v3314_v11 = vpop.xlane.xlu1 %3313 }
0x14ef   : > { %v3321_v14 = vadd.f32 1e-12, %v3319_v10  ;;  %v3318_v15 = vmul.f32 0.03125, %v3314_v11 }
0x14f1   : > { %7034 = vrsqrt.f32 %v3321_v14  ;;  %v3320_v16 = vadd.f32 1e-12, %v3318_v15 }
0x14f3   : > { %7036 = vrsqrt.f32 %v3320_v16 }
0x14fe   : > { %v7035_v17 = vpop.eup %7034 }
0x14ff   : > { %v3325_v19 = vmul.f32 %v7035_v17, %v3309_v61  ;;  %v6090_v61 = vld [vmem:[%s8091_s9 + $0x5] ss:$0 sm:$0xff]  ;;  %v6079_v17 = vld [vmem:[%s8118_s0 + $0xb0] sm:$0xff] }
0x1500   : > { %v7037_v20 = vpop.eup %7036 }
0x1501   : > { %v3324_v21 = vmul.f32 %v7037_v20, %v3308_v63  ;;  %v3333_v23 = vmul.f32 %v6044_v18, %v3325_v19  ;;  %v6077_v19 = vld [vmem:[%s8118_s0 + $0xa0] sm:$0xff]  ;;  %v6096_v20 = vld [vmem:[%s8092_s10 + $0xb8] sm:$0xff] }
0x1503   : > { %v3332_v26 = vmul.f32 %v6044_v18, %v3324_v21  ;;  %v7703_v28 = vadd.f32 %v6045_v25, %v3333_v23  ;;  %v6078_v18 = vld [vmem:[%s8118_s0 + $0xa8] sm:$0xff]  ;;  %v6095_v21 = vld [vmem:[%s8092_s10 + $0xb0] sm:$0xff] }
0x1504   : > { %v6094_v23 = vld [vmem:[%s8092_s10 + $0xa8] sm:$0xff] }
0x1505   : > { %v7701_v27 = vadd.f32 %v6045_v25, %v3332_v26  ;;  %v6093_v25 = vld [vmem:[%s8092_s10 + $0xa0] sm:$0xff] }
0x1507   : > { %6749 = vmatprep.mubr.msk.f32.mxu0 %vm819_vm4, %v7701_v27  ;;  %6771 = vmatprep.mubr.msk.f32.mxu1 %vm819_vm4, %v7701_v27 }
0x1508   : > { %6750 = vmatmul.mubr.msk.f32.vlgmr.msra.gmra.mxu0 %vm819_vm4, %v7703_v28  ;;  %6772 = vmatmul.mubr.msk.f32.vlgmr.msra.gmra.mxu1 %vm819_vm4, %v7703_v28 }
0x1509   : > { %6753 = vmatpush3.msra.mxu0 %v6057_v57  ;;  %6760 = vmatprep.mubr.msk.f32.mxu0 %vm819_vm4, %v7701_v27  ;;  %v6080_v57 = vld [vmem:[%s8118_s0 + $0xb8] sm:$0xff] }
0x150a   : > { %6754 = vmatprep.subr.mxu0 %v6056_v29 }
0x150b   : > { %6755 = vmatpush3.msra.mxu0 %v6056_v29 }
0x150c   : > { %6756 = vmatprep.subr.mxu0 %v6055_v30 }
0x150d   : > { %6757 = vmatpush3.msra.mxu0 %v6055_v30 }
0x150e   : > { %6758 = vmatprep.subr.mxu0 %v6054_v31 }
0x150f   : > { %6759 = vmatpush3.msra.mxu0 %v6054_v31  ;;  %v6082_v31 = vld [vmem:[%s8089_s7 + $0x5] ss:$0 sm:$0xff] }
0x1510   : > { %6761 = vmatmul.mubr.msk.f32.vlgmr.msra.gmra.mxu0 %vm819_vm4, %v7703_v28 }
0x15c8   : > { %v6751_v33 = vpop.f32.mrf.mxu0  ;;  %v6773_v34 = vpop.f32.mrf.mxu1 }
0x15c9   : > { %v3609_v35 = vadd.f32 %v6773_v34, %v6067_v32  ;;  %v3433_v47 = vadd.f32 %v6751_v33, %v6051_v36 }
0x15ca   : > { %v3427_v37 = vpop.f32.mrf.mxu0  ;;  %v3603_v38 = vpop.f32.mrf.mxu1 }
0x15cb   : > { %v3428_v39 = vadd.f32 %v6051_v36, %v3427_v37  ;;  %v3604_v40 = vadd.f32 %v6067_v32, %v3603_v38  ;;  %6781 = vmatprep.subr.mxu1 %v3609_v35 }
0x15cc   : > { %6782 = vmatpush3.msra.mxu1 %v3609_v35  ;;  %v6098_v35 = vld [vmem:[%s8093_s11 + $0x5] ss:$0 sm:$0xff] }
0x15cd   : > { %6778 = vmatprep.mubr.msk.f32.mxu0 %vm1127_vm5, %v3428_v39  ;;  %6783 = vmatprep.subr.mxu1 %v3604_v40 }
0x15ce   : > { %6784 = vmatpush3.msra.mxu1 %v3604_v40 }
0x15cf   : > { %6788 = vmatprep.subr.mxu1 %v6080_v57 }
0x15d0   : > { %v6762_v42 = vpop.f32.mrf.mxu0 }
0x15d1   : > { %v3521_v43 = vadd.f32 %v6762_v42, %v6059_v41 }
0x15d2   : > { %v3515_v44 = vpop.f32.mrf.mxu0 }
0x15d3   : > { %v3516_v45 = vadd.f32 %v6059_v41, %v3515_v44  ;;  %6774 = vmatprep.subr.msk.mxu0 %vm1127_vm5, %v3521_v43 }
0x15d4   : > { %6775 = vmatpush3.xpose.msk.msra.mxu0 %vm1127_vm5, %v3521_v43 }
0x15d5   : > { %6776 = vmatprep.subr.msk.mxu0 %vm1127_vm5, %v3516_v45 }
0x15d8   : > { %6777 = vmatpush3.xpose.msk.msra.mxu0 %vm1127_vm5, %v3516_v45 }
0x15d9   : > { %6799 = vmatprep.subr.mxu0 %v6088_v46 }
0x15db   : > { %6779 = vmatmul.mubr.msk.f32.vlgmr.msra.gmra.mxu0 %vm1127_vm5, %v3433_v47 }
0x15dc   : > { %6800 = vmatpush3.msra.mxu0 %v6088_v46  ;;  %6807 = vmatprep.mubr.msk.f32.mxu0 %vm819_vm4, %v7701_v27 }
0x15dd   : > { %6801 = vmatprep.subr.mxu0 %v6087_v48 }
0x15de   : > { %6802 = vmatpush3.msra.mxu0 %v6087_v48 }
0x15df   : > { %6803 = vmatprep.subr.mxu0 %v6086_v49 }
0x15e0   : > { %6804 = vmatpush3.msra.mxu0 %v6086_v49 }
0x15e1   : > { %6805 = vmatprep.subr.mxu0 %v6085_v50 }
0x15e2   : > { %6806 = vmatpush3.msra.mxu0 %v6085_v50 }
0x15e3   : > { %6808 = vmatmul.mubr.msk.f32.vlgmr.msra.gmra.mxu0 %vm819_vm4, %v7703_v28 }
0x169b   : > { %v6780_v51 = vpop.f32.mrf.mxu0 }
0x169c   : > { %v3700_v52 = vmul.f32 0.35355338, %v6780_v51 }
0x169d   : > { %v3690_v53 = vpop.f32.mrf.mxu0 }
0x169e   : > { %v3699_v54 = vmul.f32 0.35355338, %v3690_v53  ;;  %v3702_v55 = vsel %vm1218_vm7, %v3700_v52, -1e+09 }
0x169f   : > { %v3706_v60 = vsel %vm1221_vm8, %v3702_v55, -inf }
0x16a0   : > { %3707 = vmax.xlane.f32.xlu0 %v3706_v60  ;;  %v3701_v59 = vsel %vm1217_vm6, %v3699_v54, -1e+09 }
0x16a1   : > { %v3703_v56 = vsel %vm1221_vm8, %v3701_v59, -inf }
0x16a2   : > { %3704 = vmax.xlane.f32.xlu1 %v3703_v56  ;;  %v6076_v56 = vld [vmem:[%s8094_s12 + $0x20] sm:$0xff] }
0x16a3   : > { %v6809_v62 = vpop.f32.mrf.mxu0 }
0x16a4   : > { %v3981_v63 = vadd.f32 %v6809_v62, %v6090_v61 }
0x16a5   : > { %v3975_v0 = vpop.f32.mrf.mxu0 }
0x16a6   : > { %v3976_v1 = vadd.f32 %v6090_v61, %v3975_v0  ;;  %6821 = vmatprep.subr.msk.mxu0 %vm1127_vm5, %v3981_v63  ;;  %v6107_v61 = vld [vmem:[%s8094_s12 + $0x28] sm:$0xff] }
0x16a7   : > { %6822 = vmatpush3.xpose.msk.msra.mxu0 %vm1127_vm5, %v3981_v63 }
0x16a8   : > { %6823 = vmatprep.subr.msk.mxu0 %vm1127_vm5, %v3976_v1 }
0x16ab   : > { %6824 = vmatpush3.xpose.msk.msra.mxu0 %vm1127_vm5, %v3976_v1 }
0x16ac   : > { %6835 = vmatprep.subr.mxu0 %v6107_v61 }
0x1729   : > { %v3708_v2 = vpop.xlane.xlu0 %3707 }
0x172a   : > { %v3710_v3 = vsub.f32 %v3702_v55, %v3708_v2 }
0x172b   : > { %v3705_v4 = vpop.xlane.xlu1 %3704 }
0x172c   : > { %v3713_v5 = vmul.f32 1.442695, %v3710_v3  ;;  %v3709_v6 = vsub.f32 %v3701_v59, %v3705_v4  ;;  %v6123_v4 = vld [vmem:[%s8090_s8 + $0xd8] sm:$0xff] }
0x172e   : > { %7038 = vpow2.f32 %v3713_v5  ;;  %v3711_v7 = vmul.f32 1.442695, %v3709_v6  ;;  %v6122_v5 = vld [vmem:[%s8090_s8 + $0xd0] sm:$0xff]  ;;  %v6121_v6 = vld [vmem:[%s8090_s8 + $0xc8] sm:$0xff] }
0x1730   : > { %7040 = vpow2.f32 %v3711_v7  ;;  %v6120_v7 = vld [vmem:[%s8090_s8 + $0xc0] sm:$0xff] }
0x173b   : > { %v7039_v8 = vpop.eup %7038 }
0x173c   : > { %v3718_v9 = vsel %vm1221_vm8, %v7039_v8, 0.0 }
0x173d   : > { %v7041_v12 = vpop.eup %7040  ;;  %3719 = vadd.xlane.f32.xlu0 %v3718_v9 }
0x173e   : > { %v3715_v13 = vsel %vm1221_vm8, %v7041_v12, 0.0 }
0x173f   : > { %3716 = vadd.xlane.f32.xlu1 %v3715_v13  ;;  %v6114_v13 = vld [vmem:[%s8118_s0 + $0xd0] sm:$0xff] }
0x17c6   : > { %v3720_v58 = vpop.xlane.xlu0 %3719 }
0x17c7   : > { %7042 = vrcp.f32 %v3720_v58 }
0x17c8   : > { %v3717_v10 = vpop.xlane.xlu1 %3716 }
0x17c9   : > { %7044 = vrcp.f32 %v3717_v10  ;;  %v6112_v10 = vld [vmem:[%s8118_s0 + $0xc0] sm:$0xff] }
0x17d4   : > { %v7043_v11 = vpop.eup %7042 }
0x17d5   : > { %v3724_v16 = vmul.f32 %v7043_v11, %v7039_v8  ;;  %v6115_v8 = vld [vmem:[%s8118_s0 + $0xd8] sm:$0xff] }
0x17d6   : > { %v7045_v14 = vpop.eup %7044  ;;  %v6131_v11 = vld [vmem:[%s8092_s10 + $0xd8] sm:$0xff] }
0x17d7   : > { %v3723_v15 = vmul.f32 %v7045_v14, %v7041_v12 }
0x17d9   : > { %6785 = vmatprep.mubr.msk.f32.mxu1 %vm1221_vm8, %v3723_v15  ;;  %v6125_v15 = vld [vmem:[%s8091_s9 + $0x6] ss:$0 sm:$0xff] }
0x17da   : > { %6786 = vmatmul.mubr.msk.f32.vlgmr.msra.gmra.mxu1 %vm1221_vm8, %v3724_v16  ;;  %v6130_v16 = vld [vmem:[%s8092_s10 + $0xd0] sm:$0xff] }
0x17db   : > { %6789 = vmatpush3.msra.mxu1 %v6080_v57  ;;  %6796 = vmatprep.mubr.msk.f32.mxu1 %vm819_vm4, %v7701_v27  ;;  %v6113_v57 = vld [vmem:[%s8118_s0 + $0xc8] sm:$0xff] }
0x17dc   : > { %6790 = vmatprep.subr.mxu1 %v6079_v17 }
0x17dd   : > { %6791 = vmatpush3.msra.mxu1 %v6079_v17 }
0x17de   : > { %6792 = vmatprep.subr.mxu1 %v6078_v18 }
0x17df   : > { %6793 = vmatpush3.msra.mxu1 %v6078_v18 }
0x17e0   : > { %6794 = vmatprep.subr.mxu1 %v6077_v19 }
0x17e1   : > { %6795 = vmatpush3.msra.mxu1 %v6077_v19  ;;  %v6129_v19 = vld [vmem:[%s8092_s10 + $0xc8] sm:$0xff] }
0x17e2   : > { %6797 = vmatmul.mubr.msk.f32.vlgmr.msra.gmra.mxu1 %vm819_vm4, %v7703_v28  ;;  %6810 = vmatprep.subr.mxu1 %v6096_v20 }
0x17e3   : > { %6811 = vmatpush3.msra.mxu1 %v6096_v20  ;;  %6818 = vmatprep.mubr.msk.f32.mxu1 %vm819_vm4, %v7701_v27 }
0x17e4   : > { %6812 = vmatprep.subr.mxu1 %v6095_v21 }
0x17e5   : > { %6813 = vmatpush3.msra.mxu1 %v6095_v21 }
0x17e6   : > { %6814 = vmatprep.subr.mxu1 %v6094_v23 }
0x17e7   : > { %6815 = vmatpush3.msra.mxu1 %v6094_v23  ;;  %v6128_v23 = vld [vmem:[%s8092_s10 + $0xc0] sm:$0xff] }
0x17e8   : > { %6816 = vmatprep.subr.mxu1 %v6093_v25 }
0x17e9   : > { %6817 = vmatpush3.msra.mxu1 %v6093_v25 }
0x17ea   : > { %6819 = vmatmul.mubr.msk.f32.vlgmr.msra.gmra.mxu1 %vm819_vm4, %v7703_v28 }
0x189a   : > { %v6787_v26 = vpop.f32.mrf.mxu1 }
0x189c   : > { %v3797_v29 = vpop.f32.mrf.mxu1 }
0x18a2   : > { %v6798_v30 = vpop.f32.mrf.mxu1 }
0x18a3   : > { %v3893_v34 = vadd.f32 %v6798_v30, %v6082_v31  ;;  %v6117_v30 = vld [vmem:[%s8089_s7 + $0x6] ss:$0 sm:$0xff] }
0x18a4   : > { %v3887_v32 = vpop.f32.mrf.mxu1 }
0x18a5   : > { %v3888_v33 = vadd.f32 %v6082_v31, %v3887_v32 }
0x18a7   : > { %6825 = vmatprep.mubr.msk.f32.mxu0 %vm1127_vm5, %v3888_v33 }
0x18a8   : > { %6826 = vmatmul.mubr.msk.f32.vlgmr.msra.gmra.mxu0 %vm1127_vm5, %v3893_v34  ;;  %v6133_v34 = vld [vmem:[%s8093_s11 + $0x6] ss:$0 sm:$0xff] }
0x18a9   : > { %6836 = vmatpush3.msra.mxu0 %v6107_v61 }
0x18aa   : > { %v6820_v36 = vpop.f32.mrf.mxu1  ;;  %6845 = vmatprep.subr.mxu0 %v6115_v8 }
0x18ab   : > { %v4069_v37 = vadd.f32 %v6820_v36, %v6098_v35 }
0x18ac   : > { %v4063_v38 = vpop.f32.mrf.mxu1 }
0x18ad   : > { %v4064_v39 = vadd.f32 %v6098_v35, %v4063_v38  ;;  %6828 = vmatprep.subr.mxu1 %v4069_v37 }
0x18ae   : > { %6829 = vmatpush3.msra.mxu1 %v4069_v37 }
0x18af   : > { %6830 = vmatprep.subr.mxu1 %v4064_v39 }
0x18b0   : > { %6831 = vmatpush3.msra.mxu1 %v4064_v39 }
0x18b1   : > { %6840 = vmatprep.subr.mxu1 %v6076_v56 }
0x1968   : > { %v6827_v40 = vpop.f32.mrf.mxu0 }
0x1969   : > { %v4160_v41 = vmul.f32 0.35355338, %v6827_v40 }
0x196a   : > { %v4150_v42 = vpop.f32.mrf.mxu0 }
0x196b   : > { %v4159_v43 = vmul.f32 0.35355338, %v4150_v42  ;;  %v4162_v44 = vsel %vm1218_vm7, %v4160_v41, -1e+09 }
0x196c   : > { %v4166_v45 = vsel %vm1221_vm8, %v4162_v44, -inf }
0x196d   : > { %4167 = vmax.xlane.f32.xlu0 %v4166_v45  ;;  %v4161_v46 = vsel %vm1217_vm6, %v4159_v43, -1e+09 }
0x196e   : > { %v4163_v47 = vsel %vm1221_vm8, %v4161_v46, -inf }
0x196f   : > { %4164 = vmax.xlane.f32.xlu1 %v4163_v47 }
0x19f6   : > { %v4168_v48 = vpop.xlane.xlu0 %4167 }
0x19f7   : > { %v4170_v49 = vsub.f32 %v4162_v44, %v4168_v48 }
0x19f8   : > { %v4165_v50 = vpop.xlane.xlu1 %4164 }
0x19f9   : > { %v4173_v51 = vmul.f32 1.442695, %v4170_v49  ;;  %v4169_v52 = vsub.f32 %v4161_v46, %v4165_v50 }
0x19fb   : > { %7046 = vpow2.f32 %v4173_v51  ;;  %v4171_v53 = vmul.f32 1.442695, %v4169_v52 }
0x19fd   : > { %7048 = vpow2.f32 %v4171_v53 }
0x1a08   : > { %v7047_v54 = vpop.eup %7046 }
0x1a09   : > { %v4178_v55 = vsel %vm1221_vm8, %v7047_v54, 0.0 }
0x1a0a   : > { %v7049_v60 = vpop.eup %7048  ;;  %4179 = vadd.xlane.f32.xlu0 %v4178_v55 }
0x1a0b   : > { %v4175_v59 = vsel %vm1221_vm8, %v7049_v60, 0.0 }
0x1a0c   : > { %4176 = vadd.xlane.f32.xlu1 %v4175_v59  ;;  %v6148_v59 = vld [vmem:[%s8118_s0 + $0xf8] sm:$0xff] }
0x1a93   : > { %v4180_v62 = vpop.xlane.xlu0 %4179 }
0x1a94   : > { %7050 = vrcp.f32 %v4180_v62 }
0x1a95   : > { %v4177_v63 = vpop.xlane.xlu1 %4176 }
0x1a96   : > { %7052 = vrcp.f32 %v4177_v63 }
0x1aa1   : > { %v7051_v0 = vpop.eup %7050 }
0x1aa2   : > { %v4184_v3 = vmul.f32 %v7051_v0, %v7047_v54 }
0x1aa3   : > { %v7053_v1 = vpop.eup %7052 }
0x1aa4   : > { %v4183_v2 = vmul.f32 %v7053_v1, %v7049_v60 }
0x1aa6   : > { %6832 = vmatprep.mubr.msk.f32.mxu1 %vm1221_vm8, %v4183_v2 }
0x1aa7   : > { %6833 = vmatmul.mubr.msk.f32.vlgmr.msra.gmra.mxu1 %vm1221_vm8, %v4184_v3  ;;  %v6147_v3 = vld [vmem:[%s8118_s0 + $0xf0] sm:$0xff] }
0x1aa8   : > { %6842 = vmatprep.mubr.msk.f32.mxu1 %vm1127_vm5, %v3797_v29  ;;  %6841 = vmatpush3.msra.mxu1 %v6076_v56  ;;  %v6142_v56 = vld [vmem:[%s8094_s12 + $0x30] sm:$0xff] }
0x1aa9   : > { %6856 = vmatprep.subr.mxu1 %v6123_v4 }
0x1aab   : > { %6843 = vmatmul.mubr.msk.f32.vlgmr.msra.gmra.mxu1 %vm1127_vm5, %v6787_v26 }
0x1aac   : > { %6857 = vmatpush3.msra.mxu1 %v6123_v4  ;;  %6864 = vmatprep.mubr.msk.f32.mxu1 %vm819_vm4, %v7701_v27  ;;  %v6146_v4 = vld [vmem:[%s8118_s0 + $0xe8] sm:$0xff] }
0x1aad   : > { %6858 = vmatprep.subr.mxu1 %v6122_v5 }
0x1aae   : > { %6859 = vmatpush3.msra.mxu1 %v6122_v5  ;;  %v6145_v5 = vld [vmem:[%s8118_s0 + $0xe0] sm:$0xff] }
0x1aaf   : > { %6860 = vmatprep.subr.mxu1 %v6121_v6 }
0x1ab0   : > { %6861 = vmatpush3.msra.mxu1 %v6121_v6  ;;  %v6164_v6 = vld [vmem:[%s8092_s10 + $0xf8] sm:$0xff] }
0x1ab1   : > { %6862 = vmatprep.subr.mxu1 %v6120_v7 }
0x1ab2   : > { %6863 = vmatpush3.msra.mxu1 %v6120_v7  ;;  %v6163_v7 = vld [vmem:[%s8092_s10 + $0xf0] sm:$0xff] }
0x1ab3   : > { %6865 = vmatmul.mubr.msk.f32.vlgmr.msra.gmra.mxu1 %vm819_vm4, %v7703_v28 }
0x1b67   : > { %v6834_v9 = vpop.f32.mrf.mxu1 }
0x1b69   : > { %v4257_v12 = vpop.f32.mrf.mxu1 }
0x1b6a   : > { %6837 = vmatprep.mubr.msk.f32.mxu0 %vm1127_vm5, %v4257_v12  ;;  %v6156_v12 = vld [vmem:[%s8090_s8 + $0xf8] sm:$0xff] }
0x1b6b   : > { %6838 = vmatmul.mubr.msk.f32.vlgmr.msra.gmra.mxu0 %vm1127_vm5, %v6834_v9  ;;  %v7861_v58 = vpop.f32.mrf.mxu1  ;;  %v6161_v9 = vld [vmem:[%s8092_s10 + $0xe0] sm:$0xff] }
0x1b6c   : > { %6846 = vmatpush3.msra.mxu0 %v6115_v8  ;;  %6853 = vmatprep.mubr.msk.f32.mxu0 %vm819_vm4, %v7701_v27  ;;  %v6162_v8 = vld [vmem:[%s8092_s10 + $0xe8] sm:$0xff] }
0x1b6d   : > { %6847 = vmatprep.subr.mxu0 %v6114_v13  ;;  %v7869_v14 = vpop.f32.mrf.mxu1 }
0x1b6e   : > { %6848 = vmatpush3.msra.mxu0 %v6114_v13 }
0x1b6f   : > { %6849 = vmatprep.subr.mxu0 %v6113_v57 }
0x1b70   : > { %6850 = vmatpush3.msra.mxu0 %v6113_v57 }
0x1b71   : > { %6851 = vmatprep.subr.mxu0 %v6112_v10 }
0x1b72   : > { %6852 = vmatpush3.msra.mxu0 %v6112_v10  ;;  %v6155_v10 = vld [vmem:[%s8090_s8 + $0xf0] sm:$0xff] }
0x1b73   : > { %6854 = vmatmul.mubr.msk.f32.vlgmr.msra.gmra.mxu0 %vm819_vm4, %v7703_v28  ;;  %v6866_v17 = vpop.f32.mrf.mxu1  ;;  %6867 = vmatprep.subr.mxu0 %v6131_v11 }
0x1b74   : > { %v4603_v18 = vadd.f32 %v6866_v17, %v6125_v15  ;;  %6868 = vmatpush3.msra.mxu0 %v6131_v11  ;;  %6875 = vmatprep.mubr.msk.f32.mxu0 %vm819_vm4, %v7701_v27  ;;  %v6154_v11 = vld [vmem:[%s8090_s8 + $0xe8] sm:$0xff] }
0x1b75   : > { %v4597_v20 = vpop.f32.mrf.mxu1  ;;  %6869 = vmatprep.subr.mxu0 %v6130_v16 }
0x1b76   : > { %v4598_v21 = vadd.f32 %v6125_v15, %v4597_v20  ;;  %6870 = vmatpush3.msra.mxu0 %v6130_v16  ;;  %6878 = vmatprep.subr.msk.mxu1 %vm1127_vm5, %v4603_v18  ;;  %v6150_v15 = vld [vmem:[%s8089_s7 + $0x7] ss:$0 sm:$0xff] }
0x1b77   : > { %6871 = vmatprep.subr.mxu0 %v6129_v19  ;;  %6879 = vmatpush3.xpose.msk.msra.mxu1 %vm1127_vm5, %v4603_v18  ;;  %v6153_v16 = vld [vmem:[%s8090_s8 + $0xe0] sm:$0xff] }
0x1b78   : > { %6872 = vmatpush3.msra.mxu0 %v6129_v19  ;;  %6880 = vmatprep.subr.msk.mxu1 %vm1127_vm5, %v4598_v21 }
0x1b79   : > { %6873 = vmatprep.subr.mxu0 %v6128_v23 }
0x1b7a   : > { %6874 = vmatpush3.msra.mxu0 %v6128_v23 }
0x1b7b   : > { %6876 = vmatmul.mubr.msk.f32.vlgmr.msra.gmra.mxu0 %vm819_vm4, %v7703_v28  ;;  %6881 = vmatpush3.xpose.msk.msra.mxu1 %vm1127_vm5, %v4598_v21  ;;  %v6166_v21 = vld [vmem:[%s8093_s11 + $0x7] ss:$0 sm:$0xff] }
0x1b7c   : > { %6892 = vmatprep.subr.mxu1 %v6142_v56 }
0x1c2b   : > { %v7893_v25 = vpop.f32.mrf.mxu0 }
0x1c2d   : > { %v7895_v26 = vpop.f32.mrf.mxu0 }
0x1c33   : > { %v6855_v29 = vpop.f32.mrf.mxu0 }
0x1c34   : > { %v4515_v33 = vadd.f32 %v6855_v29, %v6117_v30 }
0x1c35   : > { %v4509_v31 = vpop.f32.mrf.mxu0 }
0x1c36   : > { %v4510_v32 = vadd.f32 %v6117_v30, %v4509_v31 }
0x1c38   : > { %6882 = vmatprep.mubr.msk.f32.mxu1 %vm1127_vm5, %v4510_v32  ;;  %v4427_v32 = vadd.f32 %v7861_v58, %v7893_v25 }
0x1c39   : > { %6883 = vmatmul.mubr.msk.f32.vlgmr.msra.gmra.mxu1 %vm1127_vm5, %v4515_v33 }
0x1c3a   : > { %6893 = vmatpush3.msra.mxu1 %v6142_v56 }
0x1c3b   : > { %v6877_v35 = vpop.f32.mrf.mxu0  ;;  %6908 = vmatprep.subr.mxu1 %v6156_v12 }
0x1c3c   : > { %v4691_v36 = vadd.f32 %v6877_v35, %v6133_v34 }
0x1c3d   : > { %v4685_v37 = vpop.f32.mrf.mxu0 }
0x1c3e   : > { %v4686_v38 = vadd.f32 %v6133_v34, %v4685_v37  ;;  %6885 = vmatprep.subr.mxu0 %v4691_v36  ;;  %v4422_v34 = vadd.f32 %v7869_v14, %v7895_v26 }
0x1c3f   : > { %6886 = vmatpush3.msra.mxu0 %v4691_v36 }
0x1c40   : > { %6887 = vmatprep.subr.mxu0 %v4686_v38 }
0x1c41   : > { %6888 = vmatpush3.msra.mxu0 %v4686_v38  ;;  %v6158_v38 = vld [vmem:[%s8091_s9 + $0x7] ss:$0 sm:$0xff] }
0x1c42   : > { %6897 = vmatprep.subr.mxu0 %v6148_v59 }
0x1cf9   : > { %v6884_v39 = vpop.f32.mrf.mxu1 }
0x1cfa   : > { %v4782_v40 = vmul.f32 0.35355338, %v6884_v39 }
0x1cfb   : > { %v4772_v41 = vpop.f32.mrf.mxu1 }
0x1cfc   : > { %v4781_v42 = vmul.f32 0.35355338, %v4772_v41  ;;  %v4784_v43 = vsel %vm1218_vm7, %v4782_v40, -1e+09 }
0x1cfd   : > { %v4788_v44 = vsel %vm1221_vm8, %v4784_v43, -inf }
0x1cfe   : > { %4789 = vmax.xlane.f32.xlu0 %v4788_v44  ;;  %v4783_v45 = vsel %vm1217_vm6, %v4781_v42, -1e+09 }
0x1cff   : > { %v4785_v46 = vsel %vm1221_vm8, %v4783_v45, -inf }
0x1d00   : > { %4786 = vmax.xlane.f32.xlu1 %v4785_v46 }
0x1d87   : > { %v4790_v47 = vpop.xlane.xlu0 %4789 }
0x1d88   : > { %v4792_v48 = vsub.f32 %v4784_v43, %v4790_v47 }
0x1d89   : > { %v4787_v49 = vpop.xlane.xlu1 %4786 }
0x1d8a   : > { %v4795_v50 = vmul.f32 1.442695, %v4792_v48  ;;  %v4791_v51 = vsub.f32 %v4783_v45, %v4787_v49 }
0x1d8c   : > { %7054 = vpow2.f32 %v4795_v50  ;;  %v4793_v52 = vmul.f32 1.442695, %v4791_v51 }
0x1d8e   : > { %7056 = vpow2.f32 %v4793_v52 }
0x1d99   : > { %v7055_v53 = vpop.eup %7054 }
0x1d9a   : > { %v4800_v54 = vsel %vm1221_vm8, %v7055_v53, 0.0 }
0x1d9b   : > { %v7057_v55 = vpop.eup %7056  ;;  %4801 = vadd.xlane.f32.xlu0 %v4800_v54 }
0x1d9c   : > { %v4797_v60 = vsel %vm1221_vm8, %v7057_v55, 0.0 }
0x1d9d   : > { %4798 = vadd.xlane.f32.xlu1 %v4797_v60 }
0x1e24   : > { %v4802_v61 = vpop.xlane.xlu0 %4801 }
0x1e25   : > { %7058 = vrcp.f32 %v4802_v61 }
0x1e26   : > { %v4799_v62 = vpop.xlane.xlu1 %4798 }
0x1e27   : > { %7060 = vrcp.f32 %v4799_v62 }
0x1e32   : > { %v7059_v63 = vpop.eup %7058 }
0x1e33   : > { %v4806_v2 = vmul.f32 %v7059_v63, %v7055_v53 }
0x1e34   : > { %v7061_v0 = vpop.eup %7060 }
0x1e35   : > { %v4805_v1 = vmul.f32 %v7061_v0, %v7057_v55 }
0x1e37   : > { %6889 = vmatprep.mubr.msk.f32.mxu0 %vm1221_vm8, %v4805_v1 }
0x1e38   : > { %6890 = vmatmul.mubr.msk.f32.vlgmr.msra.gmra.mxu0 %vm1221_vm8, %v4806_v2 }
0x1e39   : > { %6898 = vmatpush3.msra.mxu0 %v6148_v59  ;;  %6905 = vmatprep.mubr.msk.f32.mxu0 %vm819_vm4, %v7701_v27 }
0x1e3a   : > { %6899 = vmatprep.subr.mxu0 %v6147_v3 }
0x1e3b   : > { %6900 = vmatpush3.msra.mxu0 %v6147_v3  ;;  %v6179_v3 = vld [vmem:[%s8095_s13 + $0x1] ss:$0 sm:$0xff] }
0x1e3c   : > { %6901 = vmatprep.subr.mxu0 %v6146_v4 }
0x1e3d   : > { %6902 = vmatpush3.msra.mxu0 %v6146_v4 }
0x1e3e   : > { %6903 = vmatprep.subr.mxu0 %v6145_v5 }
0x1e3f   : > { %6904 = vmatpush3.msra.mxu0 %v6145_v5 }
0x1e40   : > { %6906 = vmatmul.mubr.msk.f32.vlgmr.msra.gmra.mxu0 %vm819_vm4, %v7703_v28  ;;  %6919 = vmatprep.subr.mxu0 %v6164_v6 }
0x1e41   : > { %6920 = vmatpush3.msra.mxu0 %v6164_v6  ;;  %6927 = vmatprep.mubr.msk.f32.mxu0 %vm819_vm4, %v7701_v27 }
0x1e42   : > { %6921 = vmatprep.subr.mxu0 %v6163_v7 }
0x1e43   : > { %6922 = vmatpush3.msra.mxu0 %v6163_v7 }
0x1e44   : > { %6923 = vmatprep.subr.mxu0 %v6162_v8 }
0x1e45   : > { %6924 = vmatpush3.msra.mxu0 %v6162_v8 }
0x1e46   : > { %6925 = vmatprep.subr.mxu0 %v6161_v9 }
0x1e47   : > { %6926 = vmatpush3.msra.mxu0 %v6161_v9 }
0x1e48   : > { %6928 = vmatmul.mubr.msk.f32.vlgmr.msra.gmra.mxu0 %vm819_vm4, %v7703_v28 }
0x1ef8   : > { %v6891_v13 = vpop.f32.mrf.mxu0 }
0x1efa   : > { %v4879_v57 = vpop.f32.mrf.mxu0 }
0x1efb   : > { %6894 = vmatprep.mubr.msk.f32.mxu1 %vm1127_vm5, %v4879_v57 }
0x1efc   : > { %6895 = vmatmul.mubr.msk.f32.vlgmr.msra.gmra.mxu1 %vm1127_vm5, %v6891_v13 }
0x1efd   : > { %6909 = vmatpush3.msra.mxu1 %v6156_v12  ;;  %6916 = vmatprep.mubr.msk.f32.mxu1 %vm819_vm4, %v7701_v27 }
0x1efe   : > { %6910 = vmatprep.subr.mxu1 %v6155_v10 }
0x1eff   : > { %6911 = vmatpush3.msra.mxu1 %v6155_v10 }
0x1f00   : > { %v6907_v17 = vpop.f32.mrf.mxu0  ;;  %6912 = vmatprep.subr.mxu1 %v6154_v11 }
0x1f01   : > { %v5058_v18 = vadd.f32 %v6907_v17, %v6150_v15  ;;  %6913 = vmatpush3.msra.mxu1 %v6154_v11 }
0x1f02   : > { %v5052_v19 = vpop.f32.mrf.mxu0  ;;  %6914 = vmatprep.subr.mxu1 %v6153_v16 }
0x1f03   : > { %v5053_v20 = vadd.f32 %v6150_v15, %v5052_v19  ;;  %6915 = vmatpush3.msra.mxu1 %v6153_v16 }
0x1f04   : > { %6917 = vmatmul.mubr.msk.f32.vlgmr.msra.gmra.mxu1 %vm819_vm4, %v7703_v28 }
0x1f05   : > { %6934 = vmatprep.mubr.msk.f32.mxu1 %vm1127_vm5, %v5053_v20 }
0x1f08   : > { %v6929_v23 = vpop.f32.mrf.mxu0 }
0x1f09   : > { %v5234_v29 = vadd.f32 %v6929_v23, %v6166_v21  ;;  %v6186_v23 = vld [vmem:[%s8098_s16 + $0x30] sm:$0xff] }
0x1f0a   : > { %v5228_v30 = vpop.f32.mrf.mxu0 }
0x1f0b   : > { %v5229_v31 = vadd.f32 %v6166_v21, %v5228_v30  ;;  %6937 = vmatprep.subr.mxu0 %v5234_v29  ;;  %v6184_v30 = vld [vmem:[%s8098_s16 + $0x20] sm:$0xff] }
0x1f0c   : > { %6938 = vmatpush3.msra.mxu0 %v5234_v29  ;;  %v6185_v29 = vld [vmem:[%s8098_s16 + $0x28] sm:$0xff] }
0x1f0d   : > { %6939 = vmatprep.subr.mxu0 %v5229_v31 }
0x1f0e   : > { %6940 = vmatpush3.msra.mxu0 %v5229_v31 }
0x1fbc   : > { %v6896_v33 = vpop.f32.mrf.mxu1 }
0x1fbd   : > { %v4972_v35 = vadd.f32 %v6896_v33, %v4427_v32 }
0x1fbe   : > { %v4962_v36 = vpop.f32.mrf.mxu1 }
0x1fbf   : > { %v4971_v37 = vadd.f32 %v4962_v36, %v4422_v34 }
0x1fc4   : > { %v6918_v39 = vpop.f32.mrf.mxu1 }
0x1fc5   : > { %v5146_v40 = vadd.f32 %v6918_v39, %v6158_v38 }
0x1fc6   : > { %v5140_v41 = vpop.f32.mrf.mxu1 }
0x1fc7   : > { %v5141_v42 = vadd.f32 %v6158_v38, %v5140_v41  ;;  %6930 = vmatprep.subr.msk.mxu1 %vm1127_vm5, %v5146_v40  ;;  %v6182_v38 = vld [vmem:[%s8096_s14 + $0x1] ss:$0 sm:$0xff] }
0x1fc8   : > { %6931 = vmatpush3.xpose.msk.msra.mxu1 %vm1127_vm5, %v5146_v40 }
0x1fc9   : > { %6932 = vmatprep.subr.msk.mxu1 %vm1127_vm5, %v5141_v42 }
0x1fcc   : > { %6933 = vmatpush3.xpose.msk.msra.mxu1 %vm1127_vm5, %v5141_v42 }
0x1fcd   : > { %6944 = vmatprep.subr.mxu1 %v6175_v22 }
0x1fcf   : > { %6935 = vmatmul.mubr.msk.f32.vlgmr.msra.gmra.mxu1 %vm1127_vm5, %v5058_v18 }
0x1fd0   : > { %6945 = vmatpush3.msra.mxu1 %v6175_v22 }
0x208f   : > { %v6936_v58 = vpop.f32.mrf.mxu1 }
0x2090   : > { %v5325_v14 = vmul.f32 0.35355338, %v6936_v58  ;;  %v6183_v58 = vld [vmem:[%s8097_s15 + $0x1] ss:$0 sm:$0xff] }
0x2091   : > { %v5315_v25 = vpop.f32.mrf.mxu1 }
0x2092   : > { %v5324_v26 = vmul.f32 0.35355338, %v5315_v25  ;;  %v5327_v43 = vsel %vm1218_vm7, %v5325_v14, -1e+09 }
0x2093   : > { %v5331_v44 = vsel %vm1221_vm8, %v5327_v43, -inf }
0x2094   : > { %5332 = vmax.xlane.f32.xlu0 %v5331_v44  ;;  %v5326_v45 = vsel %vm1217_vm6, %v5324_v26, -1e+09  ;;  %v6198_v44 = vld [vmem:[%s8100_s18 + $0x70] sm:$0xff] }
0x2095   : > { %v5328_v46 = vsel %vm1221_vm8, %v5326_v45, -inf }
0x2096   : > { %5329 = vmax.xlane.f32.xlu1 %v5328_v46  ;;  %v6196_v46 = vld [vmem:[%s8100_s18 + $0x60] sm:$0xff] }
0x211d   : > { %v5333_v47 = vpop.xlane.xlu0 %5332 }
0x211e   : > { %v5335_v48 = vsub.f32 %v5327_v43, %v5333_v47  ;;  %v6199_v43 = vld [vmem:[%s8100_s18 + $0x78] sm:$0xff] }
0x211f   : > { %v5330_v49 = vpop.xlane.xlu1 %5329  ;;  %6960 = vmatprep.subr.mxu1 %v6199_v43  ;;  %v6195_v47 = vld [vmem:[%s8100_s18 + $0x58] sm:$0xff] }
0x2120   : > { %v5338_v50 = vmul.f32 1.442695, %v5335_v48  ;;  %v5334_v51 = vsub.f32 %v5326_v45, %v5330_v49  ;;  %v6197_v45 = vld [vmem:[%s8100_s18 + $0x68] sm:$0xff]  ;;  %v6194_v48 = vld [vmem:[%s8100_s18 + $0x50] sm:$0xff] }
0x2121   : > { %v6193_v49 = vld [vmem:[%s8100_s18 + $0x48] sm:$0xff] }
0x2122   : > { %7062 = vpow2.f32 %v5338_v50  ;;  %v5336_v52 = vmul.f32 1.442695, %v5334_v51  ;;  %v6192_v50 = vld [vmem:[%s8100_s18 + $0x40] sm:$0xff] }
0x2123   : > { %v6189_v51 = vld [vmem:[%s8099_s17 + $0x1] ss:$0 sm:$0xff] }
0x2124   : > { %7064 = vpow2.f32 %v5336_v52 }
0x212f   : > { %v7063_v53 = vpop.eup %7062 }
0x2130   : > { %v5343_v24 = vsel %vm1221_vm8, %v7063_v53, 0.0 }
0x2131   : > { %v7065_v54 = vpop.eup %7064  ;;  %5344 = vadd.xlane.f32.xlu0 %v5343_v24 }
0x2132   : > { %v5340_v55 = vsel %vm1221_vm8, %v7065_v54, 0.0 }
0x2133   : > { %5341 = vadd.xlane.f32.xlu1 %v5340_v55 }
0x21ba   : > { %v5345_v60 = vpop.xlane.xlu0 %5344 }
0x21bb   : > { %7066 = vrcp.f32 %v5345_v60 }
0x21bc   : > { %v5342_v59 = vpop.xlane.xlu1 %5341 }
0x21bd   : > { %7068 = vrcp.f32 %v5342_v59 }
0x21c8   : > { %v7067_v56 = vpop.eup %7066 }
0x21c9   : > { %v5349_v63 = vmul.f32 %v7067_v56, %v7063_v53 }
0x21ca   : > { %v7069_v61 = vpop.eup %7068 }
0x21cb   : > { %v5348_v62 = vmul.f32 %v7069_v61, %v7065_v54 }
0x21cd   : > { %6941 = vmatprep.mubr.msk.f32.mxu0 %vm1221_vm8, %v5348_v62 }
0x21ce   : > { %6942 = vmatmul.mubr.msk.f32.vlgmr.msra.gmra.mxu0 %vm1221_vm8, %v5349_v63 }
0x228e   : > { %v6943_v0 = vpop.f32.mrf.mxu0 }
0x2290   : > { %v5422_v1 = vpop.f32.mrf.mxu0 }
0x2291   : > { %6946 = vmatprep.mubr.msk.f32.mxu1 %vm1127_vm5, %v5422_v1 }
0x2292   : > { %6947 = vmatmul.mubr.msk.f32.vlgmr.msra.gmra.mxu1 %vm1127_vm5, %v6943_v0 }
0x2293   : > { %6961 = vmatpush3.msra.mxu1 %v6199_v43 }
0x2294   : > { %6962 = vmatprep.subr.mxu1 %v6198_v44 }
0x2295   : > { %6963 = vmatpush3.msra.mxu1 %v6198_v44 }
0x2296   : > { %6964 = vmatprep.subr.mxu1 %v6197_v45 }
0x2297   : > { %6965 = vmatpush3.msra.mxu1 %v6197_v45 }
0x2298   : > { %6966 = vmatprep.subr.mxu1 %v6196_v46 }
0x2299   : > { %6967 = vmatpush3.msra.mxu1 %v6196_v46 }
0x229a   : > { %6968 = vmatprep.subr.mxu1 %v6195_v47 }
0x229b   : > { %6969 = vmatpush3.msra.mxu1 %v6195_v47 }
0x229c   : > { %6970 = vmatprep.subr.mxu1 %v6194_v48 }
0x229d   : > { %6971 = vmatpush3.msra.mxu1 %v6194_v48 }
0x229e   : > { %6972 = vmatprep.subr.mxu1 %v6193_v49 }
0x229f   : > { %6973 = vmatpush3.msra.mxu1 %v6193_v49 }
0x22a0   : > { %6974 = vmatprep.subr.mxu1 %v6192_v50 }
0x22a1   : > { %6975 = vmatpush3.msra.mxu1 %v6192_v50 }
0x2352   : > { %v6948_v2 = vpop.f32.mrf.mxu1 }
0x2353   : > { %v5515_v4 = vadd.f32 %v6948_v2, %v4972_v35 }
0x2354   : > { %v5505_v5 = vpop.f32.mrf.mxu1 }
0x2355   : > { %v5525_v6 = vadd.f32 %v6179_v3, %v5515_v4  ;;  %v5514_v7 = vadd.f32 %v5505_v5, %v4971_v37 }
0x2357   : > { %v5524_v8 = vadd.f32 %v6179_v3, %v5514_v7  ;;  %v5527_v9 = vadd.f32 %v5525_v6, %v7703_v28 }
0x2359   : > { %v5535_v12 = vsel %vm819_vm4, %v5527_v9, 0.0  ;;  %v5526_v13 = vadd.f32 %v5524_v8, %v7701_v27  ;;  %v6187_v27 = vld [vmem:[%s8098_s16 + $0x38] sm:$0xff] }
0x235a   : > { %5536 = vadd.xlane.f32.xlu0 %v5535_v12  ;;  %6949 = vmatprep.subr.mxu0 %v6187_v27  ;;  %v6201_v12 = vld [vmem:[%s8101_s19 + $0x1] ss:$0 sm:$0xff] }
0x235b   : > { %v5532_v57 = vsel %vm819_vm4, %v5526_v13, 0.0  ;;  %6950 = vmatpush3.msra.mxu0 %v6187_v27 }
0x235c   : > { %5533 = vadd.xlane.f32.xlu1 %v5532_v57  ;;  %6951 = vmatprep.subr.mxu0 %v6186_v23 }
0x235d   : > { %6952 = vmatpush3.msra.mxu0 %v6186_v23 }
0x235e   : > { %6953 = vmatprep.subr.mxu0 %v6185_v29 }
0x235f   : > { %6954 = vmatpush3.msra.mxu0 %v6185_v29 }
0x2360   : > { %6955 = vmatprep.subr.mxu0 %v6184_v30 }
0x2361   : > { %6956 = vmatpush3.msra.mxu0 %v6184_v30 }
0x23e3   : > { %v5537_v10 = vpop.xlane.xlu0 %5536 }
0x23e4   : > { %v5539_v11 = vmul.f32 0.03125, %v5537_v10 }
0x23e5   : > { %v5534_v15 = vpop.xlane.xlu1 %5533 }
0x23e6   : > { %v5541_v16 = vsub.f32 %v5527_v9, %v5539_v11  ;;  %v5538_v17 = vmul.f32 0.03125, %v5534_v15 }
0x23e8   : > { %v5540_v18 = vsub.f32 %v5526_v13, %v5538_v17  ;;  %v5543_v19 = vmul.f32 %v5541_v16, %v5541_v16 }
0x23ea   : > { %v5547_v20 = vsel %vm819_vm4, %v5543_v19, 0.0  ;;  %v5542_v21 = vmul.f32 %v5540_v18, %v5540_v18 }
0x23eb   : > { %5548 = vadd.xlane.f32.xlu0 %v5547_v20 }
0x23ec   : > { %v5544_v28 = vsel %vm819_vm4, %v5542_v21, 0.0 }
0x23ed   : > { %5545 = vadd.xlane.f32.xlu1 %v5544_v28 }
0x2474   : > { %v5549_v31 = vpop.xlane.xlu0 %5548 }
0x2475   : > { %v5551_v32 = vmul.f32 0.03125, %v5549_v31 }
0x2476   : > { %v5546_v33 = vpop.xlane.xlu1 %5545 }
0x2477   : > { %v5553_v34 = vadd.f32 1e-12, %v5551_v32  ;;  %v5550_v35 = vmul.f32 0.03125, %v5546_v33 }
0x2479   : > { %7070 = vrsqrt.f32 %v5553_v34  ;;  %v5552_v36 = vadd.f32 1e-12, %v5550_v35 }
0x247b   : > { %7072 = vrsqrt.f32 %v5552_v36 }
0x2486   : > { %v7071_v37 = vpop.eup %7070 }
0x2487   : > { %v5557_v39 = vmul.f32 %v7071_v37, %v5541_v16 }
0x2488   : > { %v7073_v40 = vpop.eup %7072 }
0x2489   : > { %v5556_v41 = vmul.f32 %v7073_v40, %v5540_v18  ;;  %v5565_v42 = vmul.f32 %v6182_v38, %v5557_v39  ;;  %v6206_v40 = vld [vmem:[%s8102_s20 + $0x1] ss:$0 sm:$0xff] }
0x248b   : > { %v5564_v14 = vmul.f32 %v6182_v38, %v5556_v41  ;;  %v5573_v26 = vadd.f32 %v6183_v58, %v5565_v42 }
0x248d   : > { %v5572_v25 = vadd.f32 %v6183_v58, %v5564_v14  ;;  %v6207_v58 = vld [vmem:[%s8103_s21 + $0x1] ss:$0 sm:$0xff] }
0x248f   : > { %6957 = vmatprep.mubr.msk.f32.mxu0 %vm819_vm4, %v5572_v25 }
0x2490   : > { %6958 = vmatmul.mubr.msk.f32.vlgmr.msra.gmra.mxu0 %vm819_vm4, %v5573_v26 }
0x2550   : > { %v6959_v52 = vpop.f32.mrf.mxu0 }
0x2551   : > { %v5665_v53 = vadd.f32 %v6959_v52, %v6189_v51 }
0x2552   : > { %v5659_v24 = vpop.f32.mrf.mxu0 }
0x2553   : > { %v5669_v54 = vmul.f32 %v5665_v53, %v5665_v53  ;;  %v5660_v55 = vadd.f32 %v6189_v51, %v5659_v24 }
0x2555   : > { %v5671_v22 = vmul.f32 %v5669_v54, %v5665_v53  ;;  %v5668_v60 = vmul.f32 %v5660_v55, %v5660_v55 }
0x2557   : > { %v5673_v59 = vmul.f32 0.044715, %v5671_v22  ;;  %v5670_v56 = vmul.f32 %v5668_v60, %v5660_v55 }
0x2559   : > { %v5675_v61 = vadd.f32 %v5673_v59, %v5665_v53  ;;  %v5672_v62 = vmul.f32 0.044715, %v5670_v56 }
0x255b   : > { %v5677_v63 = vmul.f32 0.7978846, %v5675_v61  ;;  %v5674_v0 = vadd.f32 %v5672_v62, %v5660_v55 }
0x255d   : > { %7074 = vtanh.f32 %v5677_v63  ;;  %v5676_v1 = vmul.f32 0.7978846, %v5674_v0 }
0x255f   : > { %7076 = vtanh.f32 %v5676_v1 }
0x256a   : > { %v7075_v2 = vpop.eup %7074 }
0x256b   : > { %v5681_v3 = vadd.f32 1.0, %v7075_v2 }
0x256c   : > { %v7077_v4 = vpop.eup %7076 }
0x256d   : > { %v5680_v5 = vadd.f32 1.0, %v7077_v4  ;;  %v5683_v6 = vmul.f32 0.5, %v5681_v3 }
0x256f   : > { %v5682_v7 = vmul.f32 0.5, %v5680_v5  ;;  %v5685_v9 = vmul.f32 %v5683_v6, %v5665_v53 }
0x2571   : > { %v5684_v8 = vmul.f32 %v5682_v7, %v5660_v55 }
0x2573   : > { %6976 = vmatprep.mubr.msk.f32.mxu1 %vm3214_vm9, %v5684_v8 }
0x2574   : > { %6977 = vmatmul.mubr.msk.f32.vlgmr.msra.gmra.mxu1 %vm3214_vm9, %v5685_v9 }
0x2634   : > { %v6978_v13 = vpop.f32.mrf.mxu1 }
0x2635   : > { %v5781_v57 = vadd.f32 %v6978_v13, %v6201_v12 }
0x2636   : > { %v5775_v10 = vpop.f32.mrf.mxu1 }
0x2637   : > { %v5776_v11 = vadd.f32 %v6201_v12, %v5775_v10  ;;  %v5785_v15 = vadd.f32 %v5781_v57, %v5573_v26 }
0x2639   : > { %v5793_v16 = vsel %vm819_vm4, %v5785_v15, 0.0  ;;  %v5784_v17 = vadd.f32 %v5776_v11, %v5572_v25 }
0x263a   : > { %5794 = vadd.xlane.f32.xlu0 %v5793_v16 }
0x263b   : > { %v5790_v18 = vsel %vm819_vm4, %v5784_v17, 0.0 }
0x263c   : > { %5791 = vadd.xlane.f32.xlu1 %v5790_v18 }
0x26c3   : > { %v5795_v19 = vpop.xlane.xlu0 %5794 }
0x26c4   : > { %v5797_v20 = vmul.f32 0.03125, %v5795_v19 }
0x26c5   : > { %v5792_v21 = vpop.xlane.xlu1 %5791 }
0x26c6   : > { %v5799_v28 = vsub.f32 %v5785_v15, %v5797_v20  ;;  %v5796_v27 = vmul.f32 0.03125, %v5792_v21 }
0x26c8   : > { %v5798_v23 = vsub.f32 %v5784_v17, %v5796_v27  ;;  %v5801_v29 = vmul.f32 %v5799_v28, %v5799_v28 }
0x26ca   : > { %v5805_v30 = vsel %vm819_vm4, %v5801_v29, 0.0  ;;  %v5800_v31 = vmul.f32 %v5798_v23, %v5798_v23 }
0x26cb   : > { %5806 = vadd.xlane.f32.xlu0 %v5805_v30 }
0x26cc   : > { %v5802_v32 = vsel %vm819_vm4, %v5800_v31, 0.0 }
0x26cd   : > { %5803 = vadd.xlane.f32.xlu1 %v5802_v32 }
0x2754   : > { %v5807_v33 = vpop.xlane.xlu0 %5806 }
0x2755   : > { %v5809_v34 = vmul.f32 0.03125, %v5807_v33 }
0x2756   : > { %v5804_v35 = vpop.xlane.xlu1 %5803 }
0x2757   : > { %v5811_v36 = vadd.f32 1e-12, %v5809_v34  ;;  %v5808_v37 = vmul.f32 0.03125, %v5804_v35 }
0x2759   : > { %7078 = vrsqrt.f32 %v5811_v36  ;;  %v5810_v38 = vadd.f32 1e-12, %v5808_v37 }
0x275b   : > { %7080 = vrsqrt.f32 %v5810_v38 }
0x2766   : > { %v7079_v39 = vpop.eup %7078 }
0x2767   : > { %v5815_v41 = vmul.f32 %v7079_v39, %v5799_v28 }
0x2768   : > { %v7081_v42 = vpop.eup %7080 }
0x2769   : > { %v5823_v14 = vmul.f32 %v6206_v40, %v5815_v41  ;;  %v5814_v25 = vmul.f32 %v7081_v42, %v5798_v23 }
0x276b   : > { %v5831_v26 = vadd.f32 %v6207_v58, %v5823_v14  ;;  %v5822_v43 = vmul.f32 %v6206_v40, %v5814_v25 }
0x276d   : > { %5833 = vst.msk [vmem:[%s703_s1 + $0x8] sm:$0xff] %vm819_vm4, %v5831_v26  ;;  %v5830_v44 = vadd.f32 %v6207_v58, %v5822_v43 }
0x276f   : > { %5832 = vst.msk [vmem:[%s703_s1] sm:$0xff] %vm819_vm4, %v5830_v44 }
0x2770 PF: > { %s32_s3 = sadd.s32 1, %s7088_s3  }
0x2771   : > { %p29_p4 = scmp.ge.s32.totalorder %s32_s3, 4  }
0x2773   :  { %31 = sbr.rel (!%p29_p4) target bundleno = 8 (0x8), region = 199 }

</bundles_post_ra>
